<compile_context>
chip_gen: v5e
topology: v5e:2x2
jax: 0.10.0
libtpu: 0.0.40
codegen_flags: <defaults>
</compile_context>

<pallas_src>
import functools

import jax
import jax.numpy as jnp
from jax.experimental import pallas as pl
from jax.experimental.pallas import tpu as pltpu

# ----------------------------- model config ---------------------------------
DIM_IN = 2
DIM_HIDDEN = 32
DIM_OUT = 1
NUM_LAYERS = 3
W0 = 30.0
W0_INITIAL = 30.0
BATCH = 16

# Inner lane-chunk processed per loop iteration: 256 lanes matches the
# v6e/v7x 256-wide MXU (2 passes on v5e's 128-wide MXU, which is fine).
CHUNK = 256
# Up to 8 chunks (2048 lanes) per grid step to amortize per-step overhead.
# Per-step VMEM is tiny (<1 MiB even double-buffered), so VMEM never binds;
# the chunk loop keeps vreg pressure at ~8 live vregs for h per chunk.
MAX_CHUNKS_PER_BLOCK = 8


# ------------------------------ kernel --------------------------------------
def siren_kernel(num_layers, dim_in, chunk, n_chunks, *refs):
    # refs = (x_ref, W0, b0, ..., W_{L-1}, b_{L-1}, W_last, b_last, out_ref)
    # x_ref:  [DIM_IN, BLOCK]          (batch on lanes, BLOCK = n_chunks*chunk)
    # W_i:    [out, in]  (w0 folded)   b_i: [out, 1]  (w0 folded)
    # out:    [DIM_OUT, BLOCK]
    x_ref = refs[0]
    out_ref = refs[-1]
    param_refs = refs[1:-1]

    # Hoist all parameter loads out of the chunk loop (tiny: a handful of
    # vregs live across the loop; avoids per-iteration reload/broadcast).
    w_first = param_refs[0][...]   # [DIM_HIDDEN, dim_in], w0_initial folded in
    b_first = param_refs[1][...]   # [DIM_HIDDEN, 1],      w0_initial folded in
    hidden = [(param_refs[2 * i][...], param_refs[2 * i + 1][...])
              for i in range(1, num_layers)]
    w_last = param_refs[-2][...]   # [DIM_OUT, DIM_HIDDEN]
    b_last = param_refs[-1][...]   # [DIM_OUT, 1]

    # In-kernel chunk loop over the lane (batch) axis.  scf.for bounds live
    # ranges per iteration (a static Python loop would not).
    @pl.loop(0, n_chunks)
    def _(c):
        start = pl.multiple_of(c * chunk, chunk)
        x = x_ref[:, pl.ds(start, chunk)]            # f32 [dim_in, chunk]

        # ---- First Siren layer on the VPU: K=dim_in (=2) contraction as
        # broadcast multiply-adds; avoids an almost-empty MXU pass.
        pre = b_first + w_first[:, 0:1] * x[0:1, :]
        for k in range(1, dim_in):
            pre = pre + w_first[:, k:k + 1] * x[k:k + 1, :]
        h = jnp.sin(pre)                             # [DIM_HIDDEN, chunk]

        # ---- Remaining Siren layers: sin(W' @ h + b'), scale folded.
        for w, b in hidden:
            h = jnp.sin(jnp.dot(w, h, preferred_element_type=jnp.float32) + b)

        # ---- Final plain Linear: [DIM_OUT, DIM_HIDDEN] @ [DIM_HIDDEN, chunk].
        out = jnp.dot(w_last, h, preferred_element_type=jnp.float32) + b_last
        out_ref[:, pl.ds(start, chunk)] = out.astype(out_ref.dtype)


# --------------------------- parameter prep ----------------------------------
def prepare_kernel_params(params):
    """One-time transform of PyTorch-layout params for the kernel.

    params: flat list [W0, b0, ..., W_{L-1}, b_{L-1}, W_last, b_last] with
            W_i [out, in] and b_i [out] (PyTorch nn.Linear layout).
    Returns the same structure with w0/w0_initial folded into the Siren
    layers and biases reshaped to [out, 1] 2-D slabs.
    """
    prepped = []
    for i in range(NUM_LAYERS):
        w, b = params[2 * i], params[2 * i + 1]
        layer_w0 = W0_INITIAL if i == 0 else W0
        prepped.append(w * layer_w0)
        prepped.append((b * layer_w0).reshape(-1, 1))
    prepped.append(params[-2])                  # W_last [DIM_OUT, DIM_HIDDEN]
    prepped.append(params[-1].reshape(-1, 1))   # b_last [DIM_OUT, 1]
    return prepped


# ------------------------------ wrapper --------------------------------------
@functools.partial(jax.jit, static_argnames=("chunk", "max_chunks_per_block"))
def siren_net_forward(x, kernel_params, chunk=CHUNK,
                      max_chunks_per_block=MAX_CHUNKS_PER_BLOCK):
    """x: [N, DIM_IN] f32.  kernel_params: output of prepare_kernel_params."""
    n = x.shape[0]
    n_chunks_total = pl.cdiv(n, chunk)

    # Big block + in-kernel chunk loop to amortize per-grid-step overhead,
    # but keep >= 2 grid steps whenever there is enough work so the
    # "parallel" batch axis can be megacore-sharded on v7x (2 TCs).
    if n_chunks_total >= 2:
        chunks_per_block = min(max_chunks_per_block, pl.cdiv(n_chunks_total, 2))
    else:
        chunks_per_block = 1
    block = chunks_per_block * chunk
    n_pad = pl.cdiv(n, block) * block
    grid = (n_pad // block,)

    # Layout plumbing only: batch onto the lane axis (+ zero-pad to a block
    # multiple).  Padded lanes compute finite garbage and are sliced off.
    x_t = jnp.zeros((DIM_IN, n_pad), x.dtype).at[:, :n].set(x.T)

    kernel = functools.partial(siren_kernel, NUM_LAYERS, DIM_IN,
                               chunk, chunks_per_block)

    # x / out are tiled over the batch (lane) axis; parameters get a constant
    # index_map so they are fetched once and stay resident in VMEM.
    x_spec = pl.BlockSpec((DIM_IN, block), lambda i: (0, i))
    param_specs = [
        pl.BlockSpec(p.shape, lambda i: (0, 0)) for p in kernel_params
    ]
    out_spec = pl.BlockSpec((DIM_OUT, block), lambda i: (0, i))

    out_t = pl.pallas_call(
        kernel,
        out_shape=jax.ShapeDtypeStruct((DIM_OUT, n_pad), jnp.float32),
        grid=grid,
        in_specs=[x_spec] + param_specs,
        out_specs=out_spec,
        compiler_params=pltpu.CompilerParams(
            dimension_semantics=("parallel",)),
    )(x_t, *kernel_params)

    return out_t[:, :n].T   # back to [N, DIM_OUT]


# ------------------------- deterministic params ------------------------------
def init_params(key):
    """SIREN-style init, deterministic, in PyTorch nn.Linear layout:
    W_i [out, in], b_i [out]."""
    params = []
    dims_in = [DIM_IN] + [DIM_HIDDEN] * (NUM_LAYERS - 1)
    for i, d_in in enumerate(dims_in):
        key, kw, kb = jax.random.split(key, 3)
        is_first = i == 0
        layer_w0 = W0_INITIAL if is_first else W0
        bound = (1.0 / d_in) if is_first else (jnp.sqrt(6.0 / d_in) / layer_w0)
        w = jax.random.uniform(kw, (DIM_HIDDEN, d_in), jnp.float32, -bound, bound)
        b = jax.random.uniform(kb, (DIM_HIDDEN,), jnp.float32, -bound, bound)
        params += [w, b]
    # last_layer: nn.Linear(dim_hidden, dim_out), default PyTorch uniform init.
    key, kw, kb = jax.random.split(key, 3)
    bound = 1.0 / jnp.sqrt(float(DIM_HIDDEN))
    w_last = jax.random.uniform(kw, (DIM_OUT, DIM_HIDDEN), jnp.float32, -bound, bound)
    b_last = jax.random.uniform(kb, (DIM_OUT,), jnp.float32, -bound, bound)
    params += [w_last, b_last]
    return params


# ------------------------------ reference ------------------------------------
def siren_net_reference(x, params):
    """Pure-JAX reference with PyTorch-layout params (W [out,in], b [out])."""
    h = x
    for i in range(NUM_LAYERS):
        w, b = params[2 * i], params[2 * i + 1]
        layer_w0 = W0_INITIAL if i == 0 else W0
        h = jnp.sin(layer_w0 * (h @ w.T + b))
    return h @ params[-2].T + params[-1]


# -------------------------------- main ----------------------------------------
if __name__ == "__main__":
    key = jax.random.PRNGKey(0)
    key, kx = jax.random.split(key)
    params = init_params(key)
    kernel_params = prepare_kernel_params(params)

    # --- Small-batch check (single grid step, single chunk). ---
    x = jax.random.uniform(kx, (BATCH, DIM_IN), jnp.float32, -1.0, 1.0)
    out = jax.block_until_ready(siren_net_forward(x, kernel_params))
    ref = siren_net_reference(x, params)
    assert out.shape == (BATCH, DIM_OUT), out.shape
    assert jnp.allclose(out, ref, atol=1e-4, rtol=1e-4), (
        f"max err {jnp.max(jnp.abs(out - ref))}"
    )

    # --- Larger check exercising the multi-grid-step / multi-chunk path
    #     (grid=(2,), 2 chunks per block, partial-tile padding). ---
    key, kx2 = jax.random.split(key)
    x2 = jax.random.uniform(kx2, (1000, DIM_IN), jnp.float32, -1.0, 1.0)
    out2 = jax.block_until_ready(siren_net_forward(x2, kernel_params))
    ref2 = siren_net_reference(x2, params)
    assert out2.shape == (1000, DIM_OUT), out2.shape
    assert jnp.allclose(out2, ref2, atol=1e-4, rtol=1e-4), (
        f"max err {jnp.max(jnp.abs(out2 - ref2))}"
    )

    print("KERNEL_OK")
</pallas_src>

<mosaic_0001>
module attributes {stable_mosaic.version = 11 : i64} {
  func.func @siren_kernel(%arg0: i32, %arg1: memref<2x256xf32, #tpu.memory_space<vmem>>, %arg2: memref<32x2xf32, #tpu.memory_space<vmem>>, %arg3: memref<32x1xf32, #tpu.memory_space<vmem>>, %arg4: memref<32x32xf32, #tpu.memory_space<vmem>>, %arg5: memref<32x1xf32, #tpu.memory_space<vmem>>, %arg6: memref<32x32xf32, #tpu.memory_space<vmem>>, %arg7: memref<32x1xf32, #tpu.memory_space<vmem>>, %arg8: memref<1x32xf32, #tpu.memory_space<vmem>>, %arg9: memref<1x1xf32, #tpu.memory_space<vmem>>, %arg10: memref<1x256xf32, #tpu.memory_space<vmem>>) attributes {dimension_semantics = [#tpu.dimension_semantics<parallel>], iteration_bounds = array<i64: 1>, scalar_prefetch = 0 : i64, scratch_operands = 0 : i64, tpu.core_type = #tpu.core_type<tc>, window_params = [{transform_indices = @transform_0, window_bounds = array<i64: 2, 256>}, {pipeline_mode = #tpu.pipeline_mode<synchronous>, transform_indices = @transform_1, window_bounds = array<i64: 32, 2>}, {pipeline_mode = #tpu.pipeline_mode<synchronous>, transform_indices = @transform_2, window_bounds = array<i64: 32, 1>}, {pipeline_mode = #tpu.pipeline_mode<synchronous>, transform_indices = @transform_3, window_bounds = array<i64: 32, 32>}, {pipeline_mode = #tpu.pipeline_mode<synchronous>, transform_indices = @transform_4, window_bounds = array<i64: 32, 1>}, {pipeline_mode = #tpu.pipeline_mode<synchronous>, transform_indices = @transform_5, window_bounds = array<i64: 32, 32>}, {pipeline_mode = #tpu.pipeline_mode<synchronous>, transform_indices = @transform_6, window_bounds = array<i64: 32, 1>}, {pipeline_mode = #tpu.pipeline_mode<synchronous>, transform_indices = @transform_7, window_bounds = array<i64: 1, 32>}, {pipeline_mode = #tpu.pipeline_mode<synchronous>, transform_indices = @transform_8, window_bounds = array<i64: 1, 1>}, {transform_indices = @transform_9, window_bounds = array<i64: 1, 256>}]} {
    %c0 = arith.constant 0 : index
    %c0_0 = arith.constant 0 : index
    %0 = vector.load %arg2[%c0, %c0_0] : memref<32x2xf32, #tpu.memory_space<vmem>>, vector<32x2xf32>
    %c0_1 = arith.constant 0 : index
    %c0_2 = arith.constant 0 : index
    %1 = vector.load %arg3[%c0_1, %c0_2] : memref<32x1xf32, #tpu.memory_space<vmem>>, vector<32x1xf32>
    %c0_3 = arith.constant 0 : index
    %c0_4 = arith.constant 0 : index
    %2 = vector.load %arg4[%c0_3, %c0_4] : memref<32x32xf32, #tpu.memory_space<vmem>>, vector<32x32xf32>
    %c0_5 = arith.constant 0 : index
    %c0_6 = arith.constant 0 : index
    %3 = vector.load %arg5[%c0_5, %c0_6] : memref<32x1xf32, #tpu.memory_space<vmem>>, vector<32x1xf32>
    %c0_7 = arith.constant 0 : index
    %c0_8 = arith.constant 0 : index
    %4 = vector.load %arg6[%c0_7, %c0_8] : memref<32x32xf32, #tpu.memory_space<vmem>>, vector<32x32xf32>
    %c0_9 = arith.constant 0 : index
    %c0_10 = arith.constant 0 : index
    %5 = vector.load %arg7[%c0_9, %c0_10] : memref<32x1xf32, #tpu.memory_space<vmem>>, vector<32x1xf32>
    %c0_11 = arith.constant 0 : index
    %c0_12 = arith.constant 0 : index
    %6 = vector.load %arg8[%c0_11, %c0_12] : memref<1x32xf32, #tpu.memory_space<vmem>>, vector<1x32xf32>
    %c0_13 = arith.constant 0 : index
    %c0_14 = arith.constant 0 : index
    %7 = vector.load %arg9[%c0_13, %c0_14] : memref<1x1xf32, #tpu.memory_space<vmem>>, vector<1x1xf32>
    %c0_i32 = arith.constant 0 : i32
    %c1_i32 = arith.constant 1 : i32
    %8 = arith.muli %c0_i32, %c1_i32 : i32
    %c0_i32_15 = arith.constant 0 : i32
    %9 = arith.addi %c0_i32_15, %8 : i32
    %c256_i32 = arith.constant 256 : i32
    %10 = arith.muli %9, %c256_i32 : i32
    %11 = tpu.assume_multiple %10, 256 : i32
    %c0_16 = arith.constant 0 : index
    %12 = arith.index_cast %11 : i32 to index
    %13 = vector.load %arg1[%c0_16, %12] : memref<2x256xf32, #tpu.memory_space<vmem>>, vector<2x256xf32>
    %14 = vector.extract_strided_slice %0 {offsets = [0, 0], sizes = [32, 1], strides = [1, 1]} : vector<32x2xf32> to vector<32x1xf32>
    %15 = vector.extract_strided_slice %13 {offsets = [0, 0], sizes = [1, 256], strides = [1, 1]} : vector<2x256xf32> to vector<1x256xf32>
    %16 = vector.broadcast %14 : vector<32x1xf32> to vector<32x256xf32>
    %17 = vector.broadcast %15 : vector<1x256xf32> to vector<32x256xf32>
    %18 = arith.mulf %16, %17 : vector<32x256xf32>
    %19 = vector.broadcast %1 : vector<32x1xf32> to vector<32x256xf32>
    %20 = arith.addf %19, %18 : vector<32x256xf32>
    %21 = vector.extract_strided_slice %0 {offsets = [0, 1], sizes = [32, 1], strides = [1, 1]} : vector<32x2xf32> to vector<32x1xf32>
    %22 = vector.extract_strided_slice %13 {offsets = [1, 0], sizes = [1, 256], strides = [1, 1]} : vector<2x256xf32> to vector<1x256xf32>
    %23 = vector.broadcast %21 : vector<32x1xf32> to vector<32x256xf32>
    %24 = vector.broadcast %22 : vector<1x256xf32> to vector<32x256xf32>
    %25 = arith.mulf %23, %24 : vector<32x256xf32>
    %26 = arith.addf %20, %25 : vector<32x256xf32>
    %27 = math.sin %26 : vector<32x256xf32>
    %cst = arith.constant dense<0.000000e+00> : vector<32x256xf32>
    %28 = tpu.matmul %2, %27, %cst {dimension_numbers = #tpu.dot_dimension_numbers<[1], [0], [0], [1], [0, 0, 1, 1], [], []>} : vector<32x32xf32>, vector<32x256xf32>, vector<32x256xf32> -> vector<32x256xf32>
    %29 = vector.broadcast %3 : vector<32x1xf32> to vector<32x256xf32>
    %30 = arith.addf %28, %29 : vector<32x256xf32>
    %31 = math.sin %30 : vector<32x256xf32>
    %cst_17 = arith.constant dense<0.000000e+00> : vector<32x256xf32>
    %32 = tpu.matmul %4, %31, %cst_17 {dimension_numbers = #tpu.dot_dimension_numbers<[1], [0], [0], [1], [0, 0, 1, 1], [], []>} : vector<32x32xf32>, vector<32x256xf32>, vector<32x256xf32> -> vector<32x256xf32>
    %33 = vector.broadcast %5 : vector<32x1xf32> to vector<32x256xf32>
    %34 = arith.addf %32, %33 : vector<32x256xf32>
    %35 = math.sin %34 : vector<32x256xf32>
    %cst_18 = arith.constant dense<0.000000e+00> : vector<1x256xf32>
    %36 = tpu.matmul %6, %35, %cst_18 {dimension_numbers = #tpu.dot_dimension_numbers<[1], [0], [0], [1], [0, 0, 1, 1], [], []>} : vector<1x32xf32>, vector<32x256xf32>, vector<1x256xf32> -> vector<1x256xf32>
    %37 = vector.broadcast %7 : vector<1x1xf32> to vector<1x256xf32>
    %38 = arith.addf %36, %37 : vector<1x256xf32>
    %c0_19 = arith.constant 0 : index
    %39 = arith.index_cast %11 : i32 to index
    %40 = vector.load %arg10[%c0_19, %39] : memref<1x256xf32, #tpu.memory_space<vmem>>, vector<1x256xf32>
    tpu.vector_store %arg10[%c0_19, %39], %38 {strides = array<i32>} : memref<1x256xf32, #tpu.memory_space<vmem>>, vector<1x256xf32>,
    %c1_i32_20 = arith.constant 1 : i32
    return
  }
  func.func @transform_0(%arg0: i32) -> (i32, i32) {
    %c0_i32 = arith.constant 0 : i32
    %c0_i32_0 = arith.constant 0 : i32
    return %c0_i32, %arg0 : i32, i32
  }
  func.func @transform_1(%arg0: i32) -> (i32, i32) {
    %c0_i32 = arith.constant 0 : i32
    %c0_i32_0 = arith.constant 0 : i32
    %c0_i32_1 = arith.constant 0 : i32
    return %c0_i32, %c0_i32_0 : i32, i32
  }
  func.func @transform_2(%arg0: i32) -> (i32, i32) {
    %c0_i32 = arith.constant 0 : i32
    %c0_i32_0 = arith.constant 0 : i32
    %c0_i32_1 = arith.constant 0 : i32
    return %c0_i32, %c0_i32_0 : i32, i32
  }
  func.func @transform_3(%arg0: i32) -> (i32, i32) {
    %c0_i32 = arith.constant 0 : i32
    %c0_i32_0 = arith.constant 0 : i32
    %c0_i32_1 = arith.constant 0 : i32
    return %c0_i32, %c0_i32_0 : i32, i32
  }
  func.func @transform_4(%arg0: i32) -> (i32, i32) {
    %c0_i32 = arith.constant 0 : i32
    %c0_i32_0 = arith.constant 0 : i32
    %c0_i32_1 = arith.constant 0 : i32
    return %c0_i32, %c0_i32_0 : i32, i32
  }
  func.func @transform_5(%arg0: i32) -> (i32, i32) {
    %c0_i32 = arith.constant 0 : i32
    %c0_i32_0 = arith.constant 0 : i32
    %c0_i32_1 = arith.constant 0 : i32
    return %c0_i32, %c0_i32_0 : i32, i32
  }
  func.func @transform_6(%arg0: i32) -> (i32, i32) {
    %c0_i32 = arith.constant 0 : i32
    %c0_i32_0 = arith.constant 0 : i32
    %c0_i32_1 = arith.constant 0 : i32
    return %c0_i32, %c0_i32_0 : i32, i32
  }
  func.func @transform_7(%arg0: i32) -> (i32, i32) {
    %c0_i32 = arith.constant 0 : i32
    %c0_i32_0 = arith.constant 0 : i32
    %c0_i32_1 = arith.constant 0 : i32
    return %c0_i32, %c0_i32_0 : i32, i32
  }
  func.func @transform_8(%arg0: i32) -> (i32, i32) {
    %c0_i32 = arith.constant 0 : i32
    %c0_i32_0 = arith.constant 0 : i32
    %c0_i32_1 = arith.constant 0 : i32
    return %c0_i32, %c0_i32_0 : i32, i32
  }
  func.func @transform_9(%arg0: i32) -> (i32, i32) {
    %c0_i32 = arith.constant 0 : i32
    %c0_i32_0 = arith.constant 0 : i32
    return %c0_i32, %arg0 : i32, i32
  }
}

</mosaic_0001>

<bundles_post_ra>
// kernel: siren_net_forward.1
= control target key start
LH: loop header
LB: loop body
LE: loop exit
PB: predicated region body
PF: predicated region fallthrough
CT: control target
= control target key end

     0   :  { %v7615_v0 = vmov 0   ;;  %v4235_v6 = vmov 1   ;;  %s7591_s2 = inlined_call_operand.vmem [shape: f32[32,1], index: 2, kind: input, shape index: {}]   ;;  %s7592_s1 = inlined_call_operand.vmem [shape: f32[32,2], index: 1, kind: input, shape index: {}]   ;;  %s7593_s4 = inlined_call_operand.vmem [shape: f32[32,1], index: 4, kind: input, shape index: {}]   ;;  %s7594_s6 = inlined_call_operand.vmem [shape: f32[32,1], index: 6, kind: input, shape index: {}]   ;;  %s7595_s0 = inlined_call_operand.vmem [shape: f32[2,256], index: 0, kind: input, shape index: {}]   ;;  %s7596_s3 = inlined_call_operand.vmem [shape: f32[32,32], index: 3, kind: input, shape index: {}]   ;;  %s7597_s8 = inlined_call_operand.<no memory space> [shape: f32[1,1], index: 8, kind: input, shape index: {}]   ;;  %s7598_s5 = inlined_call_operand.vmem [shape: f32[32,32], index: 5, kind: input, shape index: {}]   ;;  %s7599_s7 = inlined_call_operand.vmem [shape: f32[1,32], index: 7, kind: input, shape index: {}]   ;;  %s7600_s9 = inlined_call_operand.vmem [shape: f32[1,256], index: 9, kind: output, shape index: {}]  }
   0x1   :  { %4228 = vset.pattern.permute.xlu2 %v7615_v0  ;;  %4226 = vset.pattern.permute.xlu1 %v7615_v0  ;;  %v41_v1 = vld [vmem:[%s7591_s2 + $0x18] sm:$0xff]  ;;  %v35_v3 = vld [vmem:[%s7592_s1 + $0x8] sm:$0xff]  ;;  %v36_v4 = vld [vmem:[%s7592_s1 + $0x10] sm:$0xff] }
   0x2   :  { %v37_v2 = vld [vmem:[%s7592_s1 + $0x18] sm:$0xff]  ;;  %4225 = vset.pattern.permute.xlu0 %v7615_v0  ;;  %113 = vperm.xlu1 %4226, %v41_v1   ;;  %v40_v5 = vld [vmem:[%s7591_s2 + $0x10] sm:$0xff]  ;;  %v39_v7 = vld [vmem:[%s7591_s2 + $0x8] sm:$0xff] }
   0x3   :  { %78 = vperm.xlu0 %4225, %v37_v2   ;;  %68 = vperm.xlu2 %4228, %v35_v3   ;;  %v34_v8 = vld [vmem:[%s7592_s1] sm:$0xff]  ;;  %v48_v10 = vld [vmem:[%s7593_s4 + $0x10] sm:$0xff]  ;;  %v57_v11 = vld [vmem:[%s7594_s6 + $0x18] sm:$0xff] }
   0x4   :  { %v38_v9 = vld [vmem:[%s7591_s2] sm:$0xff]  ;;  %v55_v12 = vld [vmem:[%s7594_s6 + $0x8] sm:$0xff] }
   0x5   :  { %v60_v13 = vld [vmem:[%s7595_s0] sm:$0xf] }
   0x6   :  { %v82_v14 = vperm.slane %v60_v13, 0  ;;  %v83_v15 = vperm.slane %v60_v13, 2  ;;  %v140_v23 = vperm.slane %v60_v13, 1  ;;  %v141_v24 = vperm.slane %v60_v13, 3 }
   0x8   :  { %v86_v16 = vperm.slane %v82_v14, 0  ;;  %v87_v17 = vperm.slane %v83_v15, 0  ;;  %v144_v27 = vperm.slane %v140_v23, 1  ;;  %v145_v28 = vperm.slane %v141_v24, 1 }
   0xa   :  { %4227 = vset.pattern.permute.xlu1 %v4235_v6 }
   0xb   :  { %73 = vperm.xlu0 %4225, %v36_v4   ;;  %108 = vperm.xlu2 %4228, %v40_v5  }
   0xc   :  { %137 = vperm.xlu1 %4227, %v37_v2  }
  0x13   :  { %4229 = vset.pattern.permute.xlu0 %v4235_v6  ;;  %103 = vperm.xlu2 %4228, %v39_v7  }
  0x14   :  { %4230 = vset.pattern.permute.xlu1 %v7615_v0  ;;  %133 = vperm.xlu0 %4229, %v36_v4  }
  0x15   :  { %63 = vperm.xlu1 %4230, %v34_v8  }
  0x1b   :  { %98 = vperm.xlu2 %4228, %v38_v9  }
  0x1c   :  { %125 = vperm.xlu0 %4229, %v34_v8  }
  0x1d   :  { %4231 = vset.pattern.permute.xlu1 %v4235_v6 }
  0x1e   :  { %129 = vperm.xlu1 %4231, %v35_v3  }
  0x23   :  { %1414 = vperm.xlu2 %4228, %v48_v10  }
  0x24   :  { %4233 = vset.pattern.permute.xlu0 %v7615_v0 }
  0x26   :  { %4232 = vset.pattern.permute.xlu1 %v7615_v0 }
  0x2b   :  { %2750 = vperm.xlu2 %4228, %v57_v11  }
  0x33   :  { %2740 = vperm.xlu2 %4228, %v55_v12  }
  0x5d   :  { %v69_v18 = vpop.permute.xlu2 %68 }
  0x5e   :  { %v90_v19 = vmul.f32 %v86_v16, %v69_v18  ;;  %v91_v20 = vmul.f32 %v87_v17, %v69_v18 }
  0x65   :  { %v109_v25 = vpop.permute.xlu2 %108 }
  0x6d   :  { %v104_v39 = vpop.permute.xlu2 %103 }
  0x6e   :  { %v118_v63 = vadd.f32 %v104_v39, %v90_v19  ;;  %v119_v9 = vadd.f32 %v104_v39, %v91_v20  ;;  %v7609_v39 = vmov 2131351028  }
  0x74   :  { %v114_v21 = vpop.permute.xlu1 %113 }
  0x75   :  { %v79_v22 = vpop.permute.xlu0 %78  ;;  %v99_v61 = vpop.permute.xlu2 %98 }
  0x76   :  { %v94_v26 = vmul.f32 %v86_v16, %v79_v22  ;;  %v95_v29 = vmul.f32 %v87_v17, %v79_v22 }
  0x78   :  { %v122_v32 = vadd.f32 %v114_v21, %v94_v26  ;;  %v123_v35 = vadd.f32 %v114_v21, %v95_v29 }
  0x7d   :  { %v74_v30 = vpop.permute.xlu0 %73 }
  0x7e   :  { %v138_v31 = vpop.permute.xlu1 %137  ;;  %v92_v37 = vmul.f32 %v86_v16, %v74_v30  ;;  %v93_v40 = vmul.f32 %v87_v17, %v74_v30 }
  0x7f   :  { %v152_v33 = vmul.f32 %v144_v27, %v138_v31  ;;  %v153_v34 = vmul.f32 %v145_v28, %v138_v31  ;;  %v7611_v31 = vmov 2475754826  }
  0x80   :  { %v120_v43 = vadd.f32 %v109_v25, %v92_v37  ;;  %v121_v46 = vadd.f32 %v109_v25, %v93_v40 }
  0x81   :  { %v4334_v36 = vadd.f32 %v152_v33, %v122_v32  ;;  %v4336_v38 = vadd.f32 %v153_v34, %v123_v35  ;;  %v7613_v34 = vmov 683565275  }
  0x83   :  { %v1095_v41 = vand.u32 2139095040, %v4334_v36  ;;  %v1250_v44 = vand.u32 2139095040, %v4336_v38  ;;  %v1092_v53 = vand.u32 2147483647, %v4334_v36  ;;  %v1247_v13 = vand.u32 2147483647, %v4336_v38 }
  0x85   :  { %v1096_v42 = vshrl.u32 %v1095_v41, 23  ;;  %v1251_v57 = vshrl.u32 %v1250_v44, 23  ;;  %v1099_v60 = vand.u32 8388607, %v1092_v53  ;;  %v1254_v25 = vand.u32 8388607, %v1247_v13 }
  0x86   :  { %v134_v45 = vpop.permute.xlu0 %133  ;;  %v7606_v41 = vmov 2102212464  }
  0x87   :  { %v4145_v47 = vadd.s32 4294967169, %v1096_v42  ;;  %v150_v48 = vmul.f32 %v144_v27, %v134_v45  ;;  %v151_v49 = vmul.f32 %v145_v28, %v134_v45  ;;  %v64_v50 = vpop.permute.xlu1 %63  ;;  %v4148_v1 = vadd.s32 4294967169, %v1251_v57 }
  0x88   :  { %v88_v51 = vmul.f32 %v86_v16, %v64_v50  ;;  %v89_v52 = vmul.f32 %v87_v17, %v64_v50  ;;  %v1100_v12 = vor.u32 8388608, %v1099_v60  ;;  %v1255_v32 = vor.u32 8388608, %v1254_v25 }
  0x89   :  { %v1102_v54 = vadd.s32 1, %v4145_v47  ;;  %v4341_v55 = vadd.f32 %v150_v48, %v120_v43  ;;  %v4343_v56 = vadd.f32 %v151_v49, %v121_v46  ;;  %v1257_v18 = vadd.s32 1, %v4148_v1 }
  0x8a   :  { %v116_v3 = vadd.f32 %v99_v61, %v88_v51  ;;  %v117_v6 = vadd.f32 %v99_v61, %v89_v52  ;;  %v4358_v20 = vshll.u32 %v1100_v12, 8  ;;  %v7604_v43 = vmov 920167782  }
  0x8b   :  { %vm1103_vm0 = vcmp.gt.s32.totalorder %v1102_v54, 0  ;;  %v785_v58 = vand.u32 2139095040, %v4341_v55  ;;  %v940_v59 = vand.u32 2139095040, %v4343_v56  ;;  %vm1258_vm1 = vcmp.gt.s32.totalorder %v1257_v18, 0 }
  0x8c   :  { %v1104_v62 = vsel %vm1103_vm0, %v1102_v54, 0  ;;  %v1259_v30 = vsel %vm1258_vm1, %v1257_v18, 0  ;;  %v4369_v37 = vshrl.u32 %v4358_v20, 16 }
  0x8d   :  { %v786_v2 = vshrl.u32 %v785_v58, 23  ;;  %v941_v5 = vshrl.u32 %v940_v59, 23  ;;  %v1106_v10 = vand.u32 31, %v1104_v62  ;;  %v1105_v45 = vshrl.u32 %v1104_v62, 5 }
  0x8e   :  { %v126_v4 = vpop.permute.xlu0 %125  ;;  %v4374_v46 = vshrl.u32 %v1259_v30, 5  ;;  %v4376_v47 = vand.u32 31, %v1259_v30  ;;  %v7602_v59 = vmov 1326507024  }
  0x8f   :  { %v146_v7 = vmul.f32 %v144_v27, %v126_v4  ;;  %v147_v8 = vmul.f32 %v145_v28, %v126_v4  ;;  %v4139_v19 = vadd.s32 4294967169, %v786_v2  ;;  %v4142_v21 = vadd.s32 4294967169, %v941_v5 }
  0x90   :  { %v130_v11 = vpop.permute.xlu1 %129  ;;  %v1107_v24 = vsub.s32 32, %v1106_v10  ;;  %v1109_v35 = vshll.u32 %v7613_v34, %v1106_v10  ;;  %v1112_v50 = vshll.u32 %v7611_v31, %v1106_v10  ;;  %v1115_v51 = vshll.u32 %v7609_v39, %v1106_v10 }
  0x91   :  { %v4350_v14 = vadd.f32 %v146_v7, %v116_v3  ;;  %v4352_v15 = vadd.f32 %v147_v8, %v117_v6  ;;  %v148_v16 = vmul.f32 %v144_v27, %v130_v11  ;;  %v149_v17 = vmul.f32 %v145_v28, %v130_v11 }
  0x92   :  { %v792_v26 = vadd.s32 1, %v4139_v19  ;;  %v947_v29 = vadd.s32 1, %v4142_v21  ;;  %v1110_v27 = vshrl.u32 %v7611_v31, %v1107_v24  ;;  %v4364_v28 = vand.u32 65535, %v4358_v20 }
  0x93   :  { %v4354_v22 = vadd.f32 %v148_v16, %v118_v63  ;;  %v4356_v23 = vadd.f32 %v149_v17, %v119_v9  ;;  %v165_v33 = vand.u32 2139095040, %v4350_v14  ;;  %v1113_v40 = vshrl.u32 %v7609_v39, %v1107_v24 }
  0x94   :  { %vm793_vm2 = vcmp.gt.s32.totalorder %v792_v26, 0  ;;  %vm948_vm3 = vcmp.gt.s32.totalorder %v947_v29, 0  ;;  %v1116_v42 = vshrl.u32 %v7606_v41, %v1107_v24  ;;  %v1119_v44 = vshrl.u32 %v7604_v43, %v1107_v24 }
  0x95   :  { %v320_v48 = vand.u32 2139095040, %v4352_v15  ;;  %v1111_v49 = vor.u32 %v1110_v27, %v1109_v35  ;;  %v1118_v52 = vshll.u32 %v7606_v41, %v1106_v10  ;;  %v794_v54 = vsel %vm793_vm2, %v792_v26, 0 }
  0x96   :  { %v949_v57 = vsel %vm948_vm3, %v947_v29, 0  ;;  %v166_v58 = vshrl.u32 %v165_v33, 23  ;;  %v1122_v60 = vshrl.u32 %v7602_v59, %v1107_v24  ;;  %v1114_v61 = vor.u32 %v1113_v40, %v1112_v50 }
  0x97   :  { %v1117_v62 = vor.u32 %v1116_v42, %v1115_v51  ;;  %v1120_v63 = vor.u32 %v1119_v44, %v1118_v52  ;;  %v1121_v1 = vshll.u32 %v7604_v43, %v1106_v10  ;;  %v4387_v2 = vsub.s32 32, %v4376_v47 }
  0x98   :  { %v321_v3 = vshrl.u32 %v320_v48, 23  ;;  %v1108_v4 = vshrl.u32 %v7613_v34, %v1107_v24  ;;  %v4390_v5 = vshll.u32 %v1255_v32, 8  ;;  %v4392_v6 = vshrl.u32 %v794_v54, 5 }
  0x99   :  { %v4394_v7 = vand.u32 31, %v794_v54  ;;  %v4396_v8 = vshrl.u32 %v949_v57, 5  ;;  %v1123_v9 = vor.u32 %v1122_v60, %v1121_v1  ;;  %v4398_v11 = vand.u32 31, %v949_v57 }
  0x9a   :  { %v4400_v12 = vadd.s32 4294967169, %v166_v58  ;;  %vm1124_vm4 = vcmp.lt.s32.totalorder %v1105_v45, 1  ;;  %vm1127_vm5 = vcmp.lt.s32.totalorder %v1105_v45, 4  ;;  %vm1126_vm6 = vcmp.lt.s32.totalorder %v1105_v45, 3 }
  0x9b   :  { %v1129_v10 = vsel %vm1127_vm5, %v1117_v62, 2102212464  ;;  %v1132_v16 = vsel %vm1124_vm4, %v1111_v49, %v1114_v61  ;;  %v1133_v17 = vsel %vm1127_vm5, %v1120_v63, 920167782  ;;  %v475_v18 = vand.u32 2139095040, %v4354_v22 }
  0x9c   :  { %vm1125_vm7 = vcmp.lt.s32.totalorder %v1105_v45, 2  ;;  %v1134_v19 = vsel %vm1126_vm6, %v1117_v62, %v1133_v17  ;;  %v1136_v21 = vsel %vm1124_vm4, %v1114_v61, %v1117_v62  ;;  %v4403_v24 = vadd.s32 4294967169, %v321_v3 }
  0x9d   :  { %v1128_v25 = vsel %vm1124_vm4, %v1108_v4, %v1111_v49  ;;  %v1135_v26 = vsel %vm1125_vm7, %v1132_v16, %v1134_v19  ;;  %v1137_v29 = vsel %vm1127_vm5, %v1123_v9, 1326507024  ;;  %v1130_v30 = vsel %vm1126_vm6, %v1114_v61, %v1129_v10 }
  0x9e   :  { %v1138_v27 = vsel %vm1126_vm6, %v1120_v63, %v1137_v29  ;;  %v1165_v32 = vand.u32 65535, %v1135_v26  ;;  %v1166_v33 = vshrl.u32 %v1135_v26, 16  ;;  %v630_v35 = vand.u32 2139095040, %v4356_v23 }
  0x9f   :  { %v1139_v40 = vsel %vm1125_vm7, %v1136_v21, %v1138_v27  ;;  %v1265_v42 = vshrl.u32 %v7611_v31, %v4387_v2  ;;  %v1268_v44 = vshrl.u32 %v7609_v39, %v4387_v2  ;;  %v4412_v48 = vshrl.u32 %v475_v18, 23 }
  0xa0   :  { %v1143_v49 = vand.u32 65535, %v1139_v40  ;;  %v1144_v50 = vshrl.u32 %v1139_v40, 16  ;;  %v1168_v51 = vmul.u32 %v1166_v33, %v4364_v28  ;;  %v4416_v52 = vsel %vm1125_vm7, %v1128_v25, %v1130_v30 }
  0xa1   :  { %v1169_v54 = vmul.u32 %v1165_v32, %v4369_v37  ;;  %v1264_v57 = vshll.u32 %v7613_v34, %v4376_v47  ;;  %v1267_v58 = vshll.u32 %v7611_v31, %v4376_v47  ;;  %v1167_v62 = vmul.u32 %v1165_v32, %v4364_v28 }
  0xa2   :  { %v1146_v60 = vmul.u32 %v1144_v50, %v4364_v28  ;;  %v1147_v61 = vmul.u32 %v1143_v49, %v4369_v37  ;;  %v1170_v63 = vmul.u32 %v1166_v33, %v4369_v37  ;;  %v1145_v45 = vmul.u32 %v1143_v49, %v4364_v28 }
  0xa3   :  { %v1171_v1 = vshll.u32 %v1168_v51, 16  ;;  %v4428_v3 = vor.u32 %v1265_v42, %v1264_v57  ;;  %v4430_v4 = vor.u32 %v1268_v44, %v1267_v58  ;;  %v1148_v9 = vmul.u32 %v1144_v50, %v4369_v37 }
  0xa4   :  { %v1149_v10 = vshll.u32 %v1146_v60, 16  ;;  %v1172_v16 = vshrl.u32 %v1168_v51, 16  ;;  %v1173_v17 = vshll.u32 %v1169_v54, 16  ;;  %v1151_v18 = vshll.u32 %v1147_v61, 16 }
  0xa5   :  { %v1174_v19 = vshrl.u32 %v1169_v54, 16  ;;  %vm1175_vm8 = vc.u32 %v1167_v62, %v1171_v1  ;;  %v1177_v21 = vadd.s32 %v1171_v1, %v1167_v62  ;;  %v1271_v28 = vshrl.u32 %v7606_v41, %v4387_v2 }
  0xa6   :  { %vm1153_vm9 = vc.u32 %v1145_v45, %v1149_v10  ;;  %v1155_v25 = vadd.s32 %v1149_v10, %v1145_v45  ;;  %v1176_v26 = vsel %vm1175_vm8, 1, %v7615_v0  ;;  %v1150_v29 = vshrl.u32 %v1146_v60, 16 }
  0xa7   :  { %v1154_v30 = vsel %vm1153_vm9, 1, %v7615_v0  ;;  %v1178_v27 = vadd.s32 %v1176_v26, %v1170_v63  ;;  %vm1179_vm10 = vc.u32 %v1177_v21, %v1173_v17  ;;  %v1270_v33 = vshll.u32 %v7609_v39, %v4376_v47 }
  0xa8   :  { %v1156_v37 = vadd.s32 %v1154_v30, %v1148_v9  ;;  %vm1157_vm11 = vc.u32 %v1155_v25, %v1151_v18  ;;  %v1180_v32 = vsel %vm1179_vm10, 1, %v7615_v0  ;;  %v1273_v44 = vshll.u32 %v7606_v41, %v4376_v47 }
  0xa9   :  { %v1158_v40 = vsel %vm1157_vm11, 1, %v7615_v0  ;;  %v1182_v42 = vadd.s32 %v1180_v32, %v1178_v27  ;;  %v1274_v49 = vshrl.u32 %v7604_v43, %v4387_v2  ;;  %v1272_v51 = vor.u32 %v1271_v28, %v1270_v33 }
  0xaa   :  { %v1160_v50 = vadd.s32 %v1158_v40, %v1156_v37  ;;  %v1276_v54 = vshll.u32 %v7604_v43, %v4376_v47  ;;  %v1277_v57 = vshrl.u32 %v7602_v59, %v4387_v2  ;;  %v1152_v58 = vshrl.u32 %v1147_v61, 16 }
  0xab   :  { %v4449_v60 = vadd.s32 %v1177_v21, %v1173_v17  ;;  %v1183_v62 = vadd.s32 %v1182_v42, %v1172_v16  ;;  %v1275_v63 = vor.u32 %v1274_v49, %v1273_v44  ;;  %vm1279_vm12 = vcmp.lt.s32.totalorder %v4374_v46, 1 }
  0xac   :  { %v1161_v45 = vadd.s32 %v1160_v50, %v1150_v29  ;;  %v1278_v1 = vor.u32 %v1277_v57, %v1276_v54  ;;  %vm1282_vm13 = vcmp.lt.s32.totalorder %v4374_v46, 4  ;;  %vm1281_vm14 = vcmp.lt.s32.totalorder %v4374_v46, 3 }
  0xad   :  { %v1184_v9 = vadd.s32 %v1183_v62, %v1174_v19  ;;  %v1287_v47 = vsel %vm1279_vm12, %v4428_v3, %v4430_v4  ;;  %v1288_v61 = vsel %vm1282_vm13, %v1275_v63, 920167782  ;;  %vm1280_vm15 = vcmp.lt.s32.totalorder %v4374_v46, 2 }
  0xae   :  { %v4460_v10 = vadd.s32 %v1161_v45, %v1152_v58  ;;  %v1289_v16 = vsel %vm1281_vm14, %v1272_v51, %v1288_v61  ;;  %v1291_v17 = vsel %vm1279_vm12, %v4430_v4, %v1272_v51  ;;  %v1185_v18 = vmul.u32 %v4358_v20, %v4416_v52 }
  0xaf   :  { %v1188_v19 = vadd.s32 1, %v1184_v9  ;;  %v1290_v21 = vsel %vm1280_vm15, %v1287_v47, %v1289_v16  ;;  %v1292_v25 = vsel %vm1282_vm13, %v1278_v1, 1326507024  ;;  %v1296_v28 = vand.u32 65535, %v4390_v5 }
  0xb0   :  { %vm1187_vm0 = vc.u32 %v4460_v10, %v4449_v60  ;;  %v1293_v26 = vsel %vm1281_vm14, %v1275_v63, %v1292_v25  ;;  %v1297_v29 = vshrl.u32 %v4390_v5, 16  ;;  %v1320_v52 = vand.u32 65535, %v1290_v21 }
  0xb1   :  { %v1189_v30 = vsel %vm1187_vm0, %v1188_v19, %v1184_v9  ;;  %v1294_v20 = vsel %vm1280_vm15, %v1291_v17, %v1293_v26  ;;  %v1321_v27 = vshrl.u32 %v1290_v21, 16  ;;  %v4483_v37 = vsub.s32 32, %v4394_v7 }
  0xb2   :  { %v1190_v32 = vadd.s32 %v1189_v30, %v1185_v18  ;;  %v1298_v33 = vand.u32 65535, %v1294_v20  ;;  %v1299_v40 = vshrl.u32 %v1294_v20, 16  ;;  %v4486_v42 = vsub.s32 32, %v4398_v11 }
  0xb3   :  { %v1263_v44 = vshrl.u32 %v7613_v34, %v4387_v2  ;;  %v1323_v49 = vmul.u32 %v1321_v27, %v1296_v28  ;;  %v1324_v50 = vmul.u32 %v1320_v52, %v1297_v29  ;;  %v631_v54 = vshrl.u32 %v630_v35, 23 }
  0xb4   :  { %v1191_v57 = vadd.s32 536870912, %v1190_v32  ;;  %v1301_v58 = vmul.u32 %v1299_v40, %v1296_v28  ;;  %v1302_v62 = vmul.u32 %v1298_v33, %v1297_v29  ;;  %v4133_v63 = vadd.s32 4294967169, %v4412_v48 }
  0xb5   :  { %v1283_v45 = vsel %vm1279_vm12, %v1263_v44, %v4428_v3  ;;  %v1322_v1 = vmul.u32 %v1320_v52, %v1296_v28  ;;  %v1326_v9 = vshll.u32 %v1323_v49, 16  ;;  %v1284_v2 = vsel %vm1282_vm13, %v1272_v51, 2102212464 }
  0xb6   :  { %v1192_v47 = vshrl.u32 %v1191_v57, 30  ;;  %v1300_v61 = vmul.u32 %v1298_v33, %v1296_v28  ;;  %v1304_v16 = vshll.u32 %v1301_v58, 16  ;;  %v1303_v17 = vmul.u32 %v1299_v40, %v1297_v29 }
  0xb7   :  { %v1328_v18 = vshll.u32 %v1324_v50, 16  ;;  %vm1330_vm1 = vc.u32 %v1322_v1, %v1326_v9  ;;  %v1332_v35 = vadd.s32 %v1326_v9, %v1322_v1  ;;  %v1306_v21 = vshll.u32 %v1302_v62, 16 }
  0xb8   :  { %v1193_v19 = vshll.u32 %v1192_v47, 30  ;;  %vm1308_vm2 = vc.u32 %v1300_v61, %v1304_v16  ;;  %v1310_v48 = vadd.s32 %v1304_v16, %v1300_v61  ;;  %vm1094_vm3 = vcmp.lt.s32.totalorder %v4334_v36, 0 }
  0xb9   :  { %v1309_v3 = vsel %vm1308_vm2, 1, %v7615_v0  ;;  %v1325_v25 = vmul.u32 %v1321_v27, %v1297_v29  ;;  %v1331_v26 = vsel %vm1330_vm1, 1, %v7615_v0  ;;  %vm1334_vm4 = vc.u32 %v1332_v35, %v1328_v18 }
  0xba   :  { %v4501_v30 = vsub.s32 %v1190_v32, %v1193_v19  ;;  %v1285_v51 = vsel %vm1281_vm14, %v4430_v4, %v1284_v2  ;;  %v1311_v28 = vadd.s32 %v1309_v3, %v1303_v17  ;;  %vm1312_vm5 = vc.u32 %v1310_v48, %v1306_v21 }
  0xbb   :  { %v482_v20 = vadd.s32 1, %v4133_v63  ;;  %v1313_v52 = vsel %vm1312_vm5, 1, %v7615_v0  ;;  %v1333_v33 = vadd.s32 %v1331_v26, %v1325_v25  ;;  %v1335_v40 = vsel %vm1334_vm4, 1, %v7615_v0 }
  0xbc   :  { %vm1195_vm6 = vcmp.lt.s32.totalorder %v4501_v30, 0  ;;  %v1196_v29 = vsub.s32 0, %v4501_v30  ;;  %v1305_v27 = vshrl.u32 %v1301_v58, 16  ;;  %v1315_v44 = vadd.s32 %v1313_v52, %v1311_v28 }
  0xbd   :  { %v1286_v32 = vsel %vm1280_vm15, %v1283_v45, %v1285_v51  ;;  %v1307_v57 = vshrl.u32 %v1302_v62, 16  ;;  %v1327_v1 = vshrl.u32 %v1323_v49, 16  ;;  %v1337_v4 = vadd.s32 %v1335_v40, %v1333_v33 }
  0xbe   :  { %v1197_v9 = vsel %vm1195_vm6, %v1196_v29, %v4501_v30  ;;  %v1216_v63 = vsub.s32 4, %v1192_v47  ;;  %v1316_v2 = vadd.s32 %v1315_v44, %v1305_v27  ;;  %v7601_v61 = vand.u32 2147483647, %v4341_v55 }
  0xbf   :  { %v4515_v16 = vadd.s32 1, %v4400_v12  ;;  %v1198_v17 = vclz %v1197_v9  ;;  %v1329_v19 = vshrl.u32 %v1324_v50, 16  ;;  %v1338_v21 = vadd.s32 %v1337_v4, %v1327_v1 }
  0xc0   :  { %vm483_vm7 = vcmp.gt.s32.totalorder %v482_v20, 0  ;;  %v4517_v58 = vadd.s32 4294967169, %v631_v54  ;;  %vm4521_vm8 = vcmp.le.f32.partialorder %v1092_v53, 0.7853982  ;;  %v4525_v49 = vadd.s32 %v1316_v2, %v1307_v57 }
  0xc1   :  { %v4527_v62 = vadd.s32 %v1332_v35, %v1328_v18  ;;  %v1186_v12 = vadd.s32 %v4449_v60, %v4460_v10  ;;  %v4146_v45 = vadd.s32 4294967294, %v1198_v17  ;;  %v1339_v48 = vadd.s32 %v1338_v21, %v1329_v19 }
  0xc2   :  { %v1340_v50 = vmul.u32 %v4390_v5, %v1286_v32  ;;  %v1217_v54 = vsel %vm1094_vm3, %v1216_v63, %v1192_v47  ;;  %v789_v53 = vand.u32 8388607, %v7601_v61  ;;  %v800_v18 = vshrl.u32 %v7611_v31, %v4483_v37 }
  0xc3   :  { %vm1342_vm9 = vc.u32 %v4525_v49, %v4527_v62  ;;  %vm4147_vm10 = vcmp.lt.s32.totalorder %v4146_v45, 0  ;;  %v1343_v35 = vadd.s32 1, %v1339_v48  ;;  %v799_v60 = vshll.u32 %v7613_v34, %v4394_v7 }
  0xc4   :  { %v803_v5 = vshrl.u32 %v7609_v39, %v4483_v37  ;;  %v1201_v10 = vsel %vm4147_vm10, 0, %v4146_v45  ;;  %v802_v47 = vshll.u32 %v7611_v31, %v4394_v7  ;;  %v805_v3 = vshll.u32 %v7609_v39, %v4394_v7 }
  0xc5   :  { %v806_v25 = vshrl.u32 %v7606_v41, %v4483_v37  ;;  %v1202_v26 = vsub.s32 32, %v1201_v10  ;;  %v1206_v51 = vsub.s32 4294967266, %v1201_v10  ;;  %v1344_v28 = vsel %vm1342_vm9, %v1343_v35, %v1339_v48 }
  0xc6   :  { %v4550_v52 = vor.u32 %v800_v18, %v799_v60  ;;  %v1203_v33 = vshll.u32 %v4501_v30, %v1201_v10  ;;  %v1345_v40 = vadd.s32 %v1344_v28, %v1340_v50  ;;  %v808_v29 = vshll.u32 %v7606_v41, %v4394_v7 }
  0xc7   :  { %v809_v27 = vshrl.u32 %v7604_v43, %v4483_v37  ;;  %v1204_v44 = vshrl.u32 %v1186_v12, %v1202_v26  ;;  %v1207_v32 = vadd.s32 127, %v1206_v51  ;;  %v804_v57 = vor.u32 %v803_v5, %v802_v47 }
  0xc8   :  { %v812_v1 = vshrl.u32 %v7602_v59, %v4483_v37  ;;  %v1346_v4 = vadd.s32 536870912, %v1345_v40  ;;  %v807_v9 = vor.u32 %v806_v25, %v805_v3  ;;  %v811_v2 = vshll.u32 %v7604_v43, %v4394_v7 }
  0xc9   :  { %v810_v63 = vor.u32 %v809_v27, %v808_v29  ;;  %v4562_v30 = vsel %vm483_vm7, %v482_v20, 0  ;;  %v1205_v17 = vor.u32 %v1204_v44, %v1203_v33  ;;  %v1208_v19 = vshll.u32 %v1207_v32, 23 }
  0xca   :  { %v1219_v21 = vsel %vm4521_vm8, 0, %v1217_v54  ;;  %v4566_v12 = vshrl.u32 %v1346_v4, 30  ;;  %v790_v45 = vor.u32 8388608, %v789_v53  ;;  %v813_v48 = vor.u32 %v812_v1, %v811_v2 }
  0xcb   :  { %vm817_vm11 = vcmp.lt.s32.totalorder %v4392_v6, 4  ;;  %v1209_v50 = vor.u32 4788187, %v1208_v19  ;;  %vm814_vm12 = vcmp.lt.s32.totalorder %v4392_v6, 1  ;;  %vm816_vm13 = vcmp.lt.s32.totalorder %v4392_v6, 3 }
  0xcc   :  { %v823_v7 = vsel %vm817_vm11, %v810_v63, 920167782  ;;  %v4574_v20 = vand.u32 31, %v4562_v30  ;;  %v1348_v18 = vshll.u32 %v4566_v12, 30  ;;  %v822_v54 = vsel %vm814_vm12, %v4550_v52, %v804_v57 }
  0xcd   :  { %v824_v53 = vsel %vm816_vm13, %v807_v9, %v823_v7  ;;  %v1210_v35 = vand.u32 2147483647, %v1209_v50  ;;  %v1212_v60 = vcvt.s32.f32 %v1205_v17  ;;  %v1236_v5 = vadd.s32 3, %v1219_v21 }
  0xce   :  { %v826_v10 = vsel %vm814_vm12, %v804_v57, %v807_v9  ;;  %v4584_v47 = vsub.s32 %v1345_v40, %v1348_v18  ;;  %vm815_vm14 = vcmp.lt.s32.totalorder %v4392_v6, 2  ;;  %v827_v3 = vsel %vm817_vm11, %v813_v48, 1326507024 }
  0xcf   :  { %v4589_v25 = vshll.u32 %v790_v45, 8  ;;  %v4592_v26 = vadd.s32 1, %v4403_v24  ;;  %v1213_v51 = vmul.f32 %v1212_v60, %v1210_v35  ;;  %v4596_v28 = vsel %vm815_vm14, %v822_v54, %v824_v53 }
  0xd0   :  { %v828_v33 = vsel %vm816_vm13, %v810_v63, %v827_v3  ;;  %v4601_v40 = vadd.s32 1, %v4517_v58  ;;  %vm1350_vm15 = vcmp.lt.s32.totalorder %v4584_v47, 0  ;;  %v1351_v29 = vsub.s32 0, %v4584_v47 }
  0xd1   :  { %v829_v27 = vsel %vm815_vm14, %v826_v10, %v828_v33  ;;  %v4608_v24 = vsub.s32 32, %v4574_v20  ;;  %v1214_v44 = vxor.u32 2147483648, %v1213_v51  ;;  %v4610_v32 = vand.u32 3, %v1236_v5 }
  0xd2   :  { %v833_v1 = vand.u32 65535, %v829_v27  ;;  %v1352_v4 = vsel %vm1350_vm15, %v1351_v29, %v4584_v47  ;;  %v832_v63 = vshrl.u32 %v4589_v25, 16  ;;  %v834_v58 = vshrl.u32 %v829_v27, 16 }
  0xd3   :  { %v856_v2 = vshrl.u32 %v4596_v28, 16  ;;  %v1215_v17 = vsel %vm1094_vm3, %v1214_v44, %v1213_v51  ;;  %v1353_v19 = vclz %v1352_v4  ;;  %v819_v21 = vsel %vm817_vm11, %v807_v9, 2102212464 }
  0xd4   :  { %v831_v45 = vand.u32 65535, %v4589_v25  ;;  %v4623_v48 = vsel %vm4521_vm8, %v4334_v36, %v1215_v17  ;;  %v1341_v50 = vadd.s32 %v4527_v62, %v4525_v49  ;;  %v798_v7 = vshrl.u32 %v7613_v34, %v4483_v37 }
  0xd5   :  { %v4629_v18 = vmul.u32 %v833_v1, %v832_v63  ;;  %v1220_v54 = vmul.f32 %v4623_v48, %v4623_v48  ;;  %v4149_v53 = vadd.s32 4294967294, %v1353_v19  ;;  %v855_v35 = vand.u32 65535, %v4596_v28 }
  0xd6   :  { %v836_v9 = vmul.u32 %v834_v58, %v831_v45  ;;  %v1371_v60 = vsub.s32 4, %v4566_v12  ;;  %v4638_v46 = vsel %vm814_vm12, %v798_v7, %v4550_v52  ;;  %v4642_v49 = vsel %vm816_vm13, %v804_v57, %v819_v21 }
  0xd7   :  { %v4644_v37 = vmul.u32 %v856_v2, %v831_v45  ;;  %v1221_v62 = vmul.f32 -0.001358992, %v1220_v54  ;;  %v1228_v5 = vmul.f32 -0.00019511016, %v1220_v54  ;;  %vm4150_vm0 = vcmp.lt.s32.totalorder %v4149_v53, 0 }
  0xd8   :  { %v839_v10 = vshll.u32 %v836_v9, 16  ;;  %v1356_v3 = vsel %vm4150_vm0, 0, %v4149_v53  ;;  %v835_v51 = vmul.u32 %v833_v1, %v831_v45  ;;  %v838_v28 = vmul.u32 %v834_v58, %v832_v63 }
  0xd9   :  { %v841_v33 = vshll.u32 %v4629_v18, 16  ;;  %v1222_v29 = vadd.f32 0.041655596, %v1221_v62  ;;  %v1229_v27 = vadd.f32 0.008332121, %v1228_v5  ;;  %vm1249_vm1 = vcmp.lt.s32.totalorder %v4336_v38, 0 }
  0xda   :  { %v1357_v52 = vsub.s32 32, %v1356_v3  ;;  %v4648_v44 = vmul.u32 %v855_v35, %v832_v63  ;;  %v1361_v57 = vsub.s32 4294967266, %v1356_v3  ;;  %vm843_vm2 = vc.u32 %v835_v51, %v839_v10 }
  0xdb   :  { %v845_v4 = vadd.s32 %v839_v10, %v835_v51  ;;  %v861_v17 = vshll.u32 %v4644_v37, 16  ;;  %v1223_v19 = vmul.f32 %v1222_v29, %v1220_v54  ;;  %v1230_v21 = vmul.f32 %v1229_v27, %v1220_v54 }
  0xdc   :  { %v1359_v7 = vshrl.u32 %v1341_v50, %v1357_v52  ;;  %v844_v1 = vsel %vm843_vm2, 1, %v7615_v0  ;;  %vm4654_vm3 = vcmp.le.f32.partialorder %v1247_v13, 0.7853982  ;;  %v1358_v53 = vshll.u32 %v4584_v47, %v1356_v3 }
  0xdd   :  { %v1362_v62 = vadd.s32 127, %v1361_v57  ;;  %v846_v5 = vadd.s32 %v844_v1, %v838_v28  ;;  %vm847_vm4 = vc.u32 %v845_v4, %v841_v33  ;;  %v1224_v61 = vadd.f32 -0.4999988, %v1223_v19 }
  0xde   :  { %v1231_v10 = vadd.f32 -0.16666654, %v1230_v21  ;;  %v848_v51 = vsel %vm847_vm4, 1, %v7615_v0  ;;  %v857_v29 = vmul.u32 %v855_v35, %v831_v45  ;;  %vm1239_vm5 = vcmp.eq.s32.totalorder %v4610_v32, 0 }
  0xdf   :  { %v1360_v50 = vor.u32 %v1359_v7, %v1358_v53  ;;  %v1363_v27 = vshll.u32 %v1362_v62, 23  ;;  %v840_v52 = vshrl.u32 %v836_v9, 16  ;;  %v850_v59 = vadd.s32 %v848_v51, %v846_v5 }
  0xe0   :  { %v1225_v13 = vmul.f32 %v1224_v61, %v1220_v54  ;;  %v1232_v43 = vmul.f32 %v1231_v10, %v1220_v54  ;;  %v860_v41 = vmul.u32 %v856_v2, %v832_v63  ;;  %vm865_vm6 = vc.u32 %v857_v29, %v861_v17 }
  0xe1   :  { %vm1235_vm7 = vweird.f32 %v4334_v36  ;;  %v1364_v47 = vor.u32 4788187, %v1363_v27  ;;  %v863_v3 = vshll.u32 %v4648_v44, 16  ;;  %v866_v28 = vsel %vm865_vm6, 1, %v7615_v0 }
  0xe2   :  { %v867_v33 = vadd.s32 %v861_v17, %v857_v29  ;;  %v1226_v57 = vadd.f32 1.0, %v1225_v13  ;;  %v1233_v45 = vadd.f32 1.0, %v1232_v43  ;;  %v851_v35 = vadd.s32 %v850_v59, %v840_v52 }
  0xe3   :  { %v868_v4 = vadd.s32 %v866_v28, %v860_v41  ;;  %v1365_v19 = vand.u32 2147483647, %v1364_v47  ;;  %v1367_v21 = vcvt.s32.f32 %v1360_v50  ;;  %v1372_v61 = vsel %vm1249_vm1, %v1371_v60, %v4566_v12 }
  0xe4   :  { %vm869_vm8 = vc.u32 %v867_v33, %v863_v3  ;;  %v1234_v63 = vmul.f32 %v1233_v45, %v4623_v48  ;;  %v1243_v2 = vxor.u32 2147483648, %v1226_v57  ;;  %v842_v54 = vshrl.u32 %v4629_v18, 16 }
  0xe5   :  { %v870_v9 = vsel %vm869_vm8, 1, %v7615_v0  ;;  %vm1242_vm9 = vcmp.eq.s32.totalorder %v4610_v32, 2  ;;  %v1368_v17 = vmul.f32 %v1367_v21, %v1365_v19  ;;  %v862_v43 = vshrl.u32 %v4644_v37, 16 }
  0xe6   :  { %v872_v41 = vadd.s32 %v870_v9, %v868_v4  ;;  %v1240_v59 = vxor.u32 2147483648, %v1234_v63  ;;  %v1374_v7 = vsel %vm4654_vm3, 0, %v1372_v61  ;;  %v821_v12 = vsel %vm815_vm14, %v4638_v46, %v4642_v49 }
  0xe7   :  { %v4678_v48 = vadd.s32 %v851_v35, %v842_v54  ;;  %v1369_v18 = vxor.u32 2147483648, %v1368_v17  ;;  %v864_v60 = vshrl.u32 %v4648_v44, 16  ;;  %v937_v53 = vand.u32 2147483647, %v4343_v56 }
  0xe8   :  { %v873_v1 = vadd.s32 %v872_v41, %v862_v43  ;;  %vm1238_vm10 = vcmp.lt.s32.totalorder %v4610_v32, 2  ;;  %v1241_v37 = vsel %vm1239_vm5, %v1226_v57, %v1240_v59  ;;  %v1244_v62 = vsel %vm1242_vm9, %v1243_v2, %v1234_v63 }
  0xe9   :  { %v4685_v5 = vadd.s32 %v867_v33, %v863_v3  ;;  %v1245_v10 = vsel %vm1238_vm10, %v1241_v37, %v1244_v62  ;;  %v1370_v6 = vsel %vm1249_vm1, %v1369_v18, %v1368_v17  ;;  %v1391_v46 = vadd.s32 3, %v1374_v7 }
  0xea   :  { %v874_v49 = vadd.s32 %v873_v1, %v864_v60  ;;  %v1246_v44 = vsel %vm1235_vm7, nan, %v1245_v10  ;;  %v4694_v51 = vsel %vm4654_vm3, %v4336_v38, %v1370_v6  ;;  %v875_v32 = vmul.u32 %v4589_v25, %v821_v12 }
  0xeb   :  { %vm877_vm11 = vc.u32 %v4678_v48, %v4685_v5  ;;  %1447 = vmatpush.msra.mxu0 %v1246_v44  ;;  %v1375_v29 = vmul.f32 %v4694_v51, %v4694_v51  ;;  %v944_v27 = vand.u32 8388607, %v937_v53  ;;  %v954_v36 = vshll.u32 %v7613_v34, %v4398_v11 }
  0xec   :  { %v878_v50 = vadd.s32 1, %v874_v49  ;;  %v955_v58 = vshrl.u32 %v7611_v31, %v4486_v42  ;;  %v958_v25 = vshrl.u32 %v7609_v39, %v4486_v42  ;;  %v7679_v52 = vmov 2102212464  }
  0xed   :  { %v961_v13 = vshrl.u32 %v7679_v52, %v4486_v42  ;;  %v7680_v47 = vmov 920167782   ;;  %v1376_v28 = vmul.f32 -0.001358992, %v1375_v29  ;;  %v1383_v33 = vmul.f32 -0.00019511016, %v1375_v29 }
  0xee   :  { %v964_v3 = vshrl.u32 %v7680_v47, %v4486_v42  ;;  %v879_v57 = vsel %vm877_vm11, %v878_v50, %v874_v49  ;;  %v963_v45 = vshll.u32 %v7679_v52, %v4398_v11  ;;  %v957_v4 = vshll.u32 %v7611_v31, %v4398_v11 }
  0xef   :  { %v880_v35 = vadd.s32 %v879_v57, %v875_v32  ;;  %v960_v19 = vshll.u32 %v7609_v39, %v4398_v11  ;;  %v7681_v21 = vmov 1326507024   ;;  %v1377_v63 = vadd.f32 0.041655596, %v1376_v28 }
  0xf0   :  { %v967_v61 = vshrl.u32 %v7681_v21, %v4486_v42  ;;  %v1384_v2 = vadd.f32 0.008332121, %v1383_v33  ;;  %v965_v54 = vor.u32 %v964_v3, %v963_v45  ;;  %v966_v9 = vshll.u32 %v7680_v47, %v4398_v11 }
  0xf1   :  { %v1392_v17 = vand.u32 3, %v1391_v46  ;;  %v881_v43 = vadd.s32 536870912, %v880_v35  ;;  %v959_v41 = vor.u32 %v958_v25, %v957_v4  ;;  %v962_v59 = vor.u32 %v961_v13, %v960_v19 }
  0xf2   :  { %v1378_v7 = vmul.f32 %v1377_v63, %v1375_v29  ;;  %v1385_v12 = vmul.f32 %v1384_v2, %v1375_v29  ;;  %v956_v18 = vor.u32 %v955_v58, %v954_v36  ;;  %v968_v60 = vor.u32 %v967_v61, %v966_v9 }
  0xf3   :  { %v882_v1 = vshrl.u32 %v881_v43, 30  ;;  %v945_v37 = vor.u32 8388608, %v944_v27  ;;  %vm969_vm12 = vcmp.lt.s32.totalorder %v4396_v8, 1  ;;  %vm972_vm13 = vcmp.lt.s32.totalorder %v4396_v8, 4 }
  0xf4   :  { %v1379_v62 = vadd.f32 -0.4999988, %v1378_v7  ;;  %v1386_v10 = vadd.f32 -0.16666654, %v1385_v12  ;;  %v978_v6 = vsel %vm972_vm13, %v965_v54, 920167782  ;;  %v981_v46 = vsel %vm969_vm12, %v959_v41, %v962_v59 }
  0xf5   :  { %vm1394_vm14 = vcmp.eq.s32.totalorder %v1392_v17, 0  ;;  %vm1397_vm15 = vcmp.eq.s32.totalorder %v1392_v17, 2  ;;  %v883_v11 = vshll.u32 %v882_v1, 30  ;;  %vm970_vm0 = vcmp.lt.s32.totalorder %v4396_v8, 2 }
  0xf6   :  { %vm971_vm1 = vcmp.lt.s32.totalorder %v4396_v8, 3  ;;  %v1380_v49 = vmul.f32 %v1379_v62, %v1375_v29  ;;  %v1387_v44 = vmul.f32 %v1386_v10, %v1375_v29  ;;  %vm1393_vm2 = vcmp.lt.s32.totalorder %v1392_v17, 2 }
  0xf7   :  { %vm784_vm3 = vcmp.lt.s32.totalorder %v4341_v55, 0  ;;  %v977_v32 = vsel %vm969_vm12, %v956_v18, %v959_v41  ;;  %v982_v50 = vsel %vm972_vm13, %v968_v60, 1326507024  ;;  %vm1390_vm4 = vweird.f32 %v4336_v38 }
  0xf8   :  { %v4737_v27 = vsub.s32 %v880_v35, %v883_v11  ;;  %v979_v36 = vsel %vm971_vm1, %v962_v59, %v978_v6  ;;  %v983_v58 = vsel %vm971_vm1, %v965_v54, %v982_v50  ;;  %v4743_v29 = vshll.u32 %v945_v37, 8 }
  0xf9   :  { %v1381_v25 = vadd.f32 1.0, %v1380_v49  ;;  %v1388_v13 = vadd.f32 1.0, %v1387_v44  ;;  %v876_v3 = vadd.s32 %v4685_v5, %v4678_v48  ;;  %v984_v28 = vsel %vm970_vm0, %v981_v46, %v983_v58 }
  0xfa   :  { %vm885_vm5 = vcmp.lt.s32.totalorder %v4737_v27, 0  ;;  %v886_v33 = vsub.s32 0, %v4737_v27  ;;  %v953_v57 = vshrl.u32 %v7613_v34, %v4486_v42  ;;  %v974_v45 = vsel %vm972_vm13, %v962_v59, 2102212464 }
  0xfb   :  { %v1389_v35 = vmul.f32 %v1388_v13, %v4694_v51  ;;  %v1398_v4 = vxor.u32 2147483648, %v1381_v25  ;;  %v980_v19 = vsel %vm970_vm0, %v977_v32, %v979_v36  ;;  %v988_v48 = vand.u32 65535, %v984_v28 }
  0xfc   :  { %v887_v5 = vsel %vm885_vm5, %v886_v33, %v4737_v27  ;;  %v906_v61 = vsub.s32 4, %v882_v1  ;;  %v986_v63 = vand.u32 65535, %v4743_v29  ;;  %v989_v2 = vshrl.u32 %v984_v28, 16 }
  0xfd   :  { %v1395_v54 = vxor.u32 2147483648, %v1389_v35  ;;  %v888_v9 = vclz %v887_v5  ;;  %v973_v42 = vsel %vm969_vm12, %v953_v57, %v956_v18  ;;  %v987_v43 = vshrl.u32 %v4743_v29, 16 }
  0xfe   :  { %v975_v51 = vsel %vm971_vm1, %v959_v41, %v974_v45  ;;  %v991_v59 = vmul.u32 %v989_v2, %v986_v63  ;;  %v1010_v7 = vand.u32 65535, %v980_v19  ;;  %v1011_v12 = vshrl.u32 %v980_v19, 16 }
  0xff   :  { %v1396_v60 = vsel %vm1394_vm14, %v1381_v25, %v1395_v54  ;;  %v1399_v37 = vsel %vm1397_vm15, %v1398_v4, %v1389_v35  ;;  %v4140_v62 = vadd.s32 4294967294, %v888_v9  ;;  %v992_v10 = vmul.u32 %v988_v48, %v987_v43 }
 0x100   :  { %v1400_v6 = vsel %vm1393_vm2, %v1396_v60, %v1399_v37  ;;  %v907_v11 = vsel %vm784_vm3, %v906_v61, %v882_v1  ;;  %v990_v18 = vmul.u32 %v988_v48, %v986_v63  ;;  %v994_v46 = vshll.u32 %v991_v59, 16 }
 0x101   :  { %vm173_vm6 = vcmp.gt.s32.totalorder %v4515_v16, 0  ;;  %vm638_vm7 = vcmp.gt.s32.totalorder %v4601_v40, 0  ;;  %v1401_v41 = vsel %vm1390_vm4, nan, %v1400_v6  ;;  %vm4141_vm8 = vcmp.lt.s32.totalorder %v4140_v62, 0 }
 0x102   :  { %v993_v49 = vmul.u32 %v989_v2, %v987_v43  ;;  %v996_v44 = vshll.u32 %v992_v10, 16  ;;  %1476 = vmatpush.msra.mxu1 %v1401_v41  ;;  %v891_v32 = vsel %vm4141_vm8, 0, %v4140_v62  ;;  %vm998_vm9 = vc.u32 %v990_v18, %v994_v46 }
 0x103   :  { %v1000_v17 = vadd.s32 %v994_v46, %v990_v18  ;;  %v1013_v50 = vmul.u32 %v1011_v12, %v986_v63  ;;  %v892_v36 = vsub.s32 32, %v891_v32  ;;  %v896_v58 = vsub.s32 4294967266, %v891_v32 }
 0x104   :  { %v999_v1 = vsel %vm998_vm9, 1, %v7615_v0  ;;  %v1012_v25 = vmul.u32 %v1010_v7, %v986_v63  ;;  %v893_v13 = vshll.u32 %v4737_v27, %v891_v32  ;;  %v1014_v33 = vmul.u32 %v1010_v7, %v987_v43 }
 0x105   :  { %v1001_v28 = vadd.s32 %v999_v1, %v993_v49  ;;  %vm1002_vm10 = vc.u32 %v1000_v17, %v996_v44  ;;  %v894_v38 = vshrl.u32 %v876_v3, %v892_v36  ;;  %v897_v57 = vadd.s32 127, %v896_v58 }
 0x106   :  { %v1003_v45 = vsel %vm1002_vm10, 1, %v7615_v0  ;;  %v1016_v35 = vshll.u32 %v1013_v50, 16  ;;  %v995_v4 = vshrl.u32 %v991_v59, 16  ;;  %v1015_v48 = vmul.u32 %v1011_v12, %v987_v43 }
 0x107   :  { %v1005_v19 = vadd.s32 %v1003_v45, %v1001_v28  ;;  %v1018_v5 = vshll.u32 %v1014_v33, 16  ;;  %v895_v61 = vor.u32 %v894_v38, %v893_v13  ;;  %v898_v2 = vshll.u32 %v897_v57, 23 }
 0x108   :  { %vm1020_vm11 = vc.u32 %v1012_v25, %v1016_v35  ;;  %v1022_v54 = vadd.s32 %v1016_v35, %v1012_v25  ;;  %v7682_v63 = vand.u32 2147483647, %v4341_v55  ;;  %v997_v9 = vshrl.u32 %v992_v10, 16 }
 0x109   :  { %v1006_v3 = vadd.s32 %v1005_v19, %v995_v4  ;;  %v1021_v7 = vsel %vm1020_vm11, 1, %v7615_v0  ;;  %v899_v60 = vor.u32 4788187, %v898_v2  ;;  %v976_v59 = vsel %vm970_vm0, %v973_v42, %v975_v51 }
 0x10a   :  { %vm4779_vm12 = vcmp.le.f32.partialorder %v7682_v63, 0.7853982  ;;  %v1023_v43 = vadd.s32 %v1021_v7, %v1015_v48  ;;  %vm1024_vm13 = vc.u32 %v1022_v54, %v1018_v5  ;;  %v472_v6 = vand.u32 2147483647, %v4354_v22 }
 0x10b   :  { %v909_v12 = vsel %vm4779_vm12, 0, %v907_v11  ;;  %v4788_v37 = vadd.s32 %v1006_v3, %v997_v9  ;;  %v1025_v62 = vsel %vm1024_vm13, 1, %v7615_v0  ;;  %v900_v18 = vand.u32 2147483647, %v899_v60 }
 0x10c   :  { %v902_v10 = vcvt.s32.f32 %v895_v61  ;;  %v1017_v46 = vshrl.u32 %v1013_v50, 16  ;;  %v1027_v41 = vadd.s32 %v1025_v62, %v1023_v43  ;;  %v4795_v8 = vsel %vm173_vm6, %v4515_v16, 0 }
 0x10d   :  { %v4798_v42 = vshrl.u32 %v4562_v30, 5  ;;  %v4803_v51 = vsel %vm638_vm7, %v4601_v40, 0  ;;  %v4805_v11 = vadd.s32 %v1022_v54, %v1018_v5  ;;  %v926_v44 = vadd.s32 3, %v909_v12 }
 0x10e   :  { %v903_v49 = vmul.f32 %v902_v10, %v900_v18  ;;  %v1019_v32 = vshrl.u32 %v1014_v33, 16  ;;  %v1028_v17 = vadd.s32 %v1027_v41, %v1017_v46  ;;  %v1030_v50 = vmul.u32 %v4743_v29, %v976_v59 }
 0x10f   :  { %vm1032_vm14 = vc.u32 %v4788_v37, %v4805_v11  ;;  %v479_v16 = vand.u32 8388607, %v472_v6  ;;  %v493_v30 = vshrl.u32 %v7609_v39, %v4608_v24  ;;  %v490_v58 = vshrl.u32 %v7611_v31, %v4608_v24 }
 0x110   :  { %v904_v36 = vxor.u32 2147483648, %v903_v49  ;;  %v1029_v40 = vadd.s32 %v1028_v17, %v1019_v32  ;;  %v496_v1 = vshrl.u32 %v7679_v52, %v4608_v24  ;;  %v492_v29 = vshll.u32 %v7611_v31, %v4574_v20 }
 0x111   :  { %v495_v25 = vshll.u32 %v7609_v39, %v4574_v20  ;;  %v498_v13 = vshll.u32 %v7679_v52, %v4574_v20  ;;  %v499_v28 = vshrl.u32 %v7680_v47, %v4608_v24  ;;  %v501_v57 = vshll.u32 %v7680_v47, %v4574_v20 }
 0x112   :  { %v905_v33 = vsel %vm784_vm3, %v904_v36, %v903_v49  ;;  %v1033_v38 = vadd.s32 1, %v1029_v40  ;;  %v502_v45 = vshrl.u32 %v7681_v21, %v4608_v24  ;;  %v489_v4 = vshll.u32 %v7613_v34, %v4574_v20 }
 0x113   :  { %v908_v35 = vsel %vm4779_vm12, %v4341_v55, %v905_v33  ;;  %v4837_v19 = vor.u32 %v493_v30, %v492_v29  ;;  %v4839_v48 = vor.u32 %v496_v1, %v495_v25  ;;  %v500_v2 = vor.u32 %v499_v28, %v498_v13 }
 0x114   :  { %v910_v5 = vmul.f32 %v908_v35, %v908_v35  ;;  %v1034_v61 = vsel %vm1032_vm14, %v1033_v38, %v1029_v40  ;;  %v503_v54 = vor.u32 %v502_v45, %v501_v57  ;;  %v4844_v63 = vand.u32 3, %v926_v44 }
 0x115   :  { %v1035_v9 = vadd.s32 %v1034_v61, %v1030_v50  ;;  %v480_v3 = vor.u32 8388608, %v479_v16  ;;  %v491_v27 = vor.u32 %v490_v58, %v489_v4  ;;  %vm504_vm15 = vcmp.lt.s32.totalorder %v4798_v42, 1 }
 0x116   :  { %v911_v7 = vmul.f32 -0.001358992, %v910_v5  ;;  %v918_v60 = vmul.f32 -0.00019511016, %v910_v5  ;;  %vm507_vm0 = vcmp.lt.s32.totalorder %v4798_v42, 4  ;;  %vm506_vm1 = vcmp.lt.s32.totalorder %v4798_v42, 3 }
 0x117   :  { %v1036_v20 = vadd.s32 536870912, %v1035_v9  ;;  %v516_v59 = vsel %vm504_vm15, %v4837_v19, %v4839_v48  ;;  %v517_v43 = vsel %vm507_vm0, %v503_v54, 1326507024  ;;  %v513_v18 = vsel %vm507_vm0, %v500_v2, 920167782 }
 0x118   :  { %v912_v12 = vadd.f32 0.041655596, %v911_v7  ;;  %v919_v62 = vadd.f32 0.008332121, %v918_v60  ;;  %vm505_vm2 = vcmp.lt.s32.totalorder %v4798_v42, 2  ;;  %v518_v46 = vsel %vm506_vm1, %v500_v2, %v517_v43 }
 0x119   :  { %v1037_v10 = vshrl.u32 %v1036_v20, 30  ;;  %v4860_v41 = vshll.u32 %v480_v3, 8  ;;  %v4863_v49 = vand.u32 31, %v4803_v51  ;;  %v519_v17 = vsel %vm505_vm2, %v516_v59, %v518_v46 }
 0x11a   :  { %v913_v44 = vmul.f32 %v912_v12, %v910_v5  ;;  %v920_v32 = vmul.f32 %v919_v62, %v910_v5  ;;  %vm939_vm3 = vcmp.lt.s32.totalorder %v4343_v56, 0  ;;  %v512_v16 = vsel %vm504_vm15, %v491_v27, %v4837_v19 }
 0x11b   :  { %v1038_v50 = vshll.u32 %v1037_v10, 30  ;;  %v514_v30 = vsel %vm506_vm1, %v4839_v48, %v513_v18  ;;  %v523_v58 = vand.u32 65535, %v519_v17  ;;  %v524_v1 = vshrl.u32 %v519_v17, 16 }
 0x11c   :  { %v914_v36 = vadd.f32 -0.4999988, %v913_v44  ;;  %v921_v40 = vadd.f32 -0.16666654, %v920_v32  ;;  %vm929_vm4 = vcmp.eq.s32.totalorder %v4844_v63, 0  ;;  %vm932_vm5 = vcmp.eq.s32.totalorder %v4844_v63, 2 }
 0x11d   :  { %v4876_v29 = vsub.s32 %v1035_v9, %v1038_v50  ;;  %v488_v25 = vshrl.u32 %v7613_v34, %v4608_v24  ;;  %v521_v13 = vand.u32 65535, %v4860_v41  ;;  %vm928_vm6 = vcmp.lt.s32.totalorder %v4844_v63, 2 }
 0x11e   :  { %v915_v28 = vmul.f32 %v914_v36, %v910_v5  ;;  %v922_v33 = vmul.f32 %v921_v40, %v910_v5  ;;  %v515_v38 = vsel %vm505_vm2, %v512_v16, %v514_v30  ;;  %v522_v57 = vshrl.u32 %v4860_v41, 16 }
 0x11f   :  { %vm925_vm7 = vweird.f32 %v4341_v55  ;;  %vm1040_vm8 = vcmp.lt.s32.totalorder %v4876_v29, 0  ;;  %v1041_v45 = vsub.s32 0, %v4876_v29  ;;  %v1061_v4 = vsub.s32 4, %v1037_v10 }
 0x120   :  { %v526_v61 = vmul.u32 %v524_v1, %v521_v13  ;;  %v916_v24 = vadd.f32 1.0, %v915_v28  ;;  %v923_v2 = vadd.f32 1.0, %v922_v33  ;;  %v1031_v5 = vadd.s32 %v4805_v11, %v4788_v37 }
 0x121   :  { %v527_v54 = vmul.u32 %v523_v58, %v522_v57  ;;  %v1042_v9 = vsel %vm1040_vm8, %v1041_v45, %v4876_v29  ;;  %v545_v7 = vand.u32 65535, %v515_v38  ;;  %v546_v60 = vshrl.u32 %v515_v38, 16 }
 0x122   :  { %v529_v3 = vshll.u32 %v526_v61, 16  ;;  %v924_v20 = vmul.f32 %v923_v2, %v908_v35  ;;  %v933_v59 = vxor.u32 2147483648, %v916_v24  ;;  %v1043_v43 = vclz %v1042_v9 }
 0x123   :  { %v525_v12 = vmul.u32 %v523_v58, %v521_v13  ;;  %v1062_v62 = vsel %vm939_vm3, %v1061_v4, %v1037_v10  ;;  %v508_v18 = vsel %vm504_vm15, %v488_v25, %v491_v27  ;;  %v509_v37 = vsel %vm507_vm0, %v4839_v48, 2102212464 }
 0x124   :  { %v528_v11 = vmul.u32 %v524_v1, %v522_v57  ;;  %v930_v46 = vxor.u32 2147483648, %v924_v20  ;;  %vm4900_vm9 = vcmp.le.f32.partialorder %v937_v53, 0.7853982  ;;  %v4143_v35 = vadd.s32 4294967294, %v1043_v43 }
 0x125   :  { %v531_v32 = vshll.u32 %v527_v54, 16  ;;  %vm533_vm10 = vc.u32 %v525_v12, %v529_v3  ;;  %v934_v10 = vsel %vm932_vm5, %v933_v59, %v924_v20  ;;  %v535_v17 = vadd.s32 %v529_v3, %v525_v12 }
 0x126   :  { %v534_v27 = vsel %vm533_vm10, 1, %v7615_v0  ;;  %v548_v50 = vmul.u32 %v546_v60, %v521_v13  ;;  %v931_v48 = vsel %vm929_vm4, %v916_v24, %v930_v46  ;;  %vm4144_vm11 = vcmp.lt.s32.totalorder %v4143_v35, 0 }
 0x127   :  { %v536_v16 = vadd.s32 %v534_v27, %v528_v11  ;;  %v549_v30 = vmul.u32 %v545_v7, %v522_v57  ;;  %v935_v53 = vsel %vm928_vm6, %v931_v48, %v934_v10  ;;  %v1046_v36 = vsel %vm4144_vm11, 0, %v4143_v35 }
 0x128   :  { %vm537_vm12 = vc.u32 %v535_v17, %v531_v32  ;;  %v551_v40 = vshll.u32 %v548_v50, 16  ;;  %v936_v58 = vsel %vm925_vm7, nan, %v935_v53  ;;  %v1047_v1 = vsub.s32 32, %v1046_v36 }
 0x129   :  { %v1051_v25 = vsub.s32 4294967266, %v1046_v36  ;;  %v547_v28 = vmul.u32 %v545_v7, %v521_v13  ;;  %1448 = vmatpush.msra.mxu0 %v936_v58  ;;  %v1048_v33 = vshll.u32 %v4876_v29, %v1046_v36  ;;  %v530_v38 = vshrl.u32 %v526_v61, 16 }
 0x12a   :  { %v538_v45 = vsel %vm537_vm12, 1, %v7615_v0  ;;  %v550_v4 = vmul.u32 %v546_v60, %v522_v57  ;;  %v1049_v24 = vshrl.u32 %v1031_v5, %v1047_v1  ;;  %v510_v9 = vsel %vm506_vm1, %v4837_v19, %v509_v37 }
 0x12b   :  { %v1052_v2 = vadd.s32 127, %v1051_v25  ;;  %v540_v63 = vadd.s32 %v538_v45, %v536_v16  ;;  %vm555_vm13 = vc.u32 %v547_v28, %v551_v40  ;;  %v553_v55 = vshll.u32 %v549_v30, 16 }
 0x12c   :  { %v556_v3 = vsel %vm555_vm13, 1, %v7615_v0  ;;  %v557_v20 = vadd.s32 %v551_v40, %v547_v28  ;;  %v1050_v13 = vor.u32 %v1049_v24, %v1048_v33  ;;  %v4920_v61 = vsub.s32 32, %v4863_v49 }
 0x12d   :  { %v1053_v7 = vshll.u32 %v1052_v2, 23  ;;  %v541_v59 = vadd.s32 %v540_v63, %v530_v38  ;;  %v558_v29 = vadd.s32 %v556_v3, %v550_v4  ;;  %v1064_v57 = vsel %vm4900_vm9, 0, %v1062_v62 }
 0x12e   :  { %v532_v5 = vshrl.u32 %v527_v54, 16  ;;  %vm559_vm14 = vc.u32 %v557_v20, %v553_v55  ;;  %v511_v19 = vsel %vm505_vm2, %v508_v18, %v510_v9  ;;  %v627_v12 = vand.u32 2147483647, %v4356_v23 }
 0x12f   :  { %v1054_v60 = vor.u32 4788187, %v1053_v7  ;;  %v560_v43 = vsel %vm559_vm14, 1, %v7615_v0  ;;  %v4929_v37 = vand.u32 31, %v4795_v8  ;;  %v552_v46 = vshrl.u32 %v548_v50, 16 }
 0x130   :  { %v4931_v11 = vadd.s32 %v541_v59, %v532_v5  ;;  %v562_v35 = vadd.s32 %v560_v43, %v558_v29  ;;  %vm328_vm15 = vcmp.gt.s32.totalorder %v4592_v26, 0  ;;  %v4935_v54 = vshrl.u32 %v4803_v51, 5 }
 0x131   :  { %v1055_v62 = vand.u32 2147483647, %v1054_v60  ;;  %v1057_v32 = vcvt.s32.f32 %v1050_v13  ;;  %v1081_v42 = vadd.s32 3, %v1064_v57  ;;  %v554_v18 = vshrl.u32 %v549_v30, 16 }
 0x132   :  { %v4937_v10 = vadd.s32 %v557_v20, %v553_v55  ;;  %v563_v27 = vadd.s32 %v562_v35, %v552_v46  ;;  %v565_v17 = vmul.u32 %v4860_v41, %v511_v19  ;;  %v634_v16 = vand.u32 8388607, %v627_v12 }
 0x133   :  { %v1058_v48 = vmul.f32 %v1057_v32, %v1055_v62  ;;  %v648_v50 = vshrl.u32 %v7609_v39, %v4920_v61  ;;  %v651_v51 = vshrl.u32 %v7679_v52, %v4920_v61  ;;  %v653_v30 = vshll.u32 %v7679_v52, %v4863_v49 }
 0x134   :  { %v564_v53 = vadd.s32 %v563_v27, %v554_v18  ;;  %vm567_vm0 = vc.u32 %v4931_v11, %v4937_v10  ;;  %v654_v41 = vshrl.u32 %v7680_v47, %v4920_v61  ;;  %v645_v40 = vshrl.u32 %v7611_v31, %v4920_v61 }
 0x135   :  { %v1059_v36 = vxor.u32 2147483648, %v1058_v48  ;;  %v647_v58 = vshll.u32 %v7611_v31, %v4863_v49  ;;  %v650_v1 = vshll.u32 %v7609_v39, %v4863_v49  ;;  %v656_v33 = vshll.u32 %v7680_v47, %v4863_v49 }
 0x136   :  { %v568_v25 = vadd.s32 1, %v564_v53  ;;  %v655_v28 = vor.u32 %v654_v41, %v653_v30  ;;  %v657_v38 = vshrl.u32 %v7681_v21, %v4920_v61  ;;  %v644_v4 = vshll.u32 %v7613_v34, %v4863_v49 }
 0x137   :  { %v1060_v45 = vsel %vm939_vm3, %v1059_v36, %v1058_v48  ;;  %v4966_v24 = vor.u32 %v648_v50, %v647_v58  ;;  %v4968_v2 = vor.u32 %v651_v51, %v650_v1  ;;  %v635_v55 = vor.u32 8388608, %v634_v16 }
 0x138   :  { %v4973_v63 = vsel %vm4900_vm9, %v4343_v56, %v1060_v45  ;;  %v569_v9 = vsel %vm567_vm0, %v568_v25, %v564_v53  ;;  %v658_v3 = vor.u32 %v657_v38, %v656_v33  ;;  %v4980_v49 = vor.u32 %v645_v40, %v644_v4 }
 0x139   :  { %v1065_v20 = vmul.f32 %v4973_v63, %v4973_v63  ;;  %v570_v13 = vadd.s32 %v569_v9, %v565_v17  ;;  %vm662_vm1 = vcmp.lt.s32.totalorder %v4935_v54, 4  ;;  %vm659_vm2 = vcmp.lt.s32.totalorder %v4935_v54, 1 }
 0x13a   :  { %vm661_vm3 = vcmp.lt.s32.totalorder %v4935_v54, 3  ;;  %v668_v44 = vsel %vm662_vm1, %v655_v28, 920167782  ;;  %v672_v7 = vsel %vm662_vm1, %v658_v3, 1326507024  ;;  %v671_v5 = vsel %vm659_vm2, %v4966_v24, %v4968_v2 }
 0x13b   :  { %v1066_v59 = vmul.f32 -0.001358992, %v1065_v20  ;;  %v1073_v29 = vmul.f32 -0.00019511016, %v1065_v20  ;;  %v571_v57 = vadd.s32 536870912, %v570_v13  ;;  %v4996_v60 = vsel %vm328_vm15, %v4592_v26, 0 }
 0x13c   :  { %v673_v19 = vsel %vm661_vm3, %v655_v28, %v672_v7  ;;  %v5000_v43 = vshll.u32 %v635_v55, 8  ;;  %vm660_vm4 = vcmp.lt.s32.totalorder %v4935_v54, 2  ;;  %v5005_v32 = vand.u32 3, %v1081_v42 }
 0x13d   :  { %v1067_v46 = vadd.f32 0.041655596, %v1066_v59  ;;  %v1074_v35 = vadd.f32 0.008332121, %v1073_v29  ;;  %v5002_v62 = vshrl.u32 %v571_v57, 30  ;;  %v667_v18 = vsel %vm659_vm2, %v4980_v49, %v4966_v24 }
 0x13e   :  { %v669_v26 = vsel %vm661_vm3, %v4968_v2, %v668_v44  ;;  %v674_v27 = vsel %vm660_vm4, %v671_v5, %v673_v19  ;;  %v5017_v17 = vsub.s32 32, %v4929_v37  ;;  %v676_v50 = vand.u32 65535, %v5000_v43 }
 0x13f   :  { %v1068_v48 = vmul.f32 %v1067_v46, %v1065_v20  ;;  %v1075_v16 = vmul.f32 %v1074_v35, %v1065_v20  ;;  %v573_v42 = vshll.u32 %v5002_v62, 30  ;;  %v5022_v51 = vshrl.u32 %v5000_v43, 16 }
 0x140   :  { %v678_v53 = vand.u32 65535, %v674_v27  ;;  %v679_v30 = vshrl.u32 %v674_v27, 16  ;;  %v670_v58 = vsel %vm660_vm4, %v667_v18, %v669_v26  ;;  %vm1084_vm5 = vcmp.eq.s32.totalorder %v5005_v32, 0 }
 0x141   :  { %v1069_v41 = vadd.f32 -0.4999988, %v1068_v48  ;;  %v1076_v36 = vadd.f32 -0.16666654, %v1075_v16  ;;  %v5024_v40 = vsub.s32 %v570_v13, %v573_v42  ;;  %vm1087_vm6 = vcmp.eq.s32.totalorder %v5005_v32, 2 }
 0x142   :  { %v643_v1 = vshrl.u32 %v7613_v34, %v4920_v61  ;;  %v681_v25 = vmul.u32 %v679_v30, %v676_v50  ;;  %v5033_v28 = vmul.u32 %v678_v53, %v5022_v51  ;;  %vm1083_vm7 = vcmp.lt.s32.totalorder %v5005_v32, 2 }
 0x143   :  { %v1070_v33 = vmul.f32 %v1069_v41, %v1065_v20  ;;  %v1077_v38 = vmul.f32 %v1076_v36, %v1065_v20  ;;  %vm575_vm8 = vcmp.lt.s32.totalorder %v5024_v40, 0  ;;  %v576_v45 = vsub.s32 0, %v5024_v40 }
 0x144   :  { %vm1080_vm9 = vweird.f32 %v4343_v56  ;;  %vm474_vm10 = vcmp.lt.s32.totalorder %v4354_v22, 0  ;;  %v566_v4 = vadd.s32 %v4937_v10, %v4931_v11  ;;  %v680_v61 = vmul.u32 %v678_v53, %v676_v50 }
 0x145   :  { %v684_v9 = vshll.u32 %v681_v25, 16  ;;  %v700_v55 = vand.u32 65535, %v670_v58  ;;  %v1071_v3 = vadd.f32 1.0, %v1070_v33  ;;  %v1078_v13 = vadd.f32 1.0, %v1077_v38 }
 0x146   :  { %v577_v20 = vsel %vm575_vm8, %v576_v45, %v5024_v40  ;;  %v701_v44 = vshrl.u32 %v670_v58, 16  ;;  %v683_v59 = vmul.u32 %v679_v30, %v5022_v51  ;;  %v686_v29 = vshll.u32 %v5033_v28, 16 }
 0x147   :  { %v578_v7 = vclz %v577_v20  ;;  %vm688_vm11 = vc.u32 %v680_v61, %v684_v9  ;;  %v1079_v57 = vmul.f32 %v1078_v13, %v4973_v63  ;;  %v1088_v5 = vxor.u32 2147483648, %v1071_v3 }
 0x148   :  { %v689_v19 = vsel %vm688_vm11, 1, %v7615_v0  ;;  %v690_v11 = vadd.s32 %v684_v9, %v680_v61  ;;  %vm5049_vm12 = vcmp.le.f32.partialorder %v472_v6, 0.7853982  ;;  %v596_v35 = vsub.s32 4, %v5002_v62 }
 0x149   :  { %v4134_v46 = vadd.s32 4294967294, %v578_v7  ;;  %v663_v18 = vsel %vm659_vm2, %v643_v1, %v4980_v49  ;;  %v664_v63 = vsel %vm662_vm1, %v4968_v2, 2102212464  ;;  %v1085_v26 = vxor.u32 2147483648, %v1079_v57 }
 0x14a   :  { %v685_v27 = vshrl.u32 %v681_v25, 16  ;;  %v691_v48 = vadd.s32 %v689_v19, %v683_v59  ;;  %vm692_vm13 = vc.u32 %v690_v11, %v686_v29  ;;  %v1089_v6 = vsel %vm1087_vm6, %v1088_v5, %v1079_v57 }
 0x14b   :  { %vm4135_vm14 = vcmp.lt.s32.totalorder %v4134_v46, 0  ;;  %v693_v16 = vsel %vm692_vm13, 1, %v7615_v0  ;;  %v703_v42 = vmul.u32 %v701_v44, %v676_v50  ;;  %v1086_v53 = vsel %vm1084_vm5, %v1071_v3, %v1085_v26 }
 0x14c   :  { %v581_v30 = vsel %vm4135_vm14, 0, %v4134_v46  ;;  %v695_v49 = vadd.s32 %v693_v16, %v691_v48  ;;  %v704_v41 = vmul.u32 %v700_v55, %v5022_v51  ;;  %v1090_v2 = vsel %vm1083_vm7, %v1086_v53, %v1089_v6 }
 0x14d   :  { %v582_v36 = vsub.s32 32, %v581_v30  ;;  %v586_v58 = vsub.s32 4294967266, %v581_v30  ;;  %v702_v1 = vmul.u32 %v700_v55, %v676_v50  ;;  %v1091_v25 = vsel %vm1080_vm9, nan, %v1090_v2 }
 0x14e   :  { %v597_v33 = vsel %vm474_vm10, %v596_v35, %v5002_v62  ;;  %v696_v38 = vadd.s32 %v695_v49, %v685_v27  ;;  %v706_v45 = vshll.u32 %v703_v42, 16  ;;  %1477 = vmatpush.msra.mxu1 %v1091_v25  ;;  %v583_v61 = vshll.u32 %v5024_v40, %v581_v30 }
 0x14f   :  { %v584_v9 = vshrl.u32 %v566_v4, %v582_v36  ;;  %v587_v3 = vadd.s32 127, %v586_v58  ;;  %v687_v32 = vshrl.u32 %v5033_v28, 16  ;;  %v705_v13 = vmul.u32 %v701_v44, %v5022_v51 }
 0x150   :  { %v708_v20 = vshll.u32 %v704_v41, 16  ;;  %vm710_vm15 = vc.u32 %v702_v1, %v706_v45  ;;  %v712_v50 = vadd.s32 %v706_v45, %v702_v1  ;;  %v665_v62 = vsel %vm661_vm3, %v4966_v24, %v664_v63 }
 0x151   :  { %v585_v56 = vor.u32 %v584_v9, %v583_v61  ;;  %v588_v55 = vshll.u32 %v587_v3, 23  ;;  %v711_v7 = vsel %vm710_vm15, 1, %v7615_v0  ;;  %v599_v40 = vsel %vm5049_vm12, 0, %v597_v33 }
 0x152   :  { %v5082_v4 = vadd.s32 %v696_v38, %v687_v32  ;;  %v713_v59 = vadd.s32 %v711_v7, %v705_v13  ;;  %vm714_vm0 = vc.u32 %v712_v50, %v708_v20  ;;  %v5085_v51 = vshrl.u32 %v4795_v8, 5 }
 0x153   :  { %v589_v28 = vor.u32 4788187, %v588_v55  ;;  %v715_v44 = vsel %vm714_vm0, 1, %v7615_v0  ;;  %v162_v29 = vand.u32 2147483647, %v4350_v14  ;;  %v5090_v57 = vand.u32 31, %v4996_v60 }
 0x154   :  { %v707_v24 = vshrl.u32 %v703_v42, 16  ;;  %v5092_v5 = vadd.s32 %v712_v50, %v708_v20  ;;  %v717_v19 = vadd.s32 %v715_v44, %v713_v59  ;;  %v592_v46 = vcvt.s32.f32 %v585_v56 }
 0x155   :  { %v590_v11 = vand.u32 2147483647, %v589_v28  ;;  %v616_v35 = vadd.s32 3, %v599_v40  ;;  %v666_v63 = vsel %vm660_vm4, %v663_v18, %v665_v62  ;;  %v709_v8 = vshrl.u32 %v704_v41, 16 }
 0x156   :  { %v718_v26 = vadd.s32 %v717_v19, %v707_v24  ;;  %vm722_vm1 = vc.u32 %v5082_v4, %v5092_v5  ;;  %v183_v27 = vshrl.u32 %v7609_v39, %v5017_v17  ;;  %v169_v6 = vand.u32 8388607, %v162_v29 }
 0x157   :  { %v593_v48 = vmul.f32 %v592_v46, %v590_v11  ;;  %v180_v16 = vshrl.u32 %v7611_v31, %v5017_v17  ;;  %v186_v42 = vshrl.u32 %v7679_v52, %v5017_v17  ;;  %v182_v18 = vshll.u32 %v7611_v31, %v4929_v37 }
 0x158   :  { %v719_v54 = vadd.s32 %v718_v26, %v709_v8  ;;  %v185_v53 = vshll.u32 %v7609_v39, %v4929_v37  ;;  %v189_v30 = vshrl.u32 %v7680_v47, %v5017_v17  ;;  %v179_v41 = vshll.u32 %v7613_v34, %v4929_v37 }
 0x159   :  { %v594_v49 = vxor.u32 2147483648, %v593_v48  ;;  %v191_v2 = vshll.u32 %v7680_v47, %v4929_v37  ;;  %v192_v36 = vshrl.u32 %v7681_v21, %v5017_v17  ;;  %v5118_v1 = vor.u32 %v183_v27, %v182_v18 }
 0x15a   :  { %v723_v58 = vadd.s32 1, %v719_v54  ;;  %v5120_v25 = vor.u32 %v186_v42, %v185_v53  ;;  %v188_v33 = vshll.u32 %v7679_v52, %v4929_v37  ;;  %v720_v45 = vmul.u32 %v5000_v43, %v666_v63 }
 0x15b   :  { %v595_v38 = vsel %vm474_vm10, %v594_v49, %v593_v48  ;;  %v170_v61 = vor.u32 8388608, %v169_v6  ;;  %v193_v9 = vor.u32 %v192_v36, %v191_v2  ;;  %v5133_v13 = vor.u32 %v180_v16, %v179_v41 }
 0x15c   :  { %v598_v3 = vsel %vm5049_vm12, %v4354_v22, %v595_v38  ;;  %v724_v32 = vsel %vm722_vm1, %v723_v58, %v719_v54  ;;  %v190_v20 = vor.u32 %v189_v30, %v188_v33  ;;  %vm194_vm2 = vcmp.lt.s32.totalorder %v5085_v51, 1 }
 0x15d   :  { %v600_v50 = vmul.f32 %v598_v3, %v598_v3  ;;  %v725_v37 = vadd.s32 %v724_v32, %v720_v45  ;;  %vm197_vm3 = vcmp.lt.s32.totalorder %v5085_v51, 4  ;;  %v5137_v43 = vand.u32 3, %v616_v35 }
 0x15e   :  { %vm195_vm4 = vcmp.lt.s32.totalorder %v5085_v51, 2  ;;  %v206_v10 = vsel %vm194_vm2, %v5118_v1, %v5120_v25  ;;  %v207_v56 = vsel %vm197_vm3, %v193_v9, 1326507024  ;;  %vm196_vm5 = vcmp.lt.s32.totalorder %v5085_v51, 3 }
 0x15f   :  { %v601_v55 = vmul.f32 -0.001358992, %v600_v50  ;;  %v608_v62 = vmul.f32 -0.00019511016, %v600_v50  ;;  %v726_v7 = vadd.s32 536870912, %v725_v37  ;;  %v202_v40 = vsel %vm194_vm2, %v5133_v13, %v5118_v1 }
 0x160   :  { %v203_v59 = vsel %vm197_vm3, %v190_v20, 920167782  ;;  %v208_v28 = vsel %vm196_vm5, %v190_v20, %v207_v56  ;;  %v5155_v44 = vshll.u32 %v170_v61, 8  ;;  %v5176_v18 = vsub.s32 32, %v5090_v57 }
 0x161   :  { %v602_v24 = vadd.f32 0.041655596, %v601_v55  ;;  %v609_v19 = vadd.f32 0.008332121, %v608_v62  ;;  %v5157_v11 = vshrl.u32 %v726_v7, 30  ;;  %v209_v46 = vsel %vm195_vm4, %v206_v10, %v208_v28 }
 0x162   :  { %v5162_v35 = vand.u32 65535, %v5155_v44  ;;  %v5165_v63 = vshrl.u32 %v5155_v44, 16  ;;  %v213_v8 = vand.u32 65535, %v209_v46  ;;  %v214_v26 = vshrl.u32 %v209_v46, 16 }
 0x163   :  { %v603_v27 = vmul.f32 %v602_v24, %v600_v50  ;;  %v610_v48 = vmul.f32 %v609_v19, %v600_v50  ;;  %v728_v6 = vshll.u32 %v5157_v11, 30  ;;  %v204_v16 = vsel %vm196_vm5, %v5120_v25, %v203_v59 }
 0x164   :  { %v216_v42 = vmul.u32 %v214_v26, %v5162_v35  ;;  %v5173_v54 = vmul.u32 %v213_v8, %v5165_v63  ;;  %v178_v41 = vshrl.u32 %v7613_v34, %v5017_v17  ;;  %v205_v2 = vsel %vm195_vm4, %v202_v40, %v204_v16 }
 0x165   :  { %v604_v53 = vadd.f32 -0.4999988, %v603_v27  ;;  %v611_v30 = vadd.f32 -0.16666654, %v610_v48  ;;  %v729_v49 = vsub.s32 %v725_v37, %v728_v6  ;;  %v215_v36 = vmul.u32 %v213_v8, %v5162_v35 }
 0x166   :  { %v219_v58 = vshll.u32 %v216_v42, 16  ;;  %vm618_vm6 = vcmp.lt.s32.totalorder %v5137_v43, 2  ;;  %vm615_vm8 = vweird.f32 %v4354_v22  ;;  %v218_v61 = vmul.u32 %v214_v26, %v5165_v63 }
 0x167   :  { %v605_v33 = vmul.f32 %v604_v53, %v600_v50  ;;  %v612_v38 = vmul.f32 %v611_v30, %v600_v50  ;;  %vm730_vm7 = vcmp.lt.s32.totalorder %v729_v49, 0  ;;  %v731_v45 = vsub.s32 0, %v729_v49 }
 0x168   :  { %v221_v9 = vshll.u32 %v5173_v54, 16  ;;  %vm223_vm9 = vc.u32 %v215_v36, %v219_v58  ;;  %v225_v17 = vadd.s32 %v219_v58, %v215_v36  ;;  %v199_v50 = vsel %vm197_vm3, %v5120_v25, 2102212464 }
 0x169   :  { %v606_v32 = vadd.f32 1.0, %v605_v33  ;;  %v613_v20 = vadd.f32 1.0, %v612_v38  ;;  %v732_v37 = vsel %vm730_vm7, %v731_v45, %v729_v49  ;;  %v224_v10 = vsel %vm223_vm9, 1, %v7615_v0 }
 0x16a   :  { %v733_v56 = vclz %v732_v37  ;;  %v226_v55 = vadd.s32 %v224_v10, %v218_v61  ;;  %vm227_vm10 = vc.u32 %v225_v17, %v221_v9  ;;  %vm629_vm11 = vcmp.lt.s32.totalorder %v4356_v23, 0 }
 0x16b   :  { %v614_v62 = vmul.f32 %v613_v20, %v598_v3  ;;  %v623_v7 = vxor.u32 2147483648, %v606_v32  ;;  %v228_v40 = vsel %vm227_vm10, 1, %v7615_v0  ;;  %v235_v59 = vand.u32 65535, %v205_v2 }
 0x16c   :  { %vm619_vm12 = vcmp.eq.s32.totalorder %v5137_v43, 0  ;;  %vm622_vm13 = vcmp.eq.s32.totalorder %v5137_v43, 2  ;;  %v721_v28 = vadd.s32 %v5092_v5, %v5082_v4  ;;  %v4137_v24 = vadd.s32 4294967294, %v733_v56 }
 0x16d   :  { %v620_v19 = vxor.u32 2147483648, %v614_v62  ;;  %v198_v25 = vsel %vm194_vm2, %v178_v41, %v5133_v13  ;;  %v230_v3 = vadd.s32 %v228_v40, %v226_v55  ;;  %v236_v46 = vshrl.u32 %v205_v2, 16 }
 0x16e   :  { %v624_v8 = vsel %vm622_vm13, %v623_v7, %v614_v62  ;;  %vm4138_vm14 = vcmp.lt.s32.totalorder %v4137_v24, 0  ;;  %v200_v26 = vsel %vm196_vm5, %v5118_v1, %v199_v50  ;;  %v220_v27 = vshrl.u32 %v216_v42, 16 }
 0x16f   :  { %v621_v48 = vsel %vm619_vm12, %v606_v32, %v620_v19  ;;  %v736_v6 = vsel %vm4138_vm14, 0, %v4137_v24  ;;  %v238_v16 = vmul.u32 %v236_v46, %v5162_v35  ;;  %v239_v4 = vmul.u32 %v235_v59, %v5165_v63 }
 0x170   :  { %v625_v5 = vsel %vm618_vm6, %v621_v48, %v624_v8  ;;  %v737_v53 = vsub.s32 32, %v736_v6  ;;  %v741_v13 = vsub.s32 4294967266, %v736_v6  ;;  %v751_v30 = vsub.s32 4, %v5157_v11 }
 0x171   :  { %v626_v41 = vsel %vm615_vm8, nan, %v625_v5  ;;  %v231_v2 = vadd.s32 %v230_v3, %v220_v27  ;;  %v237_v1 = vmul.u32 %v235_v59, %v5162_v35  ;;  %v241_v42 = vshll.u32 %v238_v16, 16 }
 0x172   :  { %1449 = vmatpush.msra.mxu0 %v626_v41  ;;  %v738_v36 = vshll.u32 %v729_v49, %v736_v6  ;;  %v739_v58 = vshrl.u32 %v721_v28, %v737_v53  ;;  %v742_v33 = vadd.s32 127, %v741_v13  ;;  %v222_v38 = vshrl.u32 %v5173_v54, 16 }
 0x173   :  { %v240_v43 = vmul.u32 %v236_v46, %v5165_v63  ;;  %v243_v45 = vshll.u32 %v239_v4, 16  ;;  %vm245_vm15 = vc.u32 %v237_v1, %v241_v42  ;;  %v247_v61 = vadd.s32 %v241_v42, %v237_v1 }
 0x174   :  { %v740_v9 = vor.u32 %v739_v58, %v738_v36  ;;  %v743_v17 = vshll.u32 %v742_v33, 23  ;;  %v752_v22 = vsel %vm629_vm11, %v751_v30, %v5157_v11  ;;  %v246_v35 = vsel %vm245_vm15, 1, %v7615_v0 }
 0x175   :  { %v5217_v32 = vadd.s32 %v231_v2, %v222_v38  ;;  %v248_v49 = vadd.s32 %v246_v35, %v240_v43  ;;  %vm249_vm0 = vc.u32 %v247_v61, %v243_v45  ;;  %v317_v20 = vand.u32 2147483647, %v4352_v15 }
 0x176   :  { %v5221_v54 = vshrl.u32 %v4996_v60, 5  ;;  %vm5225_vm1 = vcmp.le.f32.partialorder %v627_v12, 0.7853982  ;;  %v744_v37 = vor.u32 4788187, %v743_v17  ;;  %v250_v11 = vsel %vm249_vm0, 1, %v7615_v0 }
 0x177   :  { %v201_v10 = vsel %vm195_vm4, %v198_v25, %v200_v26  ;;  %v242_v56 = vshrl.u32 %v238_v16, 16  ;;  %v5232_v50 = vadd.s32 %v247_v61, %v243_v45  ;;  %v252_v55 = vadd.s32 %v250_v11, %v248_v49 }
 0x178   :  { %v745_v62 = vand.u32 2147483647, %v744_v37  ;;  %v747_v7 = vcvt.s32.f32 %v740_v9  ;;  %v754_v60 = vsel %vm5225_vm1, 0, %v752_v22  ;;  %v244_v40 = vshrl.u32 %v239_v4, 16 }
 0x179   :  { %v253_v12 = vadd.s32 %v252_v55, %v242_v56  ;;  %vm257_vm2 = vc.u32 %v5217_v32, %v5232_v50  ;;  %v324_v59 = vand.u32 8388607, %v317_v20  ;;  %v338_v51 = vshrl.u32 %v7609_v39, %v5176_v18 }
 0x17a   :  { %v748_v28 = vmul.f32 %v747_v7, %v745_v62  ;;  %v335_v24 = vshrl.u32 %v7611_v31, %v5176_v18  ;;  %v337_v19 = vshll.u32 %v7611_v31, %v5090_v57  ;;  %v341_v25 = vshrl.u32 %v7679_v52, %v5176_v18 }
 0x17b   :  { %v254_v3 = vadd.s32 %v253_v12, %v244_v40  ;;  %v340_v46 = vshll.u32 %v7609_v39, %v5090_v57  ;;  %v343_v8 = vshll.u32 %v7679_v52, %v5090_v57  ;;  %v344_v26 = vshrl.u32 %v7680_v47, %v5176_v18 }
 0x17c   :  { %v749_v27 = vxor.u32 2147483648, %v748_v28  ;;  %v334_v48 = vshll.u32 %v7613_v34, %v5090_v57  ;;  %v346_v6 = vshll.u32 %v7680_v47, %v5090_v57  ;;  %v347_v16 = vshrl.u32 %v7681_v21, %v5176_v18 }
 0x17d   :  { %v258_v4 = vadd.s32 1, %v254_v3  ;;  %v5260_v5 = vor.u32 %v338_v51, %v337_v19  ;;  %v5262_v53 = vor.u32 %v341_v25, %v340_v46  ;;  %v345_v13 = vor.u32 %v344_v26, %v343_v8 }
 0x17e   :  { %v750_v30 = vsel %vm629_vm11, %v749_v27, %v748_v28  ;;  %v255_v41 = vmul.u32 %v5155_v44, %v201_v10  ;;  %v325_v2 = vor.u32 8388608, %v324_v59  ;;  %v348_v1 = vor.u32 %v347_v16, %v346_v6 }
 0x17f   :  { %v753_v57 = vsel %vm5225_vm1, %v4356_v23, %v750_v30  ;;  %v259_v42 = vsel %vm257_vm2, %v258_v4, %v254_v3  ;;  %v5273_v36 = vor.u32 %v335_v24, %v334_v48  ;;  %vm352_vm3 = vcmp.lt.s32.totalorder %v5221_v54, 4 }
 0x180   :  { %v755_v58 = vmul.f32 %v753_v57, %v753_v57  ;;  %v260_v33 = vadd.s32 %v259_v42, %v255_v41  ;;  %vm349_vm4 = vcmp.lt.s32.totalorder %v5221_v54, 1  ;;  %v358_v44 = vsel %vm352_vm3, %v345_v13, 920167782 }
 0x181   :  { %v771_v38 = vadd.s32 3, %v754_v60  ;;  %vm350_vm5 = vcmp.lt.s32.totalorder %v5221_v54, 2  ;;  %v361_v43 = vsel %vm349_vm4, %v5260_v5, %v5262_v53  ;;  %v362_v45 = vsel %vm352_vm3, %v348_v1, 1326507024 }
 0x182   :  { %v756_v61 = vmul.f32 -0.001358992, %v755_v58  ;;  %v763_v9 = vmul.f32 -0.00019511016, %v755_v58  ;;  %v261_v17 = vadd.s32 536870912, %v260_v33  ;;  %vm351_vm6 = vcmp.lt.s32.totalorder %v5221_v54, 3 }
 0x183   :  { %v357_v22 = vsel %vm349_vm4, %v5273_v36, %v5260_v5  ;;  %v359_v35 = vsel %vm351_vm6, %v5262_v53, %v358_v44  ;;  %v363_v49 = vsel %vm351_vm6, %v345_v13, %v362_v45  ;;  %v5296_v63 = vshll.u32 %v325_v2, 8 }
 0x184   :  { %v757_v37 = vadd.f32 0.041655596, %v756_v61  ;;  %v764_v11 = vadd.f32 0.008332121, %v763_v9  ;;  %v5298_v10 = vshrl.u32 %v261_v17, 30  ;;  %v364_v56 = vsel %vm350_vm5, %v361_v43, %v363_v49 }
 0x185   :  { %v366_v55 = vand.u32 65535, %v5296_v63  ;;  %v367_v62 = vshrl.u32 %v5296_v63, 16  ;;  %v368_v7 = vand.u32 65535, %v364_v56  ;;  %v369_v60 = vshrl.u32 %v364_v56, 16 }
 0x186   :  { %v758_v40 = vmul.f32 %v757_v37, %v755_v58  ;;  %v765_v12 = vmul.f32 %v764_v11, %v755_v58  ;;  %v263_v59 = vshll.u32 %v5298_v10, 30  ;;  %v360_v3 = vsel %vm350_vm5, %v357_v22, %v359_v35 }
 0x187   :  { %v371_v51 = vmul.u32 %v369_v60, %v366_v55  ;;  %v5305_v28 = vmul.u32 %v368_v7, %v367_v62  ;;  %v772_v46 = vand.u32 3, %v771_v38  ;;  %v370_v8 = vmul.u32 %v368_v7, %v366_v55 }
 0x188   :  { %v759_v24 = vadd.f32 -0.4999988, %v758_v40  ;;  %v766_v19 = vadd.f32 -0.16666654, %v765_v12  ;;  %v264_v25 = vsub.s32 %v260_v33, %v263_v59  ;;  %v391_v13 = vshrl.u32 %v360_v3, 16 }
 0x189   :  { %v374_v26 = vshll.u32 %v371_v51, 16  ;;  %v376_v16 = vshll.u32 %v5305_v28, 16  ;;  %v373_v33 = vmul.u32 %v369_v60, %v367_v62  ;;  %v390_v44 = vand.u32 65535, %v360_v3 }
 0x18a   :  { %v760_v27 = vmul.f32 %v759_v24, %v755_v58  ;;  %v767_v48 = vmul.f32 %v766_v19, %v755_v58  ;;  %vm265_vm7 = vcmp.lt.s32.totalorder %v264_v25, 0  ;;  %v266_v6 = vsub.s32 0, %v264_v25 }
 0x18b   :  { %vm378_vm8 = vc.u32 %v370_v8, %v374_v26  ;;  %v380_v4 = vadd.s32 %v374_v26, %v370_v8  ;;  %vm770_vm10 = vweird.f32 %v4356_v23  ;;  %vm773_vm11 = vcmp.lt.s32.totalorder %v772_v46, 2 }
 0x18c   :  { %v761_v30 = vadd.f32 1.0, %v760_v27  ;;  %v768_v41 = vadd.f32 1.0, %v767_v48  ;;  %v267_v2 = vsel %vm265_vm7, %v266_v6, %v264_v25  ;;  %v379_v1 = vsel %vm378_vm8, 1, %v7615_v0 }
 0x18d   :  { %v268_v42 = vclz %v267_v2  ;;  %vm382_vm9 = vc.u32 %v380_v4, %v376_v16  ;;  %vm774_vm12 = vcmp.eq.s32.totalorder %v772_v46, 0  ;;  %v381_v45 = vadd.s32 %v379_v1, %v373_v33 }
 0x18e   :  { %v769_v38 = vmul.f32 %v768_v41, %v753_v57  ;;  %v778_v58 = vxor.u32 2147483648, %v761_v30  ;;  %vm777_vm13 = vcmp.eq.s32.totalorder %v772_v46, 2  ;;  %v383_v9 = vsel %vm382_vm9, 1, %v7615_v0 }
 0x18f   :  { %v4128_v43 = vadd.s32 4294967294, %v268_v42  ;;  %v393_v17 = vmul.u32 %v391_v13, %v366_v55  ;;  %v256_v35 = vadd.s32 %v5232_v50, %v5217_v32  ;;  %v392_v49 = vmul.u32 %v390_v44, %v366_v55 }
 0x190   :  { %v775_v61 = vxor.u32 2147483648, %v769_v38  ;;  %v779_v22 = vsel %vm777_vm13, %v778_v58, %v769_v38  ;;  %v394_v11 = vmul.u32 %v390_v44, %v367_v62  ;;  %v385_v12 = vadd.s32 %v383_v9, %v381_v45 }
 0x191   :  { %vm4129_vm14 = vcmp.lt.s32.totalorder %v4128_v43, 0  ;;  %v396_v56 = vshll.u32 %v393_v17, 16  ;;  %v375_v24 = vshrl.u32 %v371_v51, 16  ;;  %v395_v19 = vmul.u32 %v391_v13, %v367_v62 }
 0x192   :  { %v776_v37 = vsel %vm774_vm12, %v761_v30, %v775_v61  ;;  %v271_v57 = vsel %vm4129_vm14, 0, %v4128_v43  ;;  %v398_v50 = vshll.u32 %v394_v11, 16  ;;  %v333_v16 = vshrl.u32 %v7613_v34, %v5176_v18 }
 0x193   :  { %v780_v7 = vsel %vm773_vm11, %v776_v37, %v779_v22  ;;  %v272_v60 = vsub.s32 32, %v271_v57  ;;  %v276_v40 = vsub.s32 4294967266, %v271_v57  ;;  %v273_v3 = vshll.u32 %v264_v25, %v271_v57 }
 0x194   :  { %v781_v59 = vsel %vm770_vm10, nan, %v780_v7  ;;  %vm400_vm15 = vc.u32 %v392_v49, %v396_v56  ;;  %v402_v26 = vadd.s32 %v396_v56, %v392_v49  ;;  %v386_v48 = vadd.s32 %v385_v12, %v375_v24 }
 0x195   :  { %1478 = vmatpush.msra.mxu1 %v781_v59  ;;  %v274_v8 = vshrl.u32 %v256_v35, %v272_v60  ;;  %v277_v32 = vadd.s32 127, %v276_v40  ;;  %v401_v55 = vsel %vm400_vm15, 1, %v7615_v0  ;;  %v354_v23 = vsel %vm352_vm3, %v5262_v53, 2102212464 }
 0x196   :  { %v403_v6 = vadd.s32 %v401_v55, %v395_v19  ;;  %vm404_vm0 = vc.u32 %v402_v26, %v398_v50  ;;  %v377_v51 = vshrl.u32 %v5305_v28, 16  ;;  %v353_v4 = vsel %vm349_vm4, %v333_v16, %v5273_v36 }
 0x197   :  { %v275_v27 = vor.u32 %v274_v8, %v273_v3  ;;  %v278_v46 = vshll.u32 %v277_v32, 23  ;;  %v405_v25 = vsel %vm404_vm0, 1, %v7615_v0  ;;  %v397_v13 = vshrl.u32 %v393_v17, 16 }
 0x198   :  { %v407_v30 = vadd.s32 %v405_v25, %v403_v6  ;;  %v355_v18 = vsel %vm351_vm6, %v5260_v5, %v354_v23  ;;  %v387_v1 = vadd.s32 %v386_v48, %v377_v51  ;;  %v399_v53 = vshrl.u32 %v394_v11, 16 }
 0x199   :  { %v279_v62 = vor.u32 4788187, %v278_v46  ;;  %v282_v2 = vcvt.s32.f32 %v275_v27  ;;  %v406_v44 = vadd.s32 %v402_v26, %v398_v50  ;;  %v356_v28 = vsel %vm350_vm5, %v353_v4, %v355_v18 }
 0x19a   :  { %v408_v42 = vadd.s32 %v407_v30, %v397_v13  ;;  %vm164_vm2 = vcmp.lt.s32.totalorder %v4350_v14, 0  ;;  %vm5337_vm3 = vcmp.le.f32.partialorder %v162_v29, 0.7853982  ;;  %v410_v45 = vmul.u32 %v5296_v63, %v356_v28 }
 0x19b   :  { %v280_v41 = vand.u32 2147483647, %v279_v62  ;;  %vm412_vm1 = vc.u32 %v387_v1, %v406_v44  ;;  %v286_v61 = vsub.s32 4, %v5298_v10  ;;  %vm305_vm5 = vweird.f32 %v4350_v14 }
 0x19c   :  { %v409_v38 = vadd.s32 %v408_v42, %v399_v53  ;;  %v411_v4 = vadd.s32 %v406_v44, %v387_v1  ;;  %vm1422_vm10 = vcmask 261120   ;;  %v49_v1 = vld [vmem:[%s7593_s4 + $0x18] sm:$0xff]  ;;  %vm319_vm11 = vcmp.lt.s32.totalorder %v4352_v15, 0 }
 0x19d   :  { %v283_v33 = vmul.f32 %v282_v2, %v280_v41  ;;  %v287_v29 = vsel %vm164_vm2, %v286_v61, %v5298_v10  ;;  %1419 = vperm.xlu1 %4232, %v49_v1   ;;  %vm5366_vm12 = vcmp.le.f32.partialorder %v317_v20, 0.7853982  ;;  %v46_v61 = vld [vmem:[%s7593_s4] sm:$0xff]  ;;  %vm460_vm0 = vweird.f32 %v4352_v15 }
 0x19e   :  { %v413_v36 = vadd.s32 1, %v409_v38  ;;  %v289_v63 = vsel %vm5337_vm3, 0, %v287_v29 }
 0x19f   :  { %v284_v58 = vxor.u32 2147483648, %v283_v33  ;;  %v306_v19 = vadd.s32 3, %v289_v63 }
 0x1a0   :  { %v414_v9 = vsel %vm412_vm1, %v413_v36, %v409_v38  ;;  %v43_v36 = vld [vmem:[%s7596_s3 + $0x8] sm:$0xff] }
 0x1a1   :  { %v285_v5 = vsel %vm164_vm2, %v284_v58, %v283_v33  ;;  %v415_v22 = vadd.s32 %v414_v9, %v410_v45  ;;  %v307_v26 = vand.u32 3, %v306_v19 }
 0x1a2   :  { %v288_v54 = vsel %vm5337_vm3, %v4350_v14, %v285_v5  ;;  %v42_v14 = vld [vmem:[%s7596_s3] sm:$0xff] }
 0x1a3   :  { %v290_v17 = vmul.f32 %v288_v54, %v288_v54  ;;  %v416_v37 = vadd.s32 536870912, %v415_v22  ;;  %vm309_vm6 = vcmp.eq.s32.totalorder %v307_v26, 0  ;;  %vm312_vm7 = vcmp.eq.s32.totalorder %v307_v26, 2 }
 0x1a4   :  { %vm308_vm9 = vcmp.lt.s32.totalorder %v307_v26, 2  ;;  %v54_v26 = vld [vmem:[%s7594_s6] sm:$0xff] }
 0x1a5   :  { %v291_v35 = vmul.f32 -0.001358992, %v290_v17  ;;  %v298_v49 = vmul.f32 -0.00019511016, %v290_v17  ;;  %v5347_v56 = vshrl.u32 %v416_v37, 30  ;;  %1404 = vperm.xlu1 %4232, %v46_v61  }
 0x1a7   :  { %v292_v57 = vadd.f32 0.041655596, %v291_v35  ;;  %v299_v11 = vadd.f32 0.008332121, %v298_v49  ;;  %v418_v40 = vshll.u32 %v5347_v56, 30  ;;  %v44_v49 = vld [vmem:[%s7596_s3 + $0x10] sm:$0xff] }
 0x1a9   :  { %v293_v7 = vmul.f32 %v292_v57, %v290_v17  ;;  %v300_v60 = vmul.f32 %v299_v11, %v290_v17  ;;  %v419_v24 = vsub.s32 %v415_v22, %v418_v40 }
 0x1ab   :  { %v294_v12 = vadd.f32 -0.4999988, %v293_v7  ;;  %v301_v59 = vadd.f32 -0.16666654, %v300_v60  ;;  %vm420_vm4 = vcmp.lt.s32.totalorder %v419_v24, 0  ;;  %v421_v32 = vsub.s32 0, %v419_v24 }
 0x1ac   :  { %v47_v7 = vld [vmem:[%s7593_s4 + $0x8] sm:$0xff] }
 0x1ad   :  { %v295_v3 = vmul.f32 %v294_v12, %v290_v17  ;;  %v302_v8 = vmul.f32 %v301_v59, %v290_v17  ;;  %v422_v55 = vsel %vm420_vm4, %v421_v32, %v419_v24  ;;  %1409 = vperm.xlu0 %4233, %v47_v7  }
 0x1ae   :  { %v423_v27 = vclz %v422_v55  ;;  %v14_v55 = vstv %s7597_s8 }
 0x1af   :  { %v296_v10 = vadd.f32 1.0, %v295_v3  ;;  %v303_v50 = vadd.f32 1.0, %v302_v8  ;;  %15 = vst [vmem:[#allocation2] sm:$0x1] %v14_v55 }
 0x1b0   :  { %v4131_v6 = vadd.s32 4294967294, %v423_v27 }
 0x1b1   :  { %v304_v46 = vmul.f32 %v303_v50, %v288_v54  ;;  %v313_v48 = vxor.u32 2147483648, %v296_v10  ;;  %v441_v54 = vsub.s32 4, %v5347_v56  ;;  %v56_v50 = vld [vmem:[%s7594_s6 + $0x10] sm:$0xff] }
 0x1b2   :  { %vm4132_vm8 = vcmp.lt.s32.totalorder %v4131_v6, 0  ;;  %2745 = vperm.xlu1 %4232, %v56_v50  }
 0x1b3   :  { %v310_v16 = vxor.u32 2147483648, %v304_v46  ;;  %v314_v62 = vsel %vm312_vm7, %v313_v48, %v304_v46  ;;  %v426_v51 = vsel %vm4132_vm8, 0, %v4131_v6  ;;  %v442_v35 = vsel %vm319_vm11, %v441_v54, %v5347_v56 }
 0x1b4   :  { %v427_v13 = vsub.s32 32, %v426_v51  ;;  %v431_v30 = vsub.s32 4294967266, %v426_v51  ;;  %v428_v2 = vshll.u32 %v419_v24, %v426_v51  ;;  %v444_v57 = vsel %vm5366_vm12, 0, %v442_v35  ;;  %v45_v24 = vld [vmem:[%s7596_s3 + $0x18] sm:$0xff] }
 0x1b5   :  { %v311_v23 = vsel %vm309_vm6, %v296_v10, %v310_v16  ;;  %v461_v40 = vadd.s32 3, %v444_v57  ;;  %2735 = vperm.xlu0 %4233, %v54_v26  }
 0x1b6   :  { %v315_v25 = vsel %vm308_vm9, %v311_v23, %v314_v62  ;;  %v429_v18 = vshrl.u32 %v411_v4, %v427_v13  ;;  %v432_v53 = vadd.s32 127, %v431_v30  ;;  %v59_v23 = vld [vmem:[#allocation2] sm:$0x1] }
 0x1b7   :  { %v316_v41 = vsel %vm305_vm5, nan, %v315_v25  ;;  %v462_v8 = vand.u32 3, %v461_v40 }
 0x1b8   :  { %1450 = vmatpush.msra.mxu0 %v316_v41  ;;  %v430_v42 = vor.u32 %v429_v18, %v428_v2  ;;  %v433_v33 = vshll.u32 %v432_v53, 23 }
 0x1b9   :  { %4151 = vmatmul.msk.f32.vlgmr.msra.gmra.mxu0 %vm1422_vm10, %v42_v14  ;;  %vm464_vm13 = vcmp.eq.s32.totalorder %v462_v8, 0  ;;  %vm467_vm14 = vcmp.eq.s32.totalorder %v462_v8, 2  ;;  %vm463_vm15 = vcmp.lt.s32.totalorder %v462_v8, 2 }
 0x1ba   :  { %v434_v28 = vor.u32 4788187, %v433_v33  ;;  %v437_v38 = vcvt.s32.f32 %v430_v42  ;;  %4065 = vperm.xlu1 %4232, %v59_v23  }
 0x1bc   :  { %v435_v44 = vand.u32 2147483647, %v434_v28  ;;  %v5414_v28 = vpop.permute.xlu2 %1414 }
 0x1be   :  { %v438_v58 = vmul.f32 %v437_v38, %v435_v44 }
 0x1c0   :  { %v439_v43 = vxor.u32 2147483648, %v438_v58 }
 0x1c1   :  { %4152 = vmatmul.msk.f32.gmra.mxu0 %vm1422_vm10, %v43_v36 }
 0x1c2   :  { %v440_v45 = vsel %vm319_vm11, %v439_v43, %v438_v58 }
 0x1c3   :  { %v443_v9 = vsel %vm5366_vm12, %v4352_v15, %v440_v45 }
 0x1c4   :  { %v445_v17 = vmul.f32 %v443_v9, %v443_v9 }
 0x1c6   :  { %v446_v22 = vmul.f32 -0.001358992, %v445_v17  ;;  %v453_v20 = vmul.f32 -0.00019511016, %v445_v17 }
 0x1c8   :  { %v447_v37 = vadd.f32 0.041655596, %v446_v22  ;;  %v454_v29 = vadd.f32 0.008332121, %v453_v20 }
 0x1c9   :  { %4153 = vmatmul.msk.f32.gmra.mxu0 %vm1422_vm10, %v44_v49 }
 0x1ca   :  { %v448_v11 = vmul.f32 %v447_v37, %v445_v17  ;;  %v455_v63 = vmul.f32 %v454_v29, %v445_v17 }
 0x1cc   :  { %v449_v60 = vadd.f32 -0.4999988, %v448_v11  ;;  %v456_v56 = vadd.f32 -0.16666654, %v455_v63 }
 0x1ce   :  { %v450_v12 = vmul.f32 %v449_v60, %v445_v17  ;;  %v457_v59 = vmul.f32 %v456_v56, %v445_v17 }
 0x1d0   :  { %v451_v19 = vadd.f32 1.0, %v450_v12  ;;  %v458_v3 = vadd.f32 1.0, %v457_v59 }
 0x1d1   :  { %4154 = vmatmul.msk.f32.gmra.mxu0 %vm1422_vm10, %v45_v24 }
 0x1d2   :  { %v459_v32 = vmul.f32 %v458_v3, %v443_v9  ;;  %v468_v10 = vxor.u32 2147483648, %v451_v19 }
 0x1d4   :  { %v465_v27 = vxor.u32 2147483648, %v459_v32  ;;  %v469_v48 = vsel %vm467_vm14, %v468_v10, %v459_v32 }
 0x1d6   :  { %v466_v46 = vsel %vm464_vm13, %v451_v19, %v465_v27 }
 0x1d7   :  { %v470_v6 = vsel %vm463_vm15, %v466_v46, %v469_v48 }
 0x1d8   :  { %v471_v16 = vsel %vm460_vm0, nan, %v470_v6 }
 0x1d9   :  { %1479 = vmatpush.msra.mxu1 %v471_v16 }
 0x1da   :  { %4155 = vmatmul.msk.f32.vlgmr.msra.gmra.mxu1 %vm1422_vm10, %v42_v14 }
 0x1e2   :  { %4156 = vmatmul.msk.f32.gmra.mxu1 %vm1422_vm10, %v43_v36 }
 0x1ea   :  { %4157 = vmatmul.msk.f32.gmra.mxu1 %vm1422_vm10, %v44_v49 }
 0x1f2   :  { %4158 = vmatmul.msk.f32.gmra.mxu1 %vm1422_vm10, %v45_v24 }
 0x20f   :  { %v5406_v62 = vpop.permute.xlu1 %1419 }
 0x217   :  { %v1405_v51 = vpop.permute.xlu1 %1404 }
 0x21f   :  { %v1410_v30 = vpop.permute.xlu0 %1409 }
 0x236   :  { %v1452_v25 = vpop.f32.mrf.mxu0 }
 0x237   :  { %v5408_v4 = vadd.f32 %v1452_v25, %v1405_v51 }
 0x239   :  { %7695 = vst [vmem:[#allocation3_spill] sm:$0xff] %v5408_v4  ;;  %v1496_v15 = vand.u32 2139095040, %v5408_v4 }
 0x23b   :  { %v1497_v13 = vshrl.u32 %v1496_v15, 23 }
 0x23d   :  { %v4159_v53 = vadd.s32 4294967169, %v1497_v13 }
 0x23e   :  { %v1455_v41 = vpop.f32.mrf.mxu0 }
 0x23f   :  { %v5411_v2 = vadd.f32 %v1455_v41, %v1410_v30  ;;  %v1503_v14 = vadd.s32 1, %v4159_v53 }
 0x241   :  { %v1806_v18 = vand.u32 2139095040, %v5411_v2  ;;  %vm1504_vm1 = vcmp.gt.s32.totalorder %v1503_v14, 0 }
 0x242   :  { %v1505_v45 = vsel %vm1504_vm1, %v1503_v14, 0 }
 0x243   :  { %v1807_v42 = vshrl.u32 %v1806_v18, 23  ;;  %v5423_v17 = vand.u32 31, %v1505_v45  ;;  %v5446_v55 = vshrl.u32 %v1505_v45, 5 }
 0x245   :  { %v4165_v33 = vadd.s32 4294967169, %v1807_v42  ;;  %7697 = vst [vmem:[#allocation5_spill] sm:$0xff] %v5423_v17  ;;  %v5434_v63 = vsub.s32 32, %v5423_v17  ;;  %v1522_v24 = vshll.u32 %v7680_v47, %v5423_v17  ;;  %v1519_v26 = vshll.u32 %v7679_v52, %v5423_v17 }
 0x246   :  { %v1458_v1 = vpop.f32.mrf.mxu0  ;;  %7701 = vst [vmem:[#allocation9_spill] sm:$0xff] %v5446_v55  ;;  %vm1528_vm6 = vcmp.lt.s32.totalorder %v5446_v55, 4 }
 0x247   :  { %v5417_v44 = vadd.f32 %v1458_v1, %v5414_v28  ;;  %v1813_v58 = vadd.s32 1, %v4165_v33  ;;  %7699 = vst [vmem:[#allocation7_spill] sm:$0xff] %v5434_v63  ;;  %v1523_v3 = vshrl.u32 %v7681_v21, %v5434_v63  ;;  %v1520_v27 = vshrl.u32 %v7680_v47, %v5434_v63 }
 0x249   :  { %v2116_v43 = vand.u32 2139095040, %v5417_v44  ;;  %vm1814_vm2 = vcmp.gt.s32.totalorder %v1813_v58, 0  ;;  %v1524_v25 = vor.u32 %v1523_v3, %v1522_v24  ;;  %v5470_v33 = vor.u32 %v1520_v27, %v1519_v26 }
 0x24a   :  { %v1815_v22 = vsel %vm1814_vm2, %v1813_v58, 0 }
 0x24b   :  { %v2117_v5 = vshrl.u32 %v2116_v43, 23  ;;  %v5431_v11 = vand.u32 31, %v1815_v22  ;;  %v5463_v15 = vshrl.u32 %v1815_v22, 5  ;;  %7704 = vst [vmem:[#allocation12_spill] sm:$0xff] %v5470_v33  ;;  %v5474_v14 = vsel %vm1528_vm6, %v1524_v25, 1326507024 }
 0x24c   :  { %7705 = vst [vmem:[#allocation13_spill] sm:$0xff] %v5474_v14 }
 0x24d   :  { %v4171_v54 = vadd.s32 4294967169, %v2117_v5  ;;  %v5438_v12 = vsub.s32 32, %v5431_v11  ;;  %v1829_v46 = vshll.u32 %v7679_v52, %v5431_v11  ;;  %v1832_v6 = vshll.u32 %v7680_v47, %v5431_v11  ;;  %7702 = vst [vmem:[#allocation10_spill] sm:$0xff] %v5463_v15 }
 0x24e   :  { %v1461_v9 = vpop.f32.mrf.mxu0  ;;  %vm1838_vm7 = vcmp.lt.s32.totalorder %v5463_v15, 4 }
 0x24f   :  { %v2123_v20 = vadd.s32 1, %v4171_v54  ;;  %v5426_v35 = vadd.f32 %v1461_v9, %v5406_v62  ;;  %7700 = vst [vmem:[#allocation8_spill] sm:$0xff] %v5438_v12  ;;  %v1830_v48 = vshrl.u32 %v7680_v47, %v5438_v12  ;;  %v1833_v16 = vshrl.u32 %v7681_v21, %v5438_v12 }
 0x251   :  { %vm2124_vm3 = vcmp.gt.s32.totalorder %v2123_v20, 0  ;;  %v2426_v57 = vand.u32 2139095040, %v5426_v35  ;;  %v1834_v53 = vor.u32 %v1833_v16, %v1832_v6 }
 0x252   :  { %v2125_v56 = vsel %vm2124_vm3, %v2123_v20, 0 }
 0x253   :  { %v2427_v40 = vshrl.u32 %v2426_v57, 23  ;;  %v5442_v19 = vand.u32 31, %v2125_v56  ;;  %v5477_v58 = vshrl.u32 %v2125_v56, 5  ;;  %v5498_v20 = vsel %vm1838_vm7, %v1834_v53, 1326507024 }
 0x254   :  { %7708 = vst [vmem:[#allocation16_spill] sm:$0xff] %v5498_v20 }
 0x255   :  { %v4177_v59 = vadd.s32 4294967169, %v2427_v40  ;;  %v5461_v23 = vsub.s32 32, %v5442_v19  ;;  %v2139_v43 = vshll.u32 %v7679_v52, %v5442_v19  ;;  %vm2148_vm9 = vcmp.lt.s32.totalorder %v5477_v58, 4 }
 0x256   :  { %v7608_v40 = vand.u32 2147483647, %v5426_v35 }
 0x257   :  { %v1481_v38 = vpop.f32.mrf.mxu1  ;;  %v2433_v50 = vadd.s32 1, %v4177_v59  ;;  %v2140_v42 = vshrl.u32 %v7680_v47, %v5461_v23  ;;  %v2143_v5 = vshrl.u32 %v7681_v21, %v5461_v23 }
 0x258   :  { %v5419_v36 = vadd.f32 %v1481_v38, %v1405_v51  ;;  %v2430_v25 = vand.u32 8388607, %v7608_v40 }
 0x259   :  { %vm2434_vm4 = vcmp.gt.s32.totalorder %v2433_v50, 0 }
 0x25a   :  { %7696 = vst [vmem:[#allocation4_spill] sm:$0xff] %v5419_v36  ;;  %v1651_v61 = vand.u32 2139095040, %v5419_v36  ;;  %v2435_v51 = vsel %vm2434_vm4, %v2433_v50, 0 }
 0x25b   :  { %v2437_v41 = vand.u32 31, %v2435_v51  ;;  %v2436_v50 = vshrl.u32 %v2435_v51, 5 }
 0x25c   :  { %v1652_v49 = vshrl.u32 %v1651_v61, 23 }
 0x25d   :  { %v2438_v45 = vsub.s32 32, %v2437_v41  ;;  %v2449_v56 = vshll.u32 %v7679_v52, %v2437_v41  ;;  %v2452_v3 = vshll.u32 %v7680_v47, %v2437_v41  ;;  %vm2458_vm11 = vcmp.lt.s32.totalorder %v2436_v50, 4 }
 0x25e   :  { %v4162_v7 = vadd.s32 4294967169, %v1652_v49  ;;  %v5500_v49 = vor.u32 %v2140_v42, %v2139_v43  ;;  %v2446_v42 = vshll.u32 %v7609_v39, %v2437_v41  ;;  %vm2455_vm13 = vcmp.lt.s32.totalorder %v2436_v50, 1 }
 0x25f   :  { %v1484_v37 = vpop.f32.mrf.mxu1  ;;  %v2450_v57 = vshrl.u32 %v7680_v47, %v2438_v45  ;;  %v2441_v6 = vshrl.u32 %v7611_v31, %v2438_v45  ;;  %vm2457_vm14 = vcmp.lt.s32.totalorder %v2436_v50, 3  ;;  %vm2456_vm15 = vcmp.lt.s32.totalorder %v2436_v50, 2 }
 0x260   :  { %v5428_v29 = vadd.f32 %v1484_v37, %v1410_v30  ;;  %v1658_v8 = vadd.s32 1, %v4162_v7  ;;  %v5465_v30 = vor.u32 %v1830_v48, %v1829_v46  ;;  %v2142_v37 = vshll.u32 %v7680_v47, %v5442_v19 }
 0x261   :  { %v2451_v26 = vor.u32 %v2450_v57, %v2449_v56  ;;  %v2440_v48 = vshll.u32 %v7613_v34, %v2437_v41  ;;  %v2439_v56 = vshrl.u32 %v7613_v34, %v2438_v45  ;;  %v7712_v50 = vmov 0  }
 0x262   :  { %7698 = vst [vmem:[#allocation6_spill] sm:$0xff] %v5428_v29  ;;  %v1961_v60 = vand.u32 2139095040, %v5428_v29  ;;  %vm1659_vm5 = vcmp.gt.s32.totalorder %v1658_v8, 0  ;;  %v5488_v54 = vsel %vm1838_vm7, %v5465_v30, 920167782 }
 0x263   :  { %7703 = vst [vmem:[#allocation11_spill] sm:$0xff] %v5465_v30  ;;  %v1660_v18 = vsel %vm1659_vm5, %v1658_v8, 0  ;;  %v2442_v51 = vor.u32 %v2441_v6, %v2440_v48 }
 0x264   :  { %v1962_v32 = vshrl.u32 %v1961_v60, 23  ;;  %v5483_v61 = vand.u32 31, %v1660_v18  ;;  %7707 = vst [vmem:[#allocation15_spill] sm:$0xff] %v5488_v54  ;;  %v5505_v7 = vshrl.u32 %v1660_v18, 5  ;;  %v2444_v18 = vshrl.u32 %v7609_v39, %v2438_v45 }
 0x266   :  { %v4168_v13 = vadd.s32 4294967169, %v1962_v32  ;;  %7706 = vst [vmem:[#allocation14_spill] sm:$0xff] %v5483_v61  ;;  %v5513_v59 = vsub.s32 32, %v5483_v61 }
 0x267   :  { %v1487_v10 = vpop.f32.mrf.mxu1  ;;  %7709 = vst [vmem:[#allocation17_spill] sm:$0xff] %v5505_v7 }
 0x268   :  { %v1968_v1 = vadd.s32 1, %v4168_v13  ;;  %v5491_v9 = vadd.f32 %v1487_v10, %v5414_v28  ;;  %v2453_v28 = vshrl.u32 %v7681_v21, %v2438_v45  ;;  %7710 = vst [vmem:[#allocation18_spill] sm:$0xff] %v5513_v59  ;;  %v5520_v10 = vsel %vm2148_vm9, %v5500_v49, 920167782 }
 0x269   :  { %v2443_v13 = vshll.u32 %v7611_v31, %v2437_v41 }
 0x26a   :  { %vm1969_vm8 = vcmp.gt.s32.totalorder %v1968_v1, 0  ;;  %v2271_v24 = vand.u32 2139095040, %v5491_v9  ;;  %v2454_v27 = vor.u32 %v2453_v28, %v2452_v3 }
 0x26b   :  { %v1970_v32 = vsel %vm1969_vm8, %v1968_v1, 0  ;;  %v2447_v1 = vshrl.u32 %v7679_v52, %v2438_v45 }
 0x26c   :  { %v2272_v43 = vshrl.u32 %v2271_v24, 23  ;;  %v2468_v57 = vsel %vm2458_vm11, %v2454_v27, 1326507024 }
 0x26d   :  { %v2448_v28 = vor.u32 %v2447_v1, %v2446_v42  ;;  %v2469_v24 = vsel %vm2457_vm14, %v2451_v26, %v2468_v57 }
 0x26f   :  { %v1490_v38 = vpop.f32.mrf.mxu1  ;;  %v2460_v41 = vsel %vm2458_vm11, %v2448_v28, 2102212464 }
 0x270   :  { %v5494_v22 = vadd.f32 %v1490_v38, %v5406_v62  ;;  %v2144_v62 = vor.u32 %v2143_v5, %v2142_v37  ;;  %v5534_v38 = vand.u32 31, %v1970_v32  ;;  %v2445_v5 = vor.u32 %v2444_v18, %v2443_v13 }
 0x271   :  { %v2464_v37 = vsel %vm2458_vm11, %v2451_v26, 920167782  ;;  %v2459_v13 = vsel %vm2455_vm13, %v2439_v56, %v2442_v51 }
 0x272   :  { %v2581_v60 = vand.u32 2139095040, %v5494_v22  ;;  %v5526_v16 = vsel %vm2148_vm9, %v2144_v62, 1326507024  ;;  %7711 = vst [vmem:[#allocation19_spill] sm:$0xff] %v5534_v38  ;;  %v2431_v62 = vor.u32 8388608, %v2430_v25  ;;  %v2465_v48 = vsel %vm2457_vm14, %v2448_v28, %v2464_v37 }
 0x273   :  { %v2467_v6 = vsel %vm2455_vm13, %v2445_v5, %v2448_v28  ;;  %v2461_v25 = vsel %vm2457_vm14, %v2445_v5, %v2460_v41  ;;  %v5556_v28 = vshrl.u32 %v1970_v32, 5  ;;  %v5565_v41 = vshll.u32 %v7679_v52, %v5534_v38 }
 0x274   :  { %v2582_v8 = vshrl.u32 %v2581_v60, 23  ;;  %v2470_v18 = vsel %vm2456_vm15, %v2467_v6, %v2469_v24  ;;  %v5571_v32 = vsel %vm2456_vm15, %v2459_v13, %v2461_v25  ;;  %v7625_v33 = vand.u32 2147483647, %v5494_v22 }
 0x275   :  { %v2474_v1 = vand.u32 65535, %v2470_v18 }
 0x276   :  { %v4180_v46 = vadd.s32 4294967169, %v2582_v8  ;;  %v2463_v8 = vsel %vm2455_vm13, %v2442_v51, %v2445_v5 }
 0x277   :  { %v2466_v45 = vsel %vm2456_vm15, %v2463_v8, %v2465_v48 }
 0x278   :  { %v2588_v53 = vadd.s32 1, %v4180_v46  ;;  %v4174_v46 = vadd.s32 4294967169, %v2272_v43  ;;  %v2475_v43 = vshrl.u32 %v2470_v18, 16  ;;  %v2497_v57 = vshrl.u32 %v2466_v45, 16 }
 0x279   :  { %v2496_v56 = vand.u32 65535, %v2466_v45 }
 0x27a   :  { %vm2589_vm12 = vcmp.gt.s32.totalorder %v2588_v53, 0  ;;  %v2278_v24 = vadd.s32 1, %v4174_v46 }
 0x27b   :  { %v2590_v60 = vsel %vm2589_vm12, %v2588_v53, 0  ;;  %v5546_v53 = vshll.u32 %v2431_v62, 8 }
 0x27c   :  { %v5537_v3 = vand.u32 31, %v2590_v60  ;;  %v5539_v40 = vshrl.u32 %v2590_v60, 5  ;;  %v5559_v60 = vsub.s32 32, %v5534_v38  ;;  %vm2279_vm2 = vcmp.gt.s32.totalorder %v2278_v24, 0 }
 0x27d   :  { %v2472_v51 = vand.u32 65535, %v5546_v53  ;;  %v2473_v5 = vshrl.u32 %v5546_v53, 16 }
 0x27e   :  { %v5542_v27 = vsub.s32 32, %v5537_v3  ;;  %v2604_v42 = vshll.u32 %v7679_v52, %v5537_v3  ;;  %v2607_v8 = vshll.u32 %v7680_v47, %v5537_v3  ;;  %vm2613_vm0 = vcmp.lt.s32.totalorder %v5539_v40, 4 }
 0x27f   :  { %v2477_v48 = vmul.u32 %v2475_v43, %v2472_v51  ;;  %v2478_v6 = vmul.u32 %v2474_v1, %v2473_v5  ;;  %v2499_v18 = vmul.u32 %v2497_v57, %v2472_v51  ;;  %v2498_v34 = vmul.u32 %v2496_v56, %v2472_v51 }
 0x280   :  { %v2605_v26 = vshrl.u32 %v7680_v47, %v5542_v27  ;;  %v2608_v37 = vshrl.u32 %v7681_v21, %v5542_v27  ;;  %v2500_v0 = vmul.u32 %v2496_v56, %v2473_v5  ;;  %v2501_v25 = vmul.u32 %v2497_v57, %v2473_v5 }
 0x281   :  { %v2480_v45 = vshll.u32 %v2477_v48, 16  ;;  %v2502_v36 = vshll.u32 %v2499_v18, 16  ;;  %v2482_v7 = vshll.u32 %v2478_v6, 16  ;;  %v2481_v14 = vshrl.u32 %v2477_v48, 16 }
 0x282   :  { %v5561_v62 = vor.u32 %v2605_v26, %v2604_v42  ;;  %v2609_v39 = vor.u32 %v2608_v37, %v2607_v8  ;;  %v2476_v42 = vmul.u32 %v2474_v1, %v2472_v51  ;;  %v2479_v26 = vmul.u32 %v2475_v43, %v2473_v5 }
 0x283   :  { %v2504_v37 = vshll.u32 %v2500_v0, 16  ;;  %vm2506_vm3 = vc.u32 %v2498_v34, %v2502_v36  ;;  %v2508_v8 = vadd.s32 %v2502_v36, %v2498_v34  ;;  %v2503_v63 = vshrl.u32 %v2499_v18, 16 }
 0x284   :  { %v2619_v31 = vsel %vm2613_vm0, %v5561_v62, 920167782  ;;  %vm2484_vm1 = vc.u32 %v2476_v42, %v2480_v45  ;;  %v2486_v46 = vadd.s32 %v2480_v45, %v2476_v42  ;;  %v2507_v43 = vsel %vm2506_vm3, 1, %v7712_v50 }
 0x285   :  { %v2485_v13 = vsel %vm2484_vm1, 1, %v7712_v50  ;;  %v2509_v56 = vadd.s32 %v2507_v43, %v2501_v25  ;;  %v2585_v42 = vand.u32 8388607, %v7625_v33  ;;  %v2483_v45 = vshrl.u32 %v2478_v6, 16 }
 0x286   :  { %v2487_v1 = vadd.s32 %v2485_v13, %v2479_v26  ;;  %vm2488_vm4 = vc.u32 %v2486_v46, %v2482_v7  ;;  %vm2510_vm5 = vc.u32 %v2508_v8, %v2504_v37  ;;  %v7713_v26 = vmov 683565275  }
 0x287   :  { %v2489_v51 = vsel %vm2488_vm4, 1, %v7712_v50  ;;  %v2511_v5 = vsel %vm2510_vm5, 1, %v7712_v50  ;;  %v2586_v57 = vor.u32 8388608, %v2585_v42  ;;  %v2595_v7 = vshll.u32 %v7713_v26, %v5537_v3 }
 0x288   :  { %v2491_v55 = vadd.s32 %v2489_v51, %v2487_v1  ;;  %v7714_v46 = vmov 2475754826   ;;  %v2513_v48 = vadd.s32 %v2511_v5, %v2509_v56  ;;  %v7715_v25 = vmov 2131351028  }
 0x289   :  { %v2596_v34 = vshrl.u32 %v7714_v46, %v5542_v27  ;;  %v2598_v13 = vshll.u32 %v7714_v46, %v5537_v3  ;;  %v2599_v6 = vshrl.u32 %v7715_v25, %v5542_v27  ;;  %v2623_v18 = vsel %vm2613_vm0, %v2609_v39, 1326507024 }
 0x28a   :  { %v2492_v36 = vadd.s32 %v2491_v55, %v2481_v14  ;;  %v2601_v43 = vshll.u32 %v7715_v25, %v5537_v3  ;;  %v2602_v51 = vshrl.u32 %v7679_v52, %v5542_v27  ;;  %v2505_v55 = vshrl.u32 %v2500_v0, 16 }
 0x28b   :  { %v2597_v1 = vor.u32 %v2596_v34, %v2595_v7  ;;  %v2514_v14 = vadd.s32 %v2513_v48, %v2503_v63  ;;  %v2600_v56 = vor.u32 %v2599_v6, %v2598_v13  ;;  %v5599_v5 = vadd.s32 %v2508_v8, %v2504_v37 }
 0x28c   :  { %v5597_v42 = vadd.s32 %v2492_v36, %v2483_v45  ;;  %v2603_v33 = vor.u32 %v2602_v51, %v2601_v43  ;;  %vm2610_vm8 = vcmp.lt.s32.totalorder %v5539_v40, 1  ;;  %v5602_v17 = vshll.u32 %v2586_v57, 8 }
 0x28d   :  { %v2515_v39 = vadd.s32 %v2514_v14, %v2505_v55  ;;  %vm2611_vm11 = vcmp.lt.s32.totalorder %v5539_v40, 2  ;;  %vm2612_vm12 = vcmp.lt.s32.totalorder %v5539_v40, 3  ;;  %v2618_v3 = vsel %vm2610_vm8, %v2597_v1, %v2600_v56 }
 0x28e   :  { %vm2518_vm13 = vc.u32 %v5597_v42, %v5599_v5  ;;  %v2620_v0 = vsel %vm2612_vm12, %v2603_v33, %v2619_v31  ;;  %v2622_v63 = vsel %vm2610_vm8, %v2600_v56, %v2603_v33  ;;  %v2624_v37 = vsel %vm2612_vm12, %v5561_v62, %v2623_v18 }
 0x28f   :  { %v2280_v8 = vsel %vm2279_vm2, %v2278_v24, 0  ;;  %v2519_v45 = vadd.s32 1, %v2515_v39  ;;  %v2621_v57 = vsel %vm2611_vm11, %v2618_v3, %v2620_v0  ;;  %v2625_v7 = vsel %vm2611_vm11, %v2622_v63, %v2624_v37 }
 0x290   :  { %v2516_v34 = vmul.u32 %v5546_v53, %v5571_v32  ;;  %v2627_v31 = vand.u32 65535, %v5602_v17  ;;  %v2628_v36 = vshrl.u32 %v5602_v17, 16  ;;  %v2629_v48 = vand.u32 65535, %v2625_v7 }
 0x291   :  { %v2520_v13 = vsel %vm2518_vm13, %v2519_v45, %v2515_v39  ;;  %v2630_v6 = vshrl.u32 %v2625_v7, 16  ;;  %v2651_v62 = vand.u32 65535, %v2621_v57  ;;  %v2652_v18 = vshrl.u32 %v2621_v57, 16 }
 0x292   :  { %v5628_v24 = vshll.u32 %v7680_v47, %v5534_v38  ;;  %v5630_v43 = vshrl.u32 %v2280_v8, 5  ;;  %v2521_v51 = vadd.s32 %v2520_v13, %v2516_v34  ;;  %v2633_v55 = vmul.u32 %v2629_v48, %v2628_v36 }
 0x293   :  { %v5632_v14 = vand.u32 31, %v2280_v8  ;;  %v2594_v53 = vshrl.u32 %v7713_v26, %v5542_v27  ;;  %v2632_v32 = vmul.u32 %v2630_v6, %v2627_v31  ;;  %v2654_v3 = vmul.u32 %v2652_v18, %v2627_v31 }
 0x294   :  { %7716 = vst [vmem:[#allocation20_spill] sm:$0xff] %v5628_v24  ;;  %v2522_v0 = vadd.s32 536870912, %v2521_v51  ;;  %v2615_v39 = vsel %vm2613_vm0, %v2603_v33, 2102212464  ;;  %v2631_v63 = vmul.u32 %v2629_v48, %v2627_v31  ;;  %v2655_v37 = vmul.u32 %v2651_v62, %v2628_v36 }
 0x295   :  { %v2634_v45 = vmul.u32 %v2630_v6, %v2628_v36  ;;  %v2635_v57 = vshll.u32 %v2632_v32, 16  ;;  %v2653_v7 = vmul.u32 %v2651_v62, %v2627_v31  ;;  %v2657_v4 = vshll.u32 %v2654_v3, 16 }
 0x296   :  { %v2523_v59 = vshrl.u32 %v2522_v0, 30  ;;  %v2637_v34 = vshll.u32 %v2633_v55, 16  ;;  %v2656_v13 = vmul.u32 %v2652_v18, %v2628_v36  ;;  %v2659_v8 = vshll.u32 %v2655_v37, 16 }
 0x297   :  { %vm2639_vm14 = vc.u32 %v2631_v63, %v2635_v57  ;;  %v2641_v61 = vadd.s32 %v2635_v57, %v2631_v63  ;;  %vm2661_vm15 = vc.u32 %v2653_v7, %v2657_v4  ;;  %v2663_v27 = vadd.s32 %v2657_v4, %v2653_v7 }
 0x298   :  { %v2524_v38 = vshll.u32 %v2523_v59, 30  ;;  %v2614_v29 = vsel %vm2610_vm8, %v2594_v53, %v2597_v1  ;;  %v2640_v33 = vsel %vm2639_vm14, 1, %v7712_v50  ;;  %v2662_v48 = vsel %vm2661_vm15, 1, %v7712_v50 }
 0x299   :  { %vm2425_vm0 = vcmp.lt.s32.totalorder %v5426_v35, 0  ;;  %v2642_v31 = vadd.s32 %v2640_v33, %v2634_v45  ;;  %vm2643_vm1 = vc.u32 %v2641_v61, %v2637_v34  ;;  %v2664_v6 = vadd.s32 %v2662_v48, %v2656_v13 }
 0x29a   :  { %vm2665_vm2 = vc.u32 %v2663_v27, %v2659_v8  ;;  %v5643_v36 = vsub.s32 %v2521_v51, %v2524_v38  ;;  %v2616_v62 = vsel %vm2612_vm12, %v2600_v56, %v2615_v39  ;;  %v2644_v4 = vsel %vm2643_vm1, 1, %v7712_v50 }
 0x29b   :  { %v2666_v18 = vsel %vm2665_vm2, 1, %v7712_v50  ;;  %v2636_v1 = vshrl.u32 %v2632_v32, 16  ;;  %v2646_v53 = vadd.s32 %v2644_v4, %v2642_v31  ;;  %v2658_v0 = vshrl.u32 %v2654_v3, 16 }
 0x29c   :  { %v2668_v63 = vadd.s32 %v2666_v18, %v2664_v6  ;;  %v5650_v57 = vsub.s32 32, %v5632_v14  ;;  %v2294_v61 = vshll.u32 %v7679_v52, %v5632_v14  ;;  %v7717_v38 = vand.u32 2147483647, %v5426_v35 }
 0x29d   :  { %vm2526_vm4 = vcmp.lt.s32.totalorder %v5643_v36, 0  ;;  %v2527_v56 = vsub.s32 0, %v5643_v36  ;;  %v2638_v32 = vshrl.u32 %v2633_v55, 16  ;;  %v2647_v39 = vadd.s32 %v2646_v53, %v2636_v1 }
 0x29e   :  { %vm5656_vm3 = vcmp.le.f32.partialorder %v7717_v38, 0.7853982  ;;  %v2660_v3 = vshrl.u32 %v2655_v37, 16  ;;  %v2669_v45 = vadd.s32 %v2668_v63, %v2658_v0  ;;  %v2547_v34 = vsub.s32 4, %v2523_v59 }
 0x29f   :  { %v2528_v7 = vsel %vm2526_vm4, %v2527_v56, %v5643_v36  ;;  %v2617_v13 = vsel %vm2611_vm11, %v2614_v29, %v2616_v62  ;;  %v7637_v33 = vand.u32 2147483647, %v5417_v44  ;;  %v5666_v31 = vadd.s32 %v2647_v39, %v2638_v32 }
 0x2a0   :  { %v2529_v48 = vclz %v2528_v7  ;;  %v5668_v6 = vadd.s32 %v2663_v27, %v2659_v8  ;;  %v2670_v4 = vadd.s32 %v2669_v45, %v2660_v3  ;;  %v2295_v55 = vshrl.u32 %v7680_v47, %v5650_v57 }
 0x2a1   :  { %v2297_v37 = vshll.u32 %v7680_v47, %v5632_v14  ;;  %v2298_v18 = vshrl.u32 %v7681_v21, %v5650_v57  ;;  %v2517_v29 = vadd.s32 %v5599_v5, %v5597_v42  ;;  %v2671_v62 = vmul.u32 %v5602_v17, %v2617_v13 }
 0x2a2   :  { %v4178_v40 = vadd.s32 4294967294, %v2529_v48  ;;  %vm2673_vm5 = vc.u32 %v5666_v31, %v5668_v6  ;;  %v2674_v8 = vadd.s32 1, %v2670_v4  ;;  %v2548_v27 = vsel %vm2425_vm0, %v2547_v34, %v2523_v59 }
 0x2a3   :  { %v2120_v1 = vand.u32 8388607, %v7637_v33  ;;  %v2130_v53 = vshll.u32 %v7713_v26, %v5442_v19  ;;  %v2131_v0 = vshrl.u32 %v7714_v46, %v5461_v23  ;;  %vm2303_vm8 = vcmp.lt.s32.totalorder %v5630_v43, 4 }
 0x2a4   :  { %vm4179_vm11 = vcmp.lt.s32.totalorder %v4178_v40, 0  ;;  %v2675_v17 = vsel %vm2673_vm5, %v2674_v8, %v2670_v4  ;;  %v2133_v42 = vshll.u32 %v7714_v46, %v5442_v19  ;;  %v2134_v5 = vshrl.u32 %v7715_v25, %v5461_v23 }
 0x2a5   :  { %v2532_v59 = vsel %vm4179_vm11, 0, %v4178_v40  ;;  %v2676_v63 = vadd.s32 %v2675_v17, %v2671_v62  ;;  %v2136_v38 = vshll.u32 %v7715_v25, %v5442_v19  ;;  %v2137_v56 = vshrl.u32 %v7679_v52, %v5461_v23 }
 0x2a6   :  { %v2533_v32 = vsub.s32 32, %v2532_v59  ;;  %v2537_v39 = vsub.s32 4294967266, %v2532_v59  ;;  %v2550_v3 = vsel %vm5656_vm3, 0, %v2548_v27  ;;  %v5700_v45 = vor.u32 %v2134_v5, %v2133_v42 }
 0x2a7   :  { %v2677_v7 = vadd.s32 536870912, %v2676_v63  ;;  %v2121_v34 = vor.u32 8388608, %v2120_v1  ;;  %v2132_v13 = vor.u32 %v2131_v0, %v2130_v53  ;;  %v2138_v48 = vor.u32 %v2137_v56, %v2136_v38 }
 0x2a8   :  { %v2534_v4 = vshll.u32 %v5643_v36, %v2532_v59  ;;  %v2535_v40 = vshrl.u32 %v2517_v29, %v2533_v32  ;;  %v2538_v62 = vadd.s32 127, %v2537_v39  ;;  %vm2145_vm12 = vcmp.lt.s32.totalorder %v5477_v58, 1 }
 0x2a9   :  { %v5704_v19 = vor.u32 %v2295_v55, %v2294_v61  ;;  %v2299_v8 = vor.u32 %v2298_v18, %v2297_v37  ;;  %v2678_v17 = vshrl.u32 %v2677_v7, 30  ;;  %v2157_v27 = vsel %vm2145_vm12, %v5700_v45, %v2138_v48 }
 0x2aa   :  { %v2536_v42 = vor.u32 %v2535_v40, %v2534_v4  ;;  %v2539_v5 = vshll.u32 %v2538_v62, 23  ;;  %v2567_v33 = vadd.s32 3, %v2550_v3  ;;  %vm2147_vm13 = vcmp.lt.s32.totalorder %v5477_v58, 3 }
 0x2ab   :  { %v2679_v1 = vshll.u32 %v2678_v17, 30  ;;  %vm2146_vm14 = vcmp.lt.s32.totalorder %v5477_v58, 2  ;;  %v2153_v36 = vsel %vm2145_vm12, %v2132_v13, %v5700_v45  ;;  %v2159_v61 = vsel %vm2147_vm13, %v5500_v49, %v5526_v16 }
 0x2ac   :  { %v2540_v55 = vor.u32 4788187, %v2539_v5  ;;  %v2155_v37 = vsel %vm2147_vm13, %v2138_v48, %v5520_v10  ;;  %v2160_v18 = vsel %vm2146_vm14, %v2157_v27, %v2159_v61  ;;  %v5723_v29 = vshll.u32 %v2121_v34, 8 }
 0x2ad   :  { %v5727_v53 = vsel %vm2303_vm8, %v2299_v8, 1326507024  ;;  %v5729_v0 = vsub.s32 %v2676_v63, %v2679_v1  ;;  %v2164_v59 = vand.u32 65535, %v2160_v18  ;;  %v2165_v38 = vshrl.u32 %v2160_v18, 16 }
 0x2ae   :  { %v2541_v56 = vand.u32 2147483647, %v2540_v55  ;;  %v2543_v49 = vcvt.s32.f32 %v2536_v42  ;;  %vm2580_vm15 = vcmp.lt.s32.totalorder %v5494_v22, 0  ;;  %v2162_v16 = vand.u32 65535, %v5723_v29 }
 0x2af   :  { %vm2681_vm1 = vcmp.lt.s32.totalorder %v5729_v0, 0  ;;  %v2682_v10 = vsub.s32 0, %v5729_v0  ;;  %v2156_v32 = vsel %vm2146_vm14, %v2153_v36, %v2155_v37  ;;  %v2163_v39 = vshrl.u32 %v5723_v29, 16 }
 0x2b0   :  { %v2544_v3 = vmul.f32 %v2543_v49, %v2541_v56  ;;  %v5738_v63 = vand.u32 3, %v2567_v33  ;;  %v2129_v7 = vshrl.u32 %v7713_v26, %v5461_v23  ;;  %v2167_v34 = vmul.u32 %v2165_v38, %v2162_v16 }
 0x2b1   :  { %v2672_v4 = vadd.s32 %v5668_v6, %v5666_v31  ;;  %v2683_v40 = vsel %vm2681_vm1, %v2682_v10, %v5729_v0  ;;  %v2166_v62 = vmul.u32 %v2164_v59, %v2162_v16  ;;  %v5745_v8 = vmul.u32 %v2164_v59, %v2163_v39 }
 0x2b2   :  { %v2545_v27 = vxor.u32 2147483648, %v2544_v3  ;;  %v2684_v42 = vclz %v2683_v40  ;;  %v2170_v5 = vshll.u32 %v2167_v34, 16  ;;  %v2187_v1 = vshrl.u32 %v2156_v32, 16 }
 0x2b3   :  { %v2702_v36 = vsub.s32 4, %v2678_v17  ;;  %v5749_v33 = vsel %vm2145_vm12, %v2129_v7, %v2132_v13  ;;  %v2150_v23 = vsel %vm2148_vm9, %v2138_v48, 2102212464  ;;  %v2186_v61 = vand.u32 65535, %v2156_v32 }
 0x2b4   :  { %v2546_v31 = vsel %vm2425_vm0, %v2545_v27, %v2544_v3  ;;  %v4181_v6 = vadd.s32 4294967294, %v2684_v42  ;;  %v2169_v55 = vmul.u32 %v2165_v38, %v2163_v39  ;;  %vm2174_vm2 = vc.u32 %v2166_v62, %v2170_v5 }
 0x2b5   :  { %v5758_v37 = vsel %vm5656_vm3, %v5426_v35, %v2546_v31  ;;  %v7720_v18 = vand.u32 2147483647, %v5494_v22  ;;  %v2172_v48 = vshll.u32 %v5745_v8, 16  ;;  %v2175_v59 = vsel %vm2174_vm2, 1, %v7712_v50 }
 0x2b6   :  { %v2176_v56 = vadd.s32 %v2170_v5, %v2166_v62  ;;  %v2551_v38 = vmul.f32 %v5758_v37, %v5758_v37  ;;  %vm4182_vm9 = vcmp.lt.s32.totalorder %v4181_v6, 0  ;;  %v2177_v49 = vadd.s32 %v2175_v59, %v2169_v55 }
 0x2b7   :  { %vm5762_vm4 = vcmp.le.f32.partialorder %v7720_v18, 0.7853982  ;;  %v2189_v10 = vmul.u32 %v2187_v1, %v2162_v16  ;;  %v2687_v51 = vsel %vm4182_vm9, 0, %v4181_v6  ;;  %v2703_v32 = vsel %vm2580_vm15, %v2702_v36, %v2678_v17 }
 0x2b8   :  { %vm2178_vm0 = vc.u32 %v2176_v56, %v2172_v48  ;;  %v2188_v3 = vmul.u32 %v2186_v61, %v2162_v16  ;;  %v2552_v7 = vmul.f32 -0.001358992, %v2551_v38  ;;  %v2559_v40 = vmul.f32 -0.00019511016, %v2551_v38 }
 0x2b9   :  { %v2688_v27 = vsub.s32 32, %v2687_v51  ;;  %v2190_v42 = vmul.u32 %v2186_v61, %v2163_v39  ;;  %v2689_v31 = vshll.u32 %v5729_v0, %v2687_v51  ;;  %v2692_v18 = vsub.s32 4294967266, %v2687_v51 }
 0x2ba   :  { %v2179_v62 = vsel %vm2178_vm0, 1, %v7712_v50  ;;  %v2192_v5 = vshll.u32 %v2189_v10, 16  ;;  %v2553_v54 = vadd.f32 0.041655596, %v2552_v7  ;;  %v2560_v30 = vadd.f32 0.008332121, %v2559_v40 }
 0x2bb   :  { %v2690_v55 = vshrl.u32 %v2672_v4, %v2688_v27  ;;  %v2181_v59 = vadd.s32 %v2179_v62, %v2177_v49  ;;  %v2693_v6 = vadd.s32 127, %v2692_v18  ;;  %v2171_v20 = vshrl.u32 %v2167_v34, 16 }
 0x2bc   :  { %v2191_v15 = vmul.u32 %v2187_v1, %v2163_v39  ;;  %vm2196_vm3 = vc.u32 %v2188_v3, %v2192_v5  ;;  %v2554_v17 = vmul.f32 %v2553_v54, %v2551_v38  ;;  %v2561_v16 = vmul.f32 %v2560_v30, %v2551_v38 }
 0x2bd   :  { %v2691_v36 = vor.u32 %v2690_v55, %v2689_v31  ;;  %v2194_v48 = vshll.u32 %v2190_v42, 16  ;;  %v2694_v56 = vshll.u32 %v2693_v6, 23  ;;  %v2182_v61 = vadd.s32 %v2181_v59, %v2171_v20 }
 0x2be   :  { %v2197_v0 = vsel %vm2196_vm3, 1, %v7712_v50  ;;  %v2198_v51 = vadd.s32 %v2192_v5, %v2188_v3  ;;  %v2555_v24 = vadd.f32 -0.4999988, %v2554_v17  ;;  %v2562_v12 = vadd.f32 -0.16666654, %v2561_v16 }
 0x2bf   :  { %v2705_v7 = vsel %vm5762_vm4, 0, %v2703_v32  ;;  %v2151_v34 = vsel %vm2147_vm13, %v5700_v45, %v2150_v23  ;;  %vm2570_vm5 = vcmp.eq.s32.totalorder %v5738_v63, 0  ;;  %v2695_v54 = vor.u32 4788187, %v2694_v56 }
 0x2c0   :  { %v2173_v30 = vshrl.u32 %v5745_v8, 16  ;;  %v2199_v39 = vadd.s32 %v2197_v0, %v2191_v15  ;;  %vm2200_vm11 = vc.u32 %v2198_v51, %v2194_v48  ;;  %v2556_v20 = vmul.f32 %v2555_v24, %v2551_v38 }
 0x2c1   :  { %v2563_v4 = vmul.f32 %v2562_v12, %v2551_v38  ;;  %vm2569_vm12 = vcmp.lt.s32.totalorder %v5738_v63, 2  ;;  %v2193_v1 = vshrl.u32 %v2189_v10, 16  ;;  %v2201_v49 = vsel %vm2200_vm11, 1, %v7712_v50 }
 0x2c2   :  { %vm2566_vm1 = vweird.f32 %v5426_v35  ;;  %v2696_v32 = vand.u32 2147483647, %v2695_v54  ;;  %v2698_v3 = vcvt.s32.f32 %v2691_v36  ;;  %v5785_v40 = vadd.s32 %v2182_v61, %v2173_v30 }
 0x2c3   :  { %v2203_v45 = vadd.s32 %v2201_v49, %v2199_v39  ;;  %v2557_v23 = vadd.f32 1.0, %v2556_v20  ;;  %v2564_v27 = vadd.f32 1.0, %v2563_v4  ;;  %v2152_v15 = vsel %vm2146_vm14, %v5749_v33, %v2151_v34 }
 0x2c4   :  { %v2268_v12 = vand.u32 2147483647, %v5491_v9  ;;  %v2699_v24 = vmul.f32 %v2698_v3, %v2696_v32  ;;  %v2195_v8 = vshrl.u32 %v2190_v42, 16  ;;  %v5791_v38 = vadd.s32 %v2198_v51, %v2194_v48 }
 0x2c5   :  { %v2204_v10 = vadd.s32 %v2203_v45, %v2193_v1  ;;  %v2565_v31 = vmul.f32 %v2564_v27, %v5758_v37  ;;  %vm2573_vm13 = vcmp.eq.s32.totalorder %v5738_v63, 2  ;;  %v2574_v18 = vxor.u32 2147483648, %v2557_v23 }
 0x2c6   :  { %v2722_v62 = vadd.s32 3, %v2705_v7  ;;  %v2700_v5 = vxor.u32 2147483648, %v2699_v24  ;;  %v2206_v59 = vmul.u32 %v5723_v29, %v2152_v15  ;;  %vm2208_vm14 = vc.u32 %v5785_v40, %v5791_v38 }
 0x2c7   :  { %v2205_v55 = vadd.s32 %v2204_v10, %v2195_v8  ;;  %v2571_v58 = vxor.u32 2147483648, %v2565_v31  ;;  %v2275_v33 = vand.u32 8388607, %v2268_v12  ;;  %v2286_v42 = vshrl.u32 %v7714_v46, %v5650_v57 }
 0x2c8   :  { %v2289_v37 = vshrl.u32 %v7715_v25, %v5650_v57  ;;  %v2575_v6 = vsel %vm2573_vm13, %v2574_v18, %v2565_v31  ;;  %v2701_v17 = vsel %vm2580_vm15, %v2700_v5, %v2699_v24  ;;  %v2288_v29 = vshll.u32 %v7714_v46, %v5632_v14 }
 0x2c9   :  { %v2209_v16 = vadd.s32 1, %v2205_v55  ;;  %v2572_v36 = vsel %vm2570_vm5, %v2557_v23, %v2571_v58  ;;  %v2704_v48 = vsel %vm5762_vm4, %v5494_v22, %v2701_v17  ;;  %v2291_v56 = vshll.u32 %v7715_v25, %v5632_v14 }
 0x2ca   :  { %v2292_v61 = vshrl.u32 %v7679_v52, %v5650_v57  ;;  %v2576_v0 = vsel %vm2569_vm12, %v2572_v36, %v2575_v6  ;;  %v2706_v51 = vmul.f32 %v2704_v48, %v2704_v48  ;;  %v2285_v34 = vshll.u32 %v7713_v26, %v5632_v14 }
 0x2cb   :  { %v2210_v7 = vsel %vm2208_vm14, %v2209_v16, %v2205_v55  ;;  %v2577_v54 = vsel %vm2566_vm1, nan, %v2576_v0  ;;  %v2290_v13 = vor.u32 %v2289_v37, %v2288_v29  ;;  %v1985_v20 = vshrl.u32 %v7680_v47, %v5559_v60 }
 0x2cc   :  { %v2211_v30 = vadd.s32 %v2210_v7, %v2206_v59  ;;  %v2293_v39 = vor.u32 %v2292_v61, %v2291_v56  ;;  %2777 = vmatpush.msra.mxu2 %v2577_v54  ;;  %v2707_v4 = vmul.f32 -0.001358992, %v2706_v51  ;;  %v2714_v1 = vmul.f32 -0.00019511016, %v2706_v51 }
 0x2cd   :  { %v2276_v49 = vor.u32 8388608, %v2275_v33  ;;  %v2309_v63 = vsel %vm2303_vm8, %v5704_v19, 920167782  ;;  %v5828_v32 = vand.u32 3, %v2722_v62  ;;  %v2287_v3 = vor.u32 %v2286_v42, %v2285_v34 }
 0x2ce   :  { %v2212_v14 = vadd.s32 536870912, %v2211_v30  ;;  %v2708_v35 = vadd.f32 0.041655596, %v2707_v4  ;;  %v2715_v45 = vadd.f32 0.008332121, %v2714_v1  ;;  %vm2300_vm15 = vcmp.lt.s32.totalorder %v5630_v43, 1 }
 0x2cf   :  { %vm2302_vm2 = vcmp.lt.s32.totalorder %v5630_v43, 3  ;;  %vm2301_vm4 = vcmp.lt.s32.totalorder %v5630_v43, 2  ;;  %v2312_v27 = vsel %vm2300_vm15, %v2290_v13, %v2293_v39  ;;  %v5843_v31 = vshll.u32 %v2276_v49, 8 }
 0x2d0   :  { %v5832_v23 = vshrl.u32 %v2212_v14, 30  ;;  %v2314_v15 = vsel %vm2302_vm2, %v5704_v19, %v5727_v53  ;;  %v2709_v24 = vmul.f32 %v2708_v35, %v2706_v51  ;;  %v2716_v8 = vmul.f32 %v2715_v45, %v2706_v51 }
 0x2d1   :  { %v2315_v10 = vsel %vm2301_vm4, %v2312_v27, %v2314_v15  ;;  %v2308_v62 = vsel %vm2300_vm15, %v2287_v3, %v2290_v13  ;;  %v2310_v5 = vsel %vm2302_vm2, %v2293_v39, %v2309_v63  ;;  %v5851_v59 = vor.u32 %v1985_v20, %v5565_v41 }
 0x2d2   :  { %v2214_v18 = vshll.u32 %v5832_v23, 30  ;;  %v2320_v55 = vshrl.u32 %v2315_v10, 16  ;;  %v5855_v19 = vshrl.u32 %v7681_v21, %v5559_v60  ;;  %v2710_v53 = vadd.f32 -0.4999988, %v2709_v24 }
 0x2d3   :  { %v2717_v58 = vadd.f32 -0.16666654, %v2716_v8  ;;  %vm2725_vm9 = vcmp.eq.s32.totalorder %v5828_v32, 0  ;;  %v2317_v42 = vand.u32 65535, %v5843_v31  ;;  %v2319_v37 = vand.u32 65535, %v2315_v10 }
 0x2d4   :  { %v5858_v33 = vsub.s32 %v2211_v30, %v2214_v18  ;;  %v2711_v6 = vmul.f32 %v2710_v53, %v2706_v51  ;;  %vm2724_vm0 = vcmp.lt.s32.totalorder %v5828_v32, 2  ;;  %vm2728_vm3 = vcmp.eq.s32.totalorder %v5828_v32, 2 }
 0x2d5   :  { %v2718_v17 = vmul.f32 %v2717_v58, %v2706_v51  ;;  %v2311_v41 = vsel %vm2301_vm4, %v2308_v62, %v2310_v5  ;;  %vm2721_vm5 = vweird.f32 %v5494_v22  ;;  %v2318_v29 = vshrl.u32 %v5843_v31, 16 }
 0x2d6   :  { %vm2216_vm11 = vcmp.lt.s32.totalorder %v5858_v33, 0  ;;  %v2217_v16 = vsub.s32 0, %v5858_v33  ;;  %v2322_v36 = vmul.u32 %v2320_v55, %v2317_v42  ;;  %v2712_v56 = vadd.f32 1.0, %v2711_v6 }
 0x2d7   :  { %v2719_v61 = vadd.f32 1.0, %v2718_v17  ;;  %v2284_v0 = vshrl.u32 %v7713_v26, %v5650_v57  ;;  %v2305_v51 = vsel %vm2303_vm8, %v2293_v39, 2102212464  ;;  %v5874_v34 = vmul.u32 %v2319_v37, %v2318_v29 }
 0x2d8   :  { %v2218_v7 = vsel %vm2216_vm11, %v2217_v16, %v5858_v33  ;;  %v2325_v54 = vshll.u32 %v2322_v36, 16  ;;  %v2342_v30 = vshrl.u32 %v2311_v41, 16  ;;  %v2729_v4 = vxor.u32 2147483648, %v2712_v56 }
 0x2d9   :  { %v2720_v20 = vmul.f32 %v2719_v61, %v2704_v48  ;;  %v2219_v1 = vclz %v2218_v7  ;;  %v2321_v49 = vmul.u32 %v2319_v37, %v2317_v42  ;;  %v2207_v63 = vadd.s32 %v5791_v38, %v5785_v40 }
 0x2da   :  { %v2304_v14 = vsel %vm2300_vm15, %v2284_v0, %v2287_v3  ;;  %v2306_v57 = vsel %vm2302_vm2, %v2290_v13, %v2305_v51  ;;  %v2341_v39 = vand.u32 65535, %v2311_v41  ;;  %v2324_v27 = vmul.u32 %v2320_v55, %v2318_v29 }
 0x2db   :  { %v2726_v35 = vxor.u32 2147483648, %v2720_v20  ;;  %v4172_v45 = vadd.s32 4294967294, %v2219_v1  ;;  %vm2329_vm8 = vc.u32 %v2321_v49, %v2325_v54  ;;  %v2327_v15 = vshll.u32 %v5874_v34, 16 }
 0x2dc   :  { %v2330_v48 = vsel %vm2329_vm8, 1, %v7712_v50  ;;  %v2331_v24 = vadd.s32 %v2325_v54, %v2321_v49  ;;  %v2344_v8 = vmul.u32 %v2342_v30, %v2317_v42  ;;  %v2730_v38 = vsel %vm2728_vm3, %v2729_v4, %v2720_v20 }
 0x2dd   :  { %v2727_v40 = vsel %vm2725_vm9, %v2712_v56, %v2726_v35  ;;  %vm2115_vm12 = vcmp.lt.s32.totalorder %v5417_v44, 0  ;;  %vm4173_vm1 = vcmp.lt.s32.totalorder %v4172_v45, 0  ;;  %v2332_v13 = vadd.s32 %v2330_v48, %v2324_v27 }
 0x2de   :  { %v2731_v3 = vsel %vm2724_vm0, %v2727_v40, %v2730_v38  ;;  %v2222_v10 = vsel %vm4173_vm1, 0, %v4172_v45  ;;  %vm2333_vm13 = vc.u32 %v2331_v24, %v2327_v15  ;;  %v2345_v18 = vmul.u32 %v2341_v39, %v2318_v29 }
 0x2df   :  { %v2732_v62 = vsel %vm2721_vm5, nan, %v2731_v3  ;;  %v2223_v5 = vsub.s32 32, %v2222_v10  ;;  %v2227_v55 = vsub.s32 4294967266, %v2222_v10  ;;  %v2237_v53 = vsub.s32 4, %v5832_v23 }
 0x2e0   :  { %2806 = vmatpush.msra.mxu3 %v2732_v62  ;;  %v2326_v58 = vshrl.u32 %v2322_v36, 16  ;;  %v2334_v37 = vsel %vm2333_vm13, 1, %v7712_v50  ;;  %v2343_v6 = vmul.u32 %v2341_v39, %v2317_v42  ;;  %v2347_v17 = vshll.u32 %v2344_v8, 16  ;;  %v7731_v42 = vld [vmem:[#allocation15_spill] sm:$0xff] }
 0x2e1   :  { %v2224_v41 = vshll.u32 %v5858_v33, %v2222_v10  ;;  %v2225_v32 = vshrl.u32 %v2207_v63, %v2223_v5  ;;  %v2228_v16 = vadd.s32 127, %v2227_v55  ;;  %v2336_v56 = vadd.s32 %v2334_v37, %v2332_v13  ;;  %v7727_v5 = vld [vmem:[#allocation20_spill] sm:$0xff] }
 0x2e2   :  { %vm1993_vm14 = vcmp.lt.s32.totalorder %v5556_v28, 4  ;;  %v2346_v61 = vmul.u32 %v2342_v30, %v2318_v29  ;;  %v2349_v22 = vshll.u32 %v2345_v18, 16  ;;  %vm2351_vm15 = vc.u32 %v2343_v6, %v2347_v17 }
 0x2e3   :  { %v2353_v0 = vadd.s32 %v2347_v17, %v2343_v6  ;;  %v2226_v51 = vor.u32 %v2225_v32, %v2224_v41  ;;  %v2229_v7 = vshll.u32 %v2228_v16, 23  ;;  %v2337_v54 = vadd.s32 %v2336_v56, %v2326_v58 }
 0x2e4   :  { %v2352_v36 = vsel %vm2351_vm15, 1, %v7712_v50  ;;  %v7723_v20 = vand.u32 2147483647, %v5417_v44  ;;  %v1803_v4 = vand.u32 2147483647, %v5411_v2  ;;  %v2307_v29 = vsel %vm2301_vm4, %v2304_v14, %v2306_v57  ;;  %v7726_v57 = vld [vmem:[#allocation8_spill] sm:$0xff] }
 0x2e5   :  { %v2354_v33 = vadd.s32 %v2352_v36, %v2346_v61  ;;  %vm2355_vm9 = vc.u32 %v2353_v0, %v2349_v22  ;;  %v2230_v1 = vor.u32 4788187, %v2229_v7  ;;  %v2328_v30 = vshrl.u32 %v5874_v34, 16 }
 0x2e6   :  { %vm5900_vm2 = vcmp.le.f32.partialorder %v7723_v20, 0.7853982  ;;  %v2356_v49 = vsel %vm2355_vm9, 1, %v7712_v50  ;;  %v2238_v63 = vsel %vm2115_vm12, %v2237_v53, %v5832_v23  ;;  %v2348_v39 = vshrl.u32 %v2344_v8, 16 }
 0x2e7   :  { %v2358_v35 = vadd.s32 %v2356_v49, %v2354_v33  ;;  %v1810_v45 = vand.u32 8388607, %v1803_v4  ;;  %v2231_v27 = vand.u32 2147483647, %v2230_v1  ;;  %v2233_v15 = vcvt.s32.f32 %v2226_v51 }
 0x2e8   :  { %v5914_v48 = vadd.s32 %v2337_v54, %v2328_v30  ;;  %v2350_v24 = vshrl.u32 %v2345_v18, 16  ;;  %v5916_v43 = vadd.s32 %v2353_v0, %v2349_v22  ;;  %v1820_v34 = vshll.u32 %v7713_v26, %v5431_v11  ;;  %v7729_v22 = vld [vmem:[#allocation16_spill] sm:$0xff]  ;;  %v7730_v0 = vld [vmem:[#allocation11_spill] sm:$0xff] }
 0x2e9   :  { %v2359_v14 = vadd.s32 %v2358_v35, %v2348_v39  ;;  %v1821_v40 = vshrl.u32 %v7714_v46, %v7726_v57  ;;  %v2234_v23 = vmul.f32 %v2233_v15, %v2231_v27  ;;  %v1823_v8 = vshll.u32 %v7714_v46, %v5431_v11 }
 0x2ea   :  { %v1824_v38 = vshrl.u32 %v7715_v25, %v7726_v57  ;;  %v1826_v13 = vshll.u32 %v7715_v25, %v5431_v11  ;;  %v2240_v3 = vsel %vm5900_vm2, 0, %v2238_v63  ;;  %v1811_v18 = vor.u32 8388608, %v1810_v45 }
 0x2eb   :  { %v2360_v10 = vadd.s32 %v2359_v14, %v2350_v24  ;;  %v1827_v62 = vshrl.u32 %v7679_v52, %v7726_v57  ;;  %v1989_v55 = vor.u32 %v5855_v19, %v7727_v5  ;;  %v5937_v53 = vsel %vm1993_vm14, %v5851_v59, 920167782  ;;  %v7728_v19 = vld [vmem:[#allocation10_spill] sm:$0xff] }
 0x2ec   :  { %v2235_v58 = vxor.u32 2147483648, %v2234_v23  ;;  %vm2363_vm4 = vc.u32 %v5914_v48, %v5916_v43  ;;  %v1822_v37 = vor.u32 %v1821_v40, %v1820_v34  ;;  %v1825_v6 = vor.u32 %v1824_v38, %v1823_v8 }
 0x2ed   :  { %v2364_v11 = vadd.s32 1, %v2360_v10  ;;  %v1828_v17 = vor.u32 %v1827_v62, %v1826_v13  ;;  %v2257_v32 = vadd.s32 3, %v2240_v3  ;;  %v2361_v16 = vmul.u32 %v5843_v31, %v2307_v29 }
 0x2ee   :  { %v2236_v41 = vsel %vm2115_vm12, %v2235_v58, %v2234_v23  ;;  %vm1837_vm0 = vcmp.lt.s32.totalorder %v7728_v19, 3  ;;  %v5954_v7 = vshll.u32 %v1811_v18, 8  ;;  %v1819_v31 = vshrl.u32 %v7713_v26, %v7726_v57 }
 0x2ef   :  { %v5948_v56 = vsel %vm5900_vm2, %v5417_v44, %v2236_v41  ;;  %v2365_v61 = vsel %vm2363_vm4, %v2364_v11, %v2360_v10  ;;  %v1849_v51 = vsel %vm1837_vm0, %v7730_v0, %v7729_v22  ;;  %vm1835_vm3 = vcmp.lt.s32.totalorder %v7728_v19, 1 }
 0x2f0   :  { %v2241_v54 = vmul.f32 %v5948_v56, %v5948_v56  ;;  %v2366_v36 = vadd.s32 %v2365_v61, %v2361_v16  ;;  %vm1836_vm5 = vcmp.lt.s32.totalorder %v7728_v19, 2  ;;  %v1843_v20 = vsel %vm1835_vm3, %v1822_v37, %v1825_v6 }
 0x2f1   :  { %v1845_v33 = vsel %vm1837_vm0, %v1828_v17, %v7731_v42  ;;  %v1847_v1 = vsel %vm1835_vm3, %v1825_v6, %v1828_v17  ;;  %v1852_v39 = vand.u32 65535, %v5954_v7  ;;  %v5973_v35 = vshrl.u32 %v5954_v7, 16 }
 0x2f2   :  { %v2242_v29 = vmul.f32 -0.001358992, %v2241_v54  ;;  %v2249_v30 = vmul.f32 -0.00019511016, %v2241_v54  ;;  %v2367_v49 = vadd.s32 536870912, %v2366_v36  ;;  %v1850_v63 = vsel %vm1836_vm5, %v1847_v1, %v1849_v51 }
 0x2f3   :  { %v1854_v45 = vand.u32 65535, %v1850_v63  ;;  %v1855_v27 = vshrl.u32 %v1850_v63, 16  ;;  %v1846_v34 = vsel %vm1836_vm5, %v1843_v20, %v1845_v33  ;;  %v5979_v57 = vsel %vm1993_vm14, %v1989_v55, 1326507024 }
 0x2f4   :  { %v2243_v15 = vadd.f32 0.041655596, %v2242_v29  ;;  %v2250_v24 = vadd.f32 0.008332121, %v2249_v30  ;;  %v2368_v14 = vshrl.u32 %v2367_v49, 30  ;;  %v2258_v3 = vand.u32 3, %v2257_v32 }
 0x2f5   :  { %v1840_v40 = vsel %vm1838_vm7, %v1828_v17, 2102212464  ;;  %v1857_v23 = vmul.u32 %v1855_v27, %v1852_v39  ;;  %v5984_v8 = vmul.u32 %v1854_v45, %v5973_v35  ;;  %v1839_v18 = vsel %vm1835_vm3, %v1819_v31, %v1822_v37 }
 0x2f6   :  { %v2244_v38 = vmul.f32 %v2243_v15, %v2241_v54  ;;  %v2251_v13 = vmul.f32 %v2250_v24, %v2241_v54  ;;  %v2369_v10 = vshll.u32 %v2368_v14, 30  ;;  %v1856_v62 = vmul.u32 %v1854_v45, %v1852_v39 }
 0x2f7   :  { %v1860_v5 = vshll.u32 %v1857_v23, 16  ;;  %v1877_v58 = vshrl.u32 %v1846_v34, 16  ;;  %vm2270_vm11 = vcmp.lt.s32.totalorder %v5491_v9, 0  ;;  %v1841_v17 = vsel %vm1837_vm0, %v1825_v6, %v1840_v40 }
 0x2f8   :  { %v2245_v11 = vadd.f32 -0.4999988, %v2244_v38  ;;  %v2252_v55 = vadd.f32 -0.16666654, %v2251_v13  ;;  %v5989_v41 = vsub.s32 %v2366_v36, %v2369_v10  ;;  %v1859_v16 = vmul.u32 %v1855_v27, %v5973_v35 }
 0x2f9   :  { %v1862_v32 = vshll.u32 %v5984_v8, 16  ;;  %vm1864_vm7 = vc.u32 %v1856_v62, %v1860_v5  ;;  %v1866_v61 = vadd.s32 %v1860_v5, %v1856_v62  ;;  %vm2259_vm8 = vcmp.lt.s32.totalorder %v2258_v3, 2 }
 0x2fa   :  { %v2246_v22 = vmul.f32 %v2245_v11, %v2241_v54  ;;  %v2253_v37 = vmul.f32 %v2252_v55, %v2241_v54  ;;  %vm2371_vm12 = vcmp.lt.s32.totalorder %v5989_v41, 0  ;;  %v2372_v0 = vsub.s32 0, %v5989_v41 }
 0x2fb   :  { %vm2256_vm1 = vweird.f32 %v5417_v44  ;;  %v1865_v51 = vsel %vm1864_vm7, 1, %v7712_v50  ;;  %vm1868_vm13 = vc.u32 %v1866_v61, %v1862_v32  ;;  %v1876_v36 = vand.u32 65535, %v1846_v34 }
 0x2fc   :  { %v1879_v6 = vmul.u32 %v1877_v58, %v1852_v39  ;;  %v2247_v31 = vadd.f32 1.0, %v2246_v22  ;;  %v2254_v20 = vadd.f32 1.0, %v2253_v37  ;;  %v2373_v42 = vsel %vm2371_vm12, %v2372_v0, %v5989_v41 }
 0x2fd   :  { %v1867_v33 = vadd.s32 %v1865_v51, %v1859_v16  ;;  %vm2260_vm15 = vcmp.eq.s32.totalorder %v2258_v3, 0  ;;  %vm6002_vm2 = vcmp.le.f32.partialorder %v2268_v12, 0.7853982  ;;  %v2374_v1 = vclz %v2373_v42  ;;  %v7734_v16 = vld [vmem:[#allocation6_spill] sm:$0xff] }
 0x2fe   :  { %v2392_v29 = vsub.s32 4, %v2368_v14  ;;  %v1869_v30 = vsel %vm1868_vm13, 1, %v7712_v50  ;;  %v2255_v49 = vmul.f32 %v2254_v20, %v5948_v56  ;;  %vm2263_vm9 = vcmp.eq.s32.totalorder %v2258_v3, 2 }
 0x2ff   :  { %v2264_v63 = vxor.u32 2147483648, %v2247_v31  ;;  %v1871_v45 = vadd.s32 %v1869_v30, %v1867_v33  ;;  %v2362_v27 = vadd.s32 %v5916_v43, %v5914_v48  ;;  %v4175_v15 = vadd.s32 4294967294, %v2374_v1 }
 0x300   :  { %v6012_v24 = vsel %vm1836_vm5, %v1839_v18, %v1841_v17  ;;  %v1880_v12 = vmul.u32 %v1876_v36, %v5973_v35  ;;  %v2261_v34 = vxor.u32 2147483648, %v2255_v49  ;;  %v1861_v40 = vshrl.u32 %v1857_v23, 16 }
 0x301   :  { %v1878_v38 = vmul.u32 %v1876_v36, %v1852_v39  ;;  %v1882_v13 = vshll.u32 %v1879_v6, 16  ;;  %v2265_v10 = vsel %vm2263_vm9, %v2264_v63, %v2255_v49  ;;  %vm4176_vm4 = vcmp.lt.s32.totalorder %v4175_v15, 0 }
 0x302   :  { %v2393_v56 = vsel %vm2270_vm11, %v2392_v29, %v2368_v14  ;;  %v1881_v62 = vmul.u32 %v1877_v58, %v5973_v35  ;;  %v2262_v48 = vsel %vm2260_vm15, %v2247_v31, %v2261_v34  ;;  %v2377_v43 = vsel %vm4176_vm4, 0, %v4175_v15  ;;  %v7735_v29 = vld [vmem:[#allocation19_spill] sm:$0xff] }
 0x303   :  { %v1872_v5 = vadd.s32 %v1871_v45, %v1861_v40  ;;  %vm1886_vm0 = vc.u32 %v1878_v38, %v1882_v13  ;;  %v2266_v19 = vsel %vm2259_vm8, %v2262_v48, %v2265_v10  ;;  %v2378_v18 = vsub.s32 32, %v2377_v43 }
 0x304   :  { %v2382_v11 = vsub.s32 4294967266, %v2377_v43  ;;  %v1884_v55 = vshll.u32 %v1880_v12, 16  ;;  %v2267_v39 = vsel %vm2256_vm1, nan, %v2266_v19  ;;  %v1887_v23 = vsel %vm1886_vm0, 1, %v7712_v50 }
 0x305   :  { %v1888_v17 = vadd.s32 %v1882_v13, %v1878_v38  ;;  %v1958_v14 = vand.u32 2147483647, %v7734_v16  ;;  %2778 = vmatpush.msra.mxu2 %v2267_v39  ;;  %v2379_v35 = vshll.u32 %v5989_v41, %v2377_v43  ;;  %v2380_v58 = vshrl.u32 %v2362_v27, %v2378_v18 }
 0x306   :  { %v2383_v32 = vadd.s32 127, %v2382_v11  ;;  %v1889_v61 = vadd.s32 %v1887_v23, %v1881_v62  ;;  %v2395_v3 = vsel %vm6002_vm2, 0, %v2393_v56  ;;  %v1863_v22 = vshrl.u32 %v5984_v8, 16 }
 0x307   :  { %vm1890_vm3 = vc.u32 %v1888_v17, %v1884_v55  ;;  %v1965_v44 = vand.u32 8388607, %v1958_v14  ;;  %v2381_v37 = vor.u32 %v2380_v58, %v2379_v35  ;;  %v1883_v51 = vshrl.u32 %v1879_v6, 16 }
 0x308   :  { %v2384_v0 = vshll.u32 %v2383_v32, 23  ;;  %v1891_v36 = vsel %vm1890_vm3, 1, %v7712_v50  ;;  %v1873_v31 = vadd.s32 %v1872_v5, %v1863_v22  ;;  %v1885_v20 = vshrl.u32 %v1880_v12, 16 }
 0x309   :  { %v1892_v41 = vadd.s32 %v1888_v17, %v1884_v55  ;;  %v1893_v42 = vadd.s32 %v1891_v36, %v1889_v61  ;;  %v1966_v1 = vor.u32 8388608, %v1965_v44  ;;  %v1975_v30 = vshll.u32 %v7713_v26, %v7735_v29 }
 0x30a   :  { %v2385_v33 = vor.u32 4788187, %v2384_v0  ;;  %v1976_v8 = vshrl.u32 %v7714_v46, %v5559_v60  ;;  %v2388_v49 = vcvt.s32.f32 %v2381_v37  ;;  %v1978_v45 = vshll.u32 %v7714_v46, %v7735_v29 }
 0x30b   :  { %v1894_v63 = vadd.s32 %v1893_v42, %v1883_v51  ;;  %v1979_v6 = vshrl.u32 %v7715_v25, %v5559_v60  ;;  %v1981_v12 = vshll.u32 %v7715_v25, %v7735_v29  ;;  %v1982_v34 = vshrl.u32 %v7679_v52, %v5559_v60 }
 0x30c   :  { %v2386_v27 = vand.u32 2147483647, %v2385_v33  ;;  %v1977_v15 = vor.u32 %v1976_v8, %v1975_v30  ;;  %vm1898_vm5 = vc.u32 %v1873_v31, %v1892_v41  ;;  %vm1992_vm7 = vcmp.lt.s32.totalorder %v5556_v28, 3 }
 0x30d   :  { %v1895_v40 = vadd.s32 %v1894_v63, %v1885_v20  ;;  %v6043_v38 = vor.u32 %v1979_v6, %v1978_v45  ;;  %v1983_v10 = vor.u32 %v1982_v34, %v1981_v12  ;;  %vm1990_vm8 = vcmp.lt.s32.totalorder %v5556_v28, 1 }
 0x30e   :  { %v2389_v13 = vmul.f32 %v2388_v49, %v2386_v27  ;;  %v2004_v56 = vsel %vm1992_vm7, %v5851_v59, %v5979_v57  ;;  %v1896_v62 = vmul.u32 %v5954_v7, %v6012_v24  ;;  %v6056_v5 = vshll.u32 %v1966_v1, 8  ;;  %v7736_v57 = vld [vmem:[#allocation14_spill] sm:$0xff] }
 0x30f   :  { %v1899_v48 = vadd.s32 1, %v1895_v40  ;;  %v1998_v43 = vsel %vm1990_vm8, %v1977_v15, %v6043_v38  ;;  %vm1991_vm12 = vcmp.lt.s32.totalorder %v5556_v28, 2  ;;  %v2000_v18 = vsel %vm1992_vm7, %v1983_v10, %v5937_v53 }
 0x310   :  { %v2390_v19 = vxor.u32 2147483648, %v2389_v13  ;;  %v2002_v59 = vsel %vm1990_vm8, %v6043_v38, %v1983_v10  ;;  %v6067_v7 = vshll.u32 %v7679_v52, %v7736_v57  ;;  %v2412_v24 = vadd.s32 3, %v2395_v3  ;;  %v7737_v3 = vld [vmem:[#allocation18_spill] sm:$0xff] }
 0x311   :  { %v1900_v11 = vsel %vm1898_vm5, %v1899_v48, %v1895_v40  ;;  %v2005_v55 = vsel %vm1991_vm12, %v2002_v59, %v2004_v56  ;;  %v6076_v53 = vsel %vm1991_vm12, %v1998_v43, %v2000_v18  ;;  %v2007_v17 = vand.u32 65535, %v6056_v5 }
 0x312   :  { %v2391_v39 = vsel %vm2270_vm11, %v2390_v19, %v2389_v13  ;;  %v1901_v23 = vadd.s32 %v1900_v11, %v1896_v62  ;;  %v6085_v58 = vshrl.u32 %v6056_v5, 16  ;;  %v2009_v32 = vand.u32 65535, %v2005_v55 }
 0x313   :  { %v6082_v35 = vsel %vm6002_vm2, %v5491_v9, %v2391_v39  ;;  %v2010_v61 = vshrl.u32 %v2005_v55, 16  ;;  %v6089_v22 = vshrl.u32 %v7680_v47, %v7737_v3  ;;  %v6093_v44 = vshll.u32 %v7680_v47, %v7736_v57 }
 0x314   :  { %v2396_v37 = vmul.f32 %v6082_v35, %v6082_v35  ;;  %v1902_v0 = vadd.s32 536870912, %v1901_v23  ;;  %v6099_v54 = vshrl.u32 %v7681_v21, %v7737_v3  ;;  %v6102_v36 = vmul.u32 %v2009_v32, %v6085_v58 }
 0x315   :  { %v2012_v51 = vmul.u32 %v2010_v61, %v2007_v17  ;;  %v2032_v20 = vshrl.u32 %v6076_v53, 16  ;;  %v1974_v29 = vshrl.u32 %v7713_v26, %v5559_v60  ;;  %v6107_v30 = vand.u32 3, %v2412_v24 }
 0x316   :  { %v2397_v42 = vmul.f32 -0.001358992, %v2396_v37  ;;  %v2404_v33 = vmul.f32 -0.00019511016, %v2396_v37  ;;  %v1903_v1 = vshrl.u32 %v1902_v0, 30  ;;  %v6109_v8 = vadd.s32 %v1892_v41, %v1873_v31 }
 0x317   :  { %v2011_v49 = vmul.u32 %v2009_v32, %v2007_v17  ;;  %v2015_v63 = vshll.u32 %v2012_v51, 16  ;;  %vm1805_vm11 = vcmp.lt.s32.totalorder %v5411_v2, 0  ;;  %v6114_v12 = vsel %vm1990_vm8, %v1974_v29, %v1977_v15 }
 0x318   :  { %v2398_v45 = vadd.f32 0.041655596, %v2397_v42  ;;  %v2405_v6 = vadd.f32 0.008332121, %v2404_v33  ;;  %v1904_v27 = vshll.u32 %v1903_v1, 30  ;;  %v2017_v34 = vshll.u32 %v6102_v36, 16 }
 0x319   :  { %vm2019_vm1 = vc.u32 %v2011_v49, %v2015_v63  ;;  %v2021_v40 = vadd.s32 %v2015_v63, %v2011_v49  ;;  %v6117_v60 = vmul.u32 %v2032_v20, %v2007_v17  ;;  %v2031_v56 = vand.u32 65535, %v6076_v53 }
 0x31a   :  { %v2399_v13 = vmul.f32 %v2398_v45, %v2396_v37  ;;  %v2406_v31 = vmul.f32 %v2405_v6, %v2396_v37  ;;  %v6119_v41 = vsub.s32 %v1901_v23, %v1904_v27  ;;  %vm2418_vm13 = vcmp.eq.s32.totalorder %v6107_v30, 2 }
 0x31b   :  { %v1995_v62 = vsel %vm1993_vm14, %v1983_v10, 2102212464  ;;  %v2014_v15 = vmul.u32 %v2010_v61, %v6085_v58  ;;  %v2020_v48 = vsel %vm2019_vm1, 1, %v7712_v50  ;;  %vm2023_vm15 = vc.u32 %v2021_v40, %v2017_v34 }
 0x31c   :  { %v2400_v43 = vadd.f32 -0.4999988, %v2399_v13  ;;  %v2407_v19 = vadd.f32 -0.16666654, %v2406_v31  ;;  %vm1906_vm2 = vcmp.lt.s32.totalorder %v6119_v41, 0  ;;  %v1907_v18 = vsub.s32 0, %v6119_v41 }
 0x31d   :  { %vm2415_vm9 = vcmp.eq.s32.totalorder %v6107_v30, 0  ;;  %v1927_v59 = vsub.s32 4, %v1903_v1  ;;  %v2022_v24 = vadd.s32 %v2020_v48, %v2014_v15  ;;  %v2024_v11 = vsel %vm2023_vm15, 1, %v7712_v50 }
 0x31e   :  { %v2037_v55 = vshll.u32 %v6117_v60, 16  ;;  %v2401_v10 = vmul.f32 %v2400_v43, %v2396_v37  ;;  %v2408_v39 = vmul.f32 %v2407_v19, %v2396_v37  ;;  %vm2414_vm14 = vcmp.lt.s32.totalorder %v6107_v30, 2  ;;  %v7738_v43 = vld [vmem:[#allocation3_spill] sm:$0xff] }
 0x31f   :  { %v1908_v23 = vsel %vm1906_vm2, %v1907_v18, %v6119_v41  ;;  %v2033_v53 = vmul.u32 %v2031_v56, %v2007_v17  ;;  %vm2411_vm4 = vweird.f32 %v5491_v9  ;;  %v1996_v61 = vsel %vm1992_vm7, %v6043_v38, %v1995_v62 }
 0x320   :  { %v1909_v32 = vclz %v1908_v23  ;;  %v2026_v0 = vadd.s32 %v2024_v11, %v2022_v24  ;;  %v2035_v42 = vmul.u32 %v2031_v56, %v6085_v58  ;;  %v2402_v33 = vadd.f32 1.0, %v2401_v10 }
 0x321   :  { %v2409_v29 = vadd.f32 1.0, %v2408_v39  ;;  %v2016_v49 = vshrl.u32 %v2012_v51, 16  ;;  %vm2041_vm0 = vc.u32 %v2033_v53, %v2037_v55  ;;  %v1928_v63 = vsel %vm1805_vm11, %v1927_v59, %v1903_v1 }
 0x322   :  { %v4166_v37 = vadd.s32 4294967294, %v1909_v32  ;;  %v2018_v17 = vshrl.u32 %v6102_v36, 16  ;;  %v2036_v45 = vmul.u32 %v2032_v20, %v6085_v58  ;;  %v2419_v27 = vxor.u32 2147483648, %v2402_v33  ;;  %v7741_v32 = vld [vmem:[#allocation5_spill] sm:$0xff] }
 0x323   :  { %v2410_v6 = vmul.f32 %v2409_v29, %v6082_v35  ;;  %v2027_v34 = vadd.s32 %v2026_v0, %v2016_v49  ;;  %v2042_v38 = vsel %vm2041_vm0, 1, %v7712_v50  ;;  %v2039_v40 = vshll.u32 %v2035_v42, 16  ;;  %v7742_v29 = vld [vmem:[#allocation7_spill] sm:$0xff] }
 0x324   :  { %vm4167_vm3 = vcmp.lt.s32.totalorder %v4166_v37, 0  ;;  %v2043_v13 = vadd.s32 %v2037_v55, %v2033_v53  ;;  %v2044_v31 = vadd.s32 %v2042_v38, %v2036_v45  ;;  %v2038_v1 = vshrl.u32 %v6117_v60, 16 }
 0x325   :  { %v2416_v51 = vxor.u32 2147483648, %v2410_v6  ;;  %v2420_v56 = vsel %vm2418_vm13, %v2419_v27, %v2410_v6  ;;  %v1912_v62 = vsel %vm4167_vm3, 0, %v4166_v37  ;;  %v6148_v58 = vadd.s32 %v2027_v34, %v2018_v17  ;;  %v7743_v34 = vld [vmem:[#allocation9_spill] sm:$0xff] }
 0x326   :  { %v1913_v36 = vsub.s32 32, %v1912_v62  ;;  %v1917_v15 = vsub.s32 4294967266, %v1912_v62  ;;  %vm2045_vm5 = vc.u32 %v2043_v13, %v2039_v40  ;;  %v1914_v20 = vshll.u32 %v6119_v41, %v1912_v62 }
 0x327   :  { %v2417_v35 = vsel %vm2415_vm9, %v2402_v33, %v2416_v51  ;;  %v2046_v48 = vsel %vm2045_vm5, 1, %v7712_v50  ;;  %v1493_v19 = vand.u32 2147483647, %v7738_v43  ;;  %v6160_v11 = vor.u32 %v6089_v22, %v6067_v7  ;;  %v7745_v51 = vld [vmem:[#allocation12_spill] sm:$0xff] }
 0x328   :  { %v2421_v18 = vsel %vm2414_vm14, %v2417_v35, %v2420_v56  ;;  %v1915_v59 = vshrl.u32 %v6109_v8, %v1913_v36  ;;  %v1918_v60 = vadd.s32 127, %v1917_v15  ;;  %v2048_v24 = vadd.s32 %v2046_v48, %v2044_v31  ;;  %v7744_v31 = vld [vmem:[#allocation13_spill] sm:$0xff] }
 0x329   :  { %v2422_v55 = vsel %vm2411_vm4, nan, %v2421_v18  ;;  %vm6166_vm7 = vcmp.le.f32.partialorder %v1803_v4, 0.7853982  ;;  %v6170_v10 = vadd.s32 %v2043_v13, %v2039_v40  ;;  %v2040_v39 = vshrl.u32 %v2035_v42, 16  ;;  %v7746_v35 = vld [vmem:[#allocation17_spill] sm:$0xff] }
 0x32a   :  { %2807 = vmatpush.msra.mxu3 %v2422_v55  ;;  %v1916_v30 = vor.u32 %v1915_v59, %v1914_v20  ;;  %v1919_v8 = vshll.u32 %v1918_v60, 23  ;;  %v2049_v23 = vadd.s32 %v2048_v24, %v2038_v1  ;;  %v1930_v7 = vsel %vm6166_vm7, 0, %v1928_v63 }
 0x32b   :  { %v1997_v9 = vsel %vm1991_vm12, %v6114_v12, %v1996_v61  ;;  %vm2053_vm8 = vc.u32 %v6148_v58, %v6170_v10  ;;  %v1500_v4 = vand.u32 8388607, %v1493_v19  ;;  %v1510_v0 = vshll.u32 %v7713_v26, %v7741_v32 }
 0x32c   :  { %v1920_v22 = vor.u32 4788187, %v1919_v8  ;;  %v2050_v53 = vadd.s32 %v2049_v23, %v2040_v39  ;;  %v1513_v42 = vshll.u32 %v7714_v46, %v7741_v32  ;;  %v1511_v49 = vshrl.u32 %v7714_v46, %v7742_v29 }
 0x32d   :  { %v1501_v33 = vor.u32 8388608, %v1500_v4  ;;  %v1514_v28 = vshrl.u32 %v7715_v25, %v7742_v29  ;;  %v1516_v12 = vshll.u32 %v7715_v25, %v7741_v32  ;;  %v1923_v37 = vcvt.s32.f32 %v1916_v30 }
 0x32e   :  { %v1921_v61 = vand.u32 2147483647, %v1920_v22  ;;  %v2054_v63 = vadd.s32 1, %v2050_v53  ;;  %v1517_v17 = vshrl.u32 %v7679_v52, %v7742_v29  ;;  %v1679_v45 = vor.u32 %v6099_v54, %v6093_v44 }
 0x32f   :  { %v2051_v6 = vmul.u32 %v6056_v5, %v1997_v9  ;;  %v1515_v27 = vor.u32 %v1514_v28, %v1513_v42  ;;  %vm1527_vm12 = vcmp.lt.s32.totalorder %v7743_v34, 3  ;;  %v1947_v62 = vadd.s32 3, %v1930_v7 }
 0x330   :  { %v1924_v38 = vmul.f32 %v1923_v37, %v1921_v61  ;;  %v2055_v40 = vsel %vm2053_vm8, %v2054_v63, %v2050_v53  ;;  %v1518_v13 = vor.u32 %v1517_v17, %v1516_v12  ;;  %v1539_v56 = vsel %vm1527_vm12, %v7745_v51, %v7744_v31 }
 0x331   :  { %v2056_v1 = vadd.s32 %v2055_v40, %v2051_v6  ;;  %vm1525_vm1 = vcmp.lt.s32.totalorder %v7743_v34, 1  ;;  %v6205_v44 = vshll.u32 %v1501_v33, 8  ;;  %v1512_v54 = vor.u32 %v1511_v49, %v1510_v0 }
 0x332   :  { %v1925_v5 = vxor.u32 2147483648, %v1924_v38  ;;  %vm1526_vm13 = vcmp.lt.s32.totalorder %v7743_v34, 2  ;;  %v1537_v36 = vsel %vm1525_vm1, %v1515_v27, %v1518_v13  ;;  %v1534_v15 = vsel %vm1528_vm6, %v7745_v51, 920167782 }
 0x333   :  { %vm1683_vm15 = vcmp.lt.s32.totalorder %v7746_v35, 4  ;;  %v2057_v20 = vadd.s32 536870912, %v2056_v1  ;;  %v1540_v48 = vsel %vm1526_vm13, %v1537_v36, %v1539_v56  ;;  %v1509_v60 = vshrl.u32 %v7713_v26, %v7742_v29 }
 0x334   :  { %v6219_v18 = vsel %vm1683_vm15, %v6160_v11, 920167782  ;;  %v1926_v59 = vsel %vm1805_vm11, %v1925_v5, %v1924_v38  ;;  %v6226_v24 = vand.u32 65535, %v6205_v44  ;;  %v1544_v8 = vand.u32 65535, %v1540_v48 }
 0x335   :  { %v1929_v55 = vsel %vm6166_vm7, %v5411_v2, %v1926_v59  ;;  %v6231_v30 = vshrl.u32 %v2057_v20, 30  ;;  %v1545_v39 = vshrl.u32 %v1540_v48, 16  ;;  %v6235_v23 = vsel %vm1683_vm15, %v1679_v45, 1326507024 }
 0x336   :  { %v1931_v7 = vmul.f32 %v1929_v55, %v1929_v55  ;;  %v6237_v9 = vand.u32 3, %v1947_v62  ;;  %v1533_v4 = vsel %vm1525_vm1, %v1512_v54, %v1515_v27  ;;  %v1535_v41 = vsel %vm1527_vm12, %v1518_v13, %v1534_v15 }
 0x337   :  { %v2059_v22 = vshll.u32 %v6231_v30, 30  ;;  %v1543_v53 = vshrl.u32 %v6205_v44, 16  ;;  %v1547_v32 = vmul.u32 %v1545_v39, %v6226_v24  ;;  %v1530_v33 = vsel %vm1528_vm6, %v1518_v13, 2102212464 }
 0x338   :  { %v1932_v0 = vmul.f32 -0.001358992, %v1931_v7  ;;  %v1939_v42 = vmul.f32 -0.00019511016, %v1931_v7  ;;  %v1529_v49 = vsel %vm1525_vm1, %v1509_v60, %v1512_v54  ;;  %v1536_v63 = vsel %vm1526_vm13, %v1533_v4, %v1535_v41 }
 0x339   :  { %v6248_v29 = vsub.s32 %v2056_v1, %v2059_v22  ;;  %v6252_v28 = vmul.u32 %v1544_v8, %v1543_v53  ;;  %v1550_v12 = vshll.u32 %v1547_v32, 16  ;;  %v1546_v17 = vmul.u32 %v1544_v8, %v6226_v24 }
 0x33a   :  { %v1933_v61 = vadd.f32 0.041655596, %v1932_v0  ;;  %v1940_v37 = vadd.f32 0.008332121, %v1939_v42  ;;  %v1531_v6 = vsel %vm1527_vm12, %v1515_v27, %v1530_v33  ;;  %v1549_v38 = vmul.u32 %v1545_v39, %v1543_v53 }
 0x33b   :  { %vm2061_vm11 = vcmp.lt.s32.totalorder %v6248_v29, 0  ;;  %v2062_v45 = vsub.s32 0, %v6248_v29  ;;  %vm1554_vm6 = vc.u32 %v1546_v17, %v1550_v12  ;;  %v1556_v31 = vadd.s32 %v1550_v12, %v1546_v17 }
 0x33c   :  { %v1934_v40 = vmul.f32 %v1933_v61, %v1931_v7  ;;  %v1941_v13 = vmul.f32 %v1940_v37, %v1931_v7  ;;  %v1552_v56 = vshll.u32 %v6252_v28, 16  ;;  %v1555_v62 = vsel %vm1554_vm6, 1, %v7712_v50 }
 0x33d   :  { %v2063_v51 = vsel %vm2061_vm11, %v2062_v45, %v6248_v29  ;;  %v1567_v1 = vshrl.u32 %v1536_v63, 16  ;;  %v1557_v15 = vadd.s32 %v1555_v62, %v1549_v38  ;;  %vm1950_vm2 = vcmp.eq.s32.totalorder %v6237_v9, 0  ;;  %v7747_v45 = vld [vmem:[#allocation4_spill] sm:$0xff] }
 0x33e   :  { %v1935_v5 = vadd.f32 -0.4999988, %v1934_v40  ;;  %v1942_v54 = vadd.f32 -0.16666654, %v1941_v13  ;;  %v2064_v36 = vclz %v2063_v51  ;;  %vm1953_vm9 = vcmp.eq.s32.totalorder %v6237_v9, 2 }
 0x33f   :  { %vm1558_vm14 = vc.u32 %v1556_v31, %v1552_v56  ;;  %v1566_v27 = vand.u32 65535, %v1536_v63  ;;  %vm1949_vm4 = vcmp.lt.s32.totalorder %v6237_v9, 2  ;;  %vm1946_vm0 = vweird.f32 %v5411_v2 }
 0x340   :  { %v1936_v20 = vmul.f32 %v1935_v5, %v1931_v7  ;;  %v1943_v48 = vmul.f32 %v1942_v54, %v1931_v7  ;;  %v4169_v59 = vadd.s32 4294967294, %v2064_v36  ;;  %v1559_v60 = vsel %vm1558_vm14, 1, %v7712_v50 }
 0x341   :  { %v2052_v8 = vadd.s32 %v6170_v10, %v6148_v58  ;;  %v6273_v39 = vsel %vm1526_vm13, %v1529_v49, %v1531_v6  ;;  %v1561_v4 = vadd.s32 %v1559_v60, %v1557_v15  ;;  %v1569_v22 = vmul.u32 %v1567_v1, %v6226_v24 }
 0x342   :  { %v1937_v41 = vadd.f32 1.0, %v1936_v20  ;;  %v1944_v0 = vadd.f32 1.0, %v1943_v48  ;;  %vm4170_vm3 = vcmp.lt.s32.totalorder %v4169_v59, 0  ;;  %v2082_v7 = vsub.s32 4, %v6231_v30 }
 0x343   :  { %v2067_v42 = vsel %vm4170_vm3, 0, %v4169_v59  ;;  %v1551_v33 = vshrl.u32 %v1547_v32, 16  ;;  %v1570_v12 = vmul.u32 %v1566_v27, %v1543_v53  ;;  %v1572_v61 = vshll.u32 %v1569_v22, 16 }
 0x344   :  { %v1945_v37 = vmul.f32 %v1944_v0, %v1929_v55  ;;  %v1954_v63 = vxor.u32 2147483648, %v1937_v41  ;;  %v2068_v17 = vsub.s32 32, %v2067_v42  ;;  %v1568_v58 = vmul.u32 %v1566_v27, %v6226_v24 }
 0x345   :  { %v2072_v10 = vsub.s32 4294967266, %v2067_v42  ;;  %v1562_v34 = vadd.s32 %v1561_v4, %v1551_v33  ;;  %v1571_v49 = vmul.u32 %v1567_v1, %v1543_v53  ;;  %v1648_v6 = vand.u32 2147483647, %v7747_v45 }
 0x346   :  { %v1951_v38 = vxor.u32 2147483648, %v1945_v37  ;;  %vm1960_vm5 = vcmp.lt.s32.totalorder %v7734_v16, 0  ;;  %v2069_v40 = vshll.u32 %v6248_v29, %v2067_v42  ;;  %v2070_v13 = vshrl.u32 %v2052_v8, %v2068_v17 }
 0x347   :  { %vm1576_vm7 = vc.u32 %v1568_v58, %v1572_v61  ;;  %v2073_v32 = vadd.s32 127, %v2072_v10  ;;  %v1574_v31 = vshll.u32 %v1570_v12, 16  ;;  %v1578_v51 = vadd.s32 %v1572_v61, %v1568_v58 }
 0x348   :  { %v1577_v55 = vsel %vm1576_vm7, 1, %v7712_v50  ;;  %v1952_v24 = vsel %vm1950_vm2, %v1937_v41, %v1951_v38  ;;  %v1955_v53 = vsel %vm1953_vm9, %v1954_v63, %v1945_v37  ;;  %v2071_v56 = vor.u32 %v2070_v13, %v2069_v40 }
 0x349   :  { %v1579_v62 = vadd.s32 %v1577_v55, %v1571_v49  ;;  %v1956_v1 = vsel %vm1949_vm4, %v1952_v24, %v1955_v53  ;;  %v2074_v5 = vshll.u32 %v2073_v32, 23  ;;  %v1553_v29 = vshrl.u32 %v6252_v28, 16 }
 0x34a   :  { %vm1580_vm8 = vc.u32 %v1578_v51, %v1574_v31  ;;  %v1957_v54 = vsel %vm1946_vm0, nan, %v1956_v1  ;;  %vm6293_vm12 = vcmp.le.f32.partialorder %v1958_v14, 0.7853982  ;;  %v1573_v15 = vshrl.u32 %v1569_v22, 16 }
 0x34b   :  { %v1581_v27 = vsel %vm1580_vm8, 1, %v7712_v50  ;;  %v1655_v9 = vand.u32 8388607, %v1648_v6  ;;  %2779 = vmatpush.msra.mxu2 %v1957_v54  ;;  %v2075_v20 = vor.u32 4788187, %v2074_v5  ;;  %v6300_v48 = vadd.s32 %v1562_v34, %v1553_v29 }
 0x34c   :  { %v1575_v28 = vshrl.u32 %v1570_v12, 16  ;;  %v1583_v59 = vadd.s32 %v1581_v27, %v1579_v62  ;;  %v2078_v2 = vcvt.s32.f32 %v2071_v56  ;;  %v1665_v14 = vshll.u32 %v7713_v26, %v7736_v57 }
 0x34d   :  { %v1656_v60 = vor.u32 8388608, %v1655_v9  ;;  %v1666_v8 = vshrl.u32 %v7714_v46, %v7737_v3  ;;  %v2076_v4 = vand.u32 2147483647, %v2075_v20  ;;  %v1668_v41 = vshll.u32 %v7714_v46, %v7736_v57 }
 0x34e   :  { %v1584_v22 = vadd.s32 %v1583_v59, %v1573_v15  ;;  %v1669_v0 = vshrl.u32 %v7715_v25, %v7737_v3  ;;  %v6310_v42 = vadd.s32 %v1578_v51, %v1574_v31  ;;  %v1671_v12 = vshll.u32 %v7715_v25, %v7736_v57 }
 0x34f   :  { %v6312_v33 = vor.u32 %v1666_v8, %v1665_v14  ;;  %v1672_v61 = vshrl.u32 %v7679_v52, %v7737_v3  ;;  %v2079_v37 = vmul.f32 %v2078_v2, %v2076_v4  ;;  %v2083_v63 = vsel %vm1960_vm5, %v2082_v7, %v6231_v30 }
 0x350   :  { %v1585_v17 = vadd.s32 %v1584_v22, %v1575_v28  ;;  %v6321_v58 = vor.u32 %v1669_v0, %v1668_v41  ;;  %vm1588_vm1 = vc.u32 %v6300_v48, %v6310_v42  ;;  %vm1682_vm13 = vcmp.lt.s32.totalorder %v7746_v35, 3 }
 0x351   :  { %v6325_v10 = vor.u32 %v1672_v61, %v1671_v12  ;;  %v6328_v34 = vshll.u32 %v1656_v60, 8  ;;  %v2080_v57 = vxor.u32 2147483648, %v2079_v37  ;;  %vm1680_vm11 = vcmp.lt.s32.totalorder %v7746_v35, 1 }
 0x352   :  { %v1589_v49 = vadd.s32 1, %v1585_v17  ;;  %v1694_v30 = vsel %vm1682_vm13, %v6160_v11, %v6235_v23  ;;  %v1586_v7 = vmul.u32 %v6205_v44, %v6273_v39  ;;  %v1688_v38 = vsel %vm1680_vm11, %v6312_v33, %v6321_v58 }
 0x353   :  { %v1690_v40 = vsel %vm1682_vm13, %v6325_v10, %v6219_v18  ;;  %v1692_v13 = vsel %vm1680_vm11, %v6321_v58, %v6325_v10  ;;  %v2081_v11 = vsel %vm1960_vm5, %v2080_v57, %v2079_v37  ;;  %v2085_v44 = vsel %vm6293_vm12, 0, %v2083_v63 }
 0x354   :  { %v1590_v23 = vsel %vm1588_vm1, %v1589_v49, %v1585_v17  ;;  %vm1681_vm6 = vcmp.lt.s32.totalorder %v7746_v35, 2  ;;  %v2084_v39 = vsel %vm6293_vm12, %v7734_v16, %v2081_v11  ;;  %v1697_v31 = vand.u32 65535, %v6328_v34 }
 0x355   :  { %v1591_v32 = vadd.s32 %v1590_v23, %v1586_v7  ;;  %v1695_v18 = vsel %vm1681_vm6, %v1692_v13, %v1694_v30  ;;  %v2086_v55 = vmul.f32 %v2084_v39, %v2084_v39  ;;  %v1691_v51 = vsel %vm1681_vm6, %v1688_v38, %v1690_v40 }
 0x356   :  { %v1699_v24 = vand.u32 65535, %v1695_v18  ;;  %v1700_v53 = vshrl.u32 %v1695_v18, 16  ;;  %v1698_v62 = vshrl.u32 %v6328_v34, 16  ;;  %v2102_v54 = vadd.s32 3, %v2085_v44 }
 0x357   :  { %v1592_v56 = vadd.s32 536870912, %v1591_v32  ;;  %v2087_v1 = vmul.f32 -0.001358992, %v2086_v55  ;;  %v2094_v5 = vmul.f32 -0.00019511016, %v2086_v55  ;;  %v1722_v27 = vshrl.u32 %v1691_v51, 16 }
 0x358   :  { %v1702_v29 = vmul.u32 %v1700_v53, %v1697_v31  ;;  %v6365_v15 = vmul.u32 %v1699_v24, %v1698_v62  ;;  %v1701_v28 = vmul.u32 %v1699_v24, %v1697_v31  ;;  %v1704_v60 = vmul.u32 %v1700_v53, %v1698_v62 }
 0x359   :  { %v6363_v36 = vshrl.u32 %v1592_v56, 30  ;;  %v2088_v9 = vadd.f32 0.041655596, %v2087_v1  ;;  %v2095_v20 = vadd.f32 0.008332121, %v2094_v5  ;;  %v2103_v22 = vand.u32 3, %v2102_v54 }
 0x35a   :  { %v1705_v59 = vshll.u32 %v1702_v29, 16  ;;  %v1707_v0 = vshll.u32 %v6365_v15, 16  ;;  %v1724_v17 = vmul.u32 %v1722_v27, %v1697_v31  ;;  %v1721_v49 = vand.u32 65535, %v1691_v51 }
 0x35b   :  { %v1594_v2 = vshll.u32 %v6363_v36, 30  ;;  %v2089_v14 = vmul.f32 %v2088_v9, %v2086_v55  ;;  %v2096_v8 = vmul.f32 %v2095_v20, %v2086_v55  ;;  %vm2101_vm4 = vweird.f32 %v7734_v16 }
 0x35c   :  { %vm1709_vm2 = vc.u32 %v1701_v28, %v1705_v59  ;;  %v1711_v4 = vadd.s32 %v1705_v59, %v1701_v28  ;;  %vm2104_vm0 = vcmp.lt.s32.totalorder %v2103_v22, 2  ;;  %vm2105_vm3 = vcmp.eq.s32.totalorder %v2103_v22, 0 }
 0x35d   :  { %v1595_v41 = vsub.s32 %v1591_v32, %v1594_v2  ;;  %v1710_v12 = vsel %vm1709_vm2, 1, %v7712_v50  ;;  %v2090_v61 = vadd.f32 -0.4999988, %v2089_v14  ;;  %v2097_v37 = vadd.f32 -0.16666654, %v2096_v8 }
 0x35e   :  { %v1712_v63 = vadd.s32 %v1710_v12, %v1704_v60  ;;  %vm1713_vm14 = vc.u32 %v1711_v4, %v1707_v0  ;;  %v1727_v32 = vshll.u32 %v1724_v17, 16  ;;  %vm2108_vm5 = vcmp.eq.s32.totalorder %v2103_v22, 2 }
 0x35f   :  { %vm1596_vm9 = vcmp.lt.s32.totalorder %v1595_v41, 0  ;;  %v1597_v57 = vsub.s32 0, %v1595_v41  ;;  %v2091_v30 = vmul.f32 %v2090_v61, %v2086_v55  ;;  %v2098_v7 = vmul.f32 %v2097_v37, %v2086_v55 }
 0x360   :  { %v1714_v38 = vsel %vm1713_vm14, 1, %v7712_v50  ;;  %v1587_v18 = vadd.s32 %v6310_v42, %v6300_v48  ;;  %v1723_v24 = vmul.u32 %v1721_v49, %v1697_v31  ;;  %v1725_v51 = vmul.u32 %v1721_v49, %v1698_v62 }
 0x361   :  { %v1598_v40 = vsel %vm1596_vm9, %v1597_v57, %v1595_v41  ;;  %v1716_v13 = vadd.s32 %v1714_v38, %v1712_v63  ;;  %v2092_v11 = vadd.f32 1.0, %v2091_v30  ;;  %v2099_v44 = vadd.f32 1.0, %v2098_v7 }
 0x362   :  { %v1599_v23 = vclz %v1598_v40  ;;  %v1706_v1 = vshrl.u32 %v1702_v29, 16  ;;  %v1664_v5 = vshrl.u32 %v7713_v26, %v7737_v3  ;;  %v1685_v54 = vsel %vm1683_vm15, %v6325_v10, 2102212464 }
 0x363   :  { %v2100_v53 = vmul.f32 %v2099_v44, %v2084_v39  ;;  %v2109_v55 = vxor.u32 2147483648, %v2092_v11  ;;  %v1726_v9 = vmul.u32 %v1722_v27, %v1698_v62  ;;  %vm1731_vm7 = vc.u32 %v1723_v24, %v1727_v32 }
 0x364   :  { %v4160_v56 = vadd.s32 4294967294, %v1599_v23  ;;  %v1717_v28 = vadd.s32 %v1716_v13, %v1706_v1  ;;  %v1732_v48 = vsel %vm1731_vm7, 1, %v7712_v50  ;;  %v1729_v31 = vshll.u32 %v1725_v51, 16 }
 0x365   :  { %v2106_v20 = vxor.u32 2147483648, %v2100_v53  ;;  %v1733_v39 = vadd.s32 %v1727_v32, %v1723_v24  ;;  %v1734_v59 = vadd.s32 %v1732_v48, %v1726_v9  ;;  %v2110_v2 = vsel %vm2108_vm5, %v2109_v55, %v2100_v53 }
 0x366   :  { %vm4161_vm8 = vcmp.lt.s32.totalorder %v4160_v56, 0  ;;  %v1708_v62 = vshrl.u32 %v6365_v15, 16  ;;  %v1684_v12 = vsel %vm1680_vm11, %v1664_v5, %v6312_v33  ;;  %v1728_v61 = vshrl.u32 %v1724_v17, 16 }
 0x367   :  { %v1602_v42 = vsel %vm4161_vm8, 0, %v4160_v56  ;;  %v2107_v29 = vsel %vm2105_vm3, %v2092_v11, %v2106_v20  ;;  %vm1735_vm15 = vc.u32 %v1733_v39, %v1729_v31  ;;  %v1686_v15 = vsel %vm1682_vm13, %v6321_v58, %v1685_v54 }
 0x368   :  { %v1603_v3 = vsub.s32 32, %v1602_v42  ;;  %v1607_v60 = vsub.s32 4294967266, %v1602_v42  ;;  %v2111_v14 = vsel %vm2104_vm0, %v2107_v29, %v2110_v2  ;;  %v1604_v10 = vshll.u32 %v1595_v41, %v1602_v42 }
 0x369   :  { %v2112_v27 = vsel %vm2101_vm4, nan, %v2111_v14  ;;  %v1736_v0 = vsel %vm1735_vm15, 1, %v7712_v50  ;;  %v1718_v41 = vadd.s32 %v1717_v28, %v1708_v62  ;;  %v1730_v16 = vshrl.u32 %v1725_v51, 16 }
 0x36a   :  { %v1605_v8 = vshrl.u32 %v1587_v18, %v1603_v3  ;;  %v1608_v4 = vadd.s32 127, %v1607_v60  ;;  %2808 = vmatpush.msra.mxu3 %v2112_v27  ;;  %v1738_v37 = vadd.s32 %v1736_v0, %v1734_v59  ;;  %v1737_v30 = vadd.s32 %v1733_v39, %v1729_v31 }
 0x36b   :  { %v1687_v7 = vsel %vm1681_vm6, %v1684_v12, %v1686_v15  ;;  %vm1495_vm1 = vcmp.lt.s32.totalorder %v7738_v43, 0  ;;  %vm6399_vm13 = vcmp.le.f32.partialorder %v1493_v19, 0.7853982  ;;  %v1617_v18 = vsub.s32 4, %v6363_v36 }
 0x36c   :  { %v1606_v22 = vor.u32 %v1605_v8, %v1604_v10  ;;  %v1609_v63 = vshll.u32 %v1608_v4, 23  ;;  %v1739_v57 = vadd.s32 %v1738_v37, %v1728_v61  ;;  %vm1743_vm12 = vc.u32 %v1718_v41, %v1737_v30 }
 0x36d   :  { %v1741_v11 = vmul.u32 %v6328_v34, %v1687_v7  ;;  %v1618_v55 = vsel %vm1495_vm1, %v1617_v18, %v6363_v36  ;;  %v1742_v0 = vadd.s32 %v1737_v30, %v1718_v41  ;;  %vm1636_vm4 = vweird.f32 %v7738_v43  ;;  %v50_v41 = vld [vmem:[%s7598_s5] sm:$0xff] }
 0x36e   :  { %v1610_v49 = vor.u32 4788187, %v1609_v63  ;;  %v1740_v38 = vadd.s32 %v1739_v57, %v1730_v16  ;;  %v1613_v13 = vcvt.s32.f32 %v1606_v22  ;;  %v1620_v20 = vsel %vm6399_vm13, 0, %v1618_v55 }
 0x36f   :  { %v1637_v59 = vadd.s32 3, %v1620_v20  ;;  %vm1650_vm0 = vcmp.lt.s32.totalorder %v7747_v45, 0  ;;  %vm6424_vm3 = vcmp.le.f32.partialorder %v1648_v6, 0.7853982  ;;  %v52_v6 = vld [vmem:[%s7598_s5 + $0x10] sm:$0xff]  ;;  %vm1791_vm15 = vweird.f32 %v7747_v45 }
 0x370   :  { %v1611_v40 = vand.u32 2147483647, %v1610_v49  ;;  %v1744_v33 = vadd.s32 1, %v1740_v38 }
 0x371   :  { %v1638_v62 = vand.u32 3, %v1637_v59 }
 0x372   :  { %v1614_v17 = vmul.f32 %v1613_v13, %v1611_v40  ;;  %v1745_v44 = vsel %vm1743_vm12, %v1744_v33, %v1740_v38 }
 0x373   :  { %v1746_v32 = vadd.s32 %v1745_v44, %v1741_v11  ;;  %vm1640_vm2 = vcmp.eq.s32.totalorder %v1638_v62, 0  ;;  %vm1643_vm9 = vcmp.eq.s32.totalorder %v1638_v62, 2  ;;  %vm1639_vm14 = vcmp.lt.s32.totalorder %v1638_v62, 2  ;;  %v2736_v62 = vpop.permute.xlu0 %2735 }
 0x374   :  { %v1615_v23 = vxor.u32 2147483648, %v1614_v17 }
 0x375   :  { %v1747_v24 = vadd.s32 536870912, %v1746_v32 }
 0x376   :  { %v1616_v35 = vsel %vm1495_vm1, %v1615_v23, %v1614_v17 }
 0x377   :  { %v1619_v51 = vsel %vm6399_vm13, %v7738_v43, %v1616_v35  ;;  %v6407_v53 = vshrl.u32 %v1747_v24, 30  ;;  %v51_v43 = vld [vmem:[%s7598_s5 + $0x8] sm:$0xff] }
 0x378   :  { %v1621_v34 = vmul.f32 %v1619_v51, %v1619_v51 }
 0x379   :  { %v1749_v19 = vshll.u32 %v6407_v53, 30 }
 0x37a   :  { %v1622_v56 = vmul.f32 -0.001358992, %v1621_v34  ;;  %v1629_v1 = vmul.f32 -0.00019511016, %v1621_v34 }
 0x37b   :  { %v1750_v9 = vsub.s32 %v1746_v32, %v1749_v19  ;;  %v1772_v32 = vsub.s32 4, %v6407_v53 }
 0x37c   :  { %v1623_v5 = vadd.f32 0.041655596, %v1622_v56  ;;  %v1630_v54 = vadd.f32 0.008332121, %v1629_v1 }
 0x37d   :  { %vm1751_vm11 = vcmp.lt.s32.totalorder %v1750_v9, 0  ;;  %v1752_v42 = vsub.s32 0, %v1750_v9 }
 0x37e   :  { %v1624_v28 = vmul.f32 %v1623_v5, %v1621_v34  ;;  %v1631_v48 = vmul.f32 %v1630_v54, %v1621_v34 }
 0x37f   :  { %v1753_v29 = vsel %vm1751_vm11, %v1752_v42, %v1750_v9  ;;  %v53_v42 = vld [vmem:[%s7598_s5 + $0x18] sm:$0xff] }
 0x380   :  { %v1625_v31 = vadd.f32 -0.4999988, %v1624_v28  ;;  %v1632_v39 = vadd.f32 -0.16666654, %v1631_v48  ;;  %v1754_v2 = vclz %v1753_v29 }
 0x382   :  { %v1626_v36 = vmul.f32 %v1625_v31, %v1621_v34  ;;  %v1633_v3 = vmul.f32 %v1632_v39, %v1621_v34  ;;  %v4163_v60 = vadd.s32 4294967294, %v1754_v2 }
 0x384   :  { %v1627_v14 = vadd.f32 1.0, %v1626_v36  ;;  %v1634_v10 = vadd.f32 1.0, %v1633_v3  ;;  %vm4164_vm6 = vcmp.lt.s32.totalorder %v4163_v60, 0 }
 0x385   :  { %v1757_v4 = vsel %vm4164_vm6, 0, %v4163_v60 }
 0x386   :  { %v1635_v27 = vmul.f32 %v1634_v10, %v1619_v51  ;;  %v1644_v8 = vxor.u32 2147483648, %v1627_v14  ;;  %v1758_v12 = vsub.s32 32, %v1757_v4  ;;  %v1762_v61 = vsub.s32 4294967266, %v1757_v4 }
 0x387   :  { %v1759_v22 = vshll.u32 %v1750_v9, %v1757_v4  ;;  %v1773_v51 = vsel %vm1650_vm0, %v1772_v32, %v6407_v53 }
 0x388   :  { %v1641_v37 = vxor.u32 2147483648, %v1635_v27  ;;  %v1760_v63 = vshrl.u32 %v1742_v0, %v1758_v12  ;;  %v1763_v15 = vadd.s32 127, %v1762_v61  ;;  %v1645_v57 = vsel %vm1643_vm9, %v1644_v8, %v1635_v27 }
 0x389   :  { %v1775_v56 = vsel %vm6424_vm3, 0, %v1773_v51 }
 0x38a   :  { %v1642_v16 = vsel %vm1640_vm2, %v1627_v14, %v1641_v37  ;;  %v1761_v7 = vor.u32 %v1760_v63, %v1759_v22  ;;  %v1764_v38 = vshll.u32 %v1763_v15, 23  ;;  %v1792_v9 = vadd.s32 3, %v1775_v56  ;;  %v6449_v14 = vpop.permute.xlu2 %2750  ;;  %v2746_v15 = vpop.permute.xlu1 %2745 }
 0x38b   :  { %v1646_v49 = vsel %vm1639_vm14, %v1642_v16, %v1645_v57 }
 0x38c   :  { %v1647_v40 = vsel %vm1636_vm4, nan, %v1646_v49  ;;  %v1765_v30 = vor.u32 4788187, %v1764_v38  ;;  %v1768_v33 = vcvt.s32.f32 %v1761_v7  ;;  %v1793_v31 = vand.u32 3, %v1792_v9 }
 0x38d   :  { %2780 = vmatpush.msra.mxu2 %v1647_v40 }
 0x38e   :  { %4183 = vmatmul.msk.f32.vlgmr.msra.gmra.mxu2 %vm1422_vm10, %v50_v41  ;;  %v1766_v13 = vand.u32 2147483647, %v1765_v30  ;;  %vm1795_vm5 = vcmp.eq.s32.totalorder %v1793_v31, 0  ;;  %vm1798_vm7 = vcmp.eq.s32.totalorder %v1793_v31, 2  ;;  %vm1794_vm8 = vcmp.lt.s32.totalorder %v1793_v31, 2 }
 0x390   :  { %v1769_v17 = vmul.f32 %v1768_v33, %v1766_v13 }
 0x392   :  { %v1770_v11 = vxor.u32 2147483648, %v1769_v17 }
 0x394   :  { %v1771_v23 = vsel %vm1650_vm0, %v1770_v11, %v1769_v17 }
 0x395   :  { %v1774_v58 = vsel %vm6424_vm3, %v7747_v45, %v1771_v23  ;;  %v2741_v45 = vpop.permute.xlu2 %2740 }
 0x396   :  { %4184 = vmatmul.msk.f32.gmra.mxu2 %vm1422_vm10, %v51_v43  ;;  %v1776_v35 = vmul.f32 %v1774_v58, %v1774_v58 }
 0x398   :  { %v1777_v18 = vmul.f32 -0.001358992, %v1776_v35  ;;  %v1784_v24 = vmul.f32 -0.00019511016, %v1776_v35 }
 0x39a   :  { %v1778_v34 = vadd.f32 0.041655596, %v1777_v18  ;;  %v1785_v55 = vadd.f32 0.008332121, %v1784_v24 }
 0x39c   :  { %v1779_v1 = vmul.f32 %v1778_v34, %v1776_v35  ;;  %v1786_v19 = vmul.f32 %v1785_v55, %v1776_v35 }
 0x39e   :  { %4185 = vmatmul.msk.f32.gmra.mxu2 %vm1422_vm10, %v52_v6  ;;  %v1780_v5 = vadd.f32 -0.4999988, %v1779_v1  ;;  %v1787_v54 = vadd.f32 -0.16666654, %v1786_v19 }
 0x3a0   :  { %v1781_v20 = vmul.f32 %v1780_v5, %v1776_v35  ;;  %v1788_v28 = vmul.f32 %v1787_v54, %v1776_v35 }
 0x3a2   :  { %v1782_v48 = vadd.f32 1.0, %v1781_v20  ;;  %v1789_v53 = vadd.f32 1.0, %v1788_v28 }
 0x3a4   :  { %v1790_v39 = vmul.f32 %v1789_v53, %v1774_v58  ;;  %v1799_v59 = vxor.u32 2147483648, %v1782_v48 }
 0x3a6   :  { %4186 = vmatmul.msk.f32.gmra.mxu2 %vm1422_vm10, %v53_v42  ;;  %v1796_v29 = vxor.u32 2147483648, %v1790_v39  ;;  %v1800_v36 = vsel %vm1798_vm7, %v1799_v59, %v1790_v39 }
 0x3a8   :  { %v1797_v2 = vsel %vm1795_vm5, %v1782_v48, %v1796_v29 }
 0x3a9   :  { %v1801_v3 = vsel %vm1794_vm8, %v1797_v2, %v1800_v36 }
 0x3aa   :  { %v1802_v60 = vsel %vm1791_vm15, nan, %v1801_v3 }
 0x3ab   :  { %2809 = vmatpush.msra.mxu3 %v1802_v60 }
 0x3ac   :  { %4187 = vmatmul.msk.f32.vlgmr.msra.gmra.mxu3 %vm1422_vm10, %v50_v41 }
 0x3b4   :  { %4188 = vmatmul.msk.f32.gmra.mxu3 %vm1422_vm10, %v51_v43 }
 0x3bc   :  { %4189 = vmatmul.msk.f32.gmra.mxu3 %vm1422_vm10, %v52_v6 }
 0x3c4   :  { %4190 = vmatmul.msk.f32.gmra.mxu3 %vm1422_vm10, %v53_v42 }
 0x411   :  { %v2782_v10 = vpop.f32.mrf.mxu2 }
 0x412   :  { %v6451_v27 = vadd.f32 %v2782_v10, %v2736_v62 }
 0x414   :  { %7754 = vst [vmem:[#allocation8_spill] sm:$0xff] %v6451_v27  ;;  %v2826_v8 = vand.u32 2139095040, %v6451_v27 }
 0x416   :  { %v2827_v0 = vshrl.u32 %v2826_v8, 23 }
 0x418   :  { %v4191_v37 = vadd.s32 4294967169, %v2827_v0 }
 0x419   :  { %v2785_v4 = vpop.f32.mrf.mxu2 }
 0x41a   :  { %v6454_v12 = vadd.f32 %v2785_v4, %v2741_v45  ;;  %v2833_v16 = vadd.s32 1, %v4191_v37 }
 0x41c   :  { %7755 = vst [vmem:[#allocation20_spill] sm:$0xff] %v6454_v12  ;;  %v3136_v61 = vand.u32 2139095040, %v6454_v12  ;;  %vm2834_vm12 = vcmp.gt.s32.totalorder %v2833_v16, 0 }
 0x41d   :  { %v2835_v30 = vsel %vm2834_vm12, %v2833_v16, 0 }
 0x41e   :  { %v3137_v22 = vshrl.u32 %v3136_v61, 23  ;;  %v6463_v11 = vand.u32 31, %v2835_v30  ;;  %v6495_v2 = vshrl.u32 %v2835_v30, 5 }
 0x420   :  { %v4197_v63 = vadd.s32 4294967169, %v3137_v22  ;;  %7757 = vst [vmem:[#allocation16_spill] sm:$0xff] %v6463_v11  ;;  %v6473_v18 = vsub.s32 32, %v6463_v11  ;;  %v2849_v54 = vshll.u32 %v7679_v52, %v6463_v11  ;;  %v2852_v9 = vshll.u32 %v7680_v47, %v6463_v11 }
 0x421   :  { %v2788_v57 = vpop.f32.mrf.mxu2  ;;  %7763 = vst [vmem:[#allocation18_spill] sm:$0xff] %v6495_v2  ;;  %vm2858_vm6 = vcmp.lt.s32.totalorder %v6495_v2, 4 }
 0x422   :  { %v6457_v49 = vadd.f32 %v2788_v57, %v2746_v15  ;;  %v3143_v38 = vadd.s32 1, %v4197_v63  ;;  %7761 = vst [vmem:[#allocation19_spill] sm:$0xff] %v6473_v18  ;;  %v2850_v1 = vshrl.u32 %v7680_v47, %v6473_v18  ;;  %v2853_v20 = vshrl.u32 %v7681_v21, %v6473_v18 }
 0x424   :  { %7756 = vst [vmem:[#allocation10_spill] sm:$0xff] %v6457_v49  ;;  %v3446_v40 = vand.u32 2139095040, %v6457_v49  ;;  %vm3144_vm1 = vcmp.gt.s32.totalorder %v3143_v38, 0  ;;  %v6497_v36 = vor.u32 %v2850_v1, %v2849_v54  ;;  %v2854_v3 = vor.u32 %v2853_v20, %v2852_v9 }
 0x425   :  { %v3145_v33 = vsel %vm3144_vm1, %v3143_v38, 0 }
 0x426   :  { %v3447_v41 = vshrl.u32 %v3446_v40, 23  ;;  %v6468_v58 = vand.u32 31, %v3145_v33  ;;  %7764 = vst [vmem:[#allocation3_spill] sm:$0xff] %v6497_v36  ;;  %v6503_v8 = vshrl.u32 %v3145_v33, 5  ;;  %v6513_v16 = vsel %vm2858_vm6, %v6497_v36, 920167782 }
 0x427   :  { %7767 = vst [vmem:[#allocation9_spill] sm:$0xff] %v6513_v16  ;;  %v6517_v57 = vsel %vm2858_vm6, %v2854_v3, 1326507024 }
 0x428   :  { %v4203_v44 = vadd.s32 4294967169, %v3447_v41  ;;  %7759 = vst [vmem:[#allocation15_spill] sm:$0xff] %v6468_v58  ;;  %v6477_v55 = vsub.s32 32, %v6468_v58  ;;  %v3159_v60 = vshll.u32 %v7679_v52, %v6468_v58  ;;  %v3162_v10 = vshll.u32 %v7680_v47, %v6468_v58 }
 0x429   :  { %v2791_v13 = vpop.f32.mrf.mxu2  ;;  %7765 = vst [vmem:[#allocation5_spill] sm:$0xff] %v6503_v8  ;;  %vm3168_vm2 = vcmp.lt.s32.totalorder %v6503_v8, 4 }
 0x42a   :  { %v6461_v17 = vadd.f32 %v2791_v13, %v6449_v14  ;;  %v3453_v24 = vadd.s32 1, %v4203_v44  ;;  %7762 = vst [vmem:[#allocation14_spill] sm:$0xff] %v6477_v55  ;;  %v3160_v53 = vshrl.u32 %v7680_v47, %v6477_v55  ;;  %v3163_v31 = vshrl.u32 %v7681_v21, %v6477_v55 }
 0x42b   :  { %7768 = vst [vmem:[#allocation13_spill] sm:$0xff] %v6517_v57 }
 0x42c   :  { %v3756_v23 = vand.u32 2139095040, %v6461_v17  ;;  %vm3454_vm13 = vcmp.gt.s32.totalorder %v3453_v24, 0  ;;  %v6507_v37 = vor.u32 %v3160_v53, %v3159_v60  ;;  %v3164_v22 = vor.u32 %v3163_v31, %v3162_v10 }
 0x42d   :  { %v3455_v39 = vsel %vm3454_vm13, %v3453_v24, 0 }
 0x42e   :  { %v3757_v51 = vshrl.u32 %v3756_v23, 23  ;;  %v6505_v4 = vand.u32 31, %v3455_v39  ;;  %7766 = vst [vmem:[#allocation7_spill] sm:$0xff] %v6507_v37  ;;  %v6531_v33 = vsel %vm3168_vm2, %v6507_v37, 920167782  ;;  %v6539_v23 = vshrl.u32 %v3455_v39, 5 }
 0x42f   :  { %v2811_v7 = vpop.f32.mrf.mxu3  ;;  %7769 = vst [vmem:[#allocation12_spill] sm:$0xff] %v6531_v33 }
 0x430   :  { %v6466_v32 = vadd.f32 %v2811_v7, %v2736_v62  ;;  %v4209_v56 = vadd.s32 4294967169, %v3757_v51  ;;  %v6523_v41 = vsub.s32 32, %v6505_v4  ;;  %v3469_v51 = vshll.u32 %v7679_v52, %v6505_v4 }
 0x431   :  { %vm3478_vm3 = vcmp.lt.s32.totalorder %v6539_v23, 4 }
 0x432   :  { %7758 = vst [vmem:[#allocation11_spill] sm:$0xff] %v6466_v32  ;;  %v2981_v34 = vand.u32 2139095040, %v6466_v32  ;;  %v3763_v5 = vadd.s32 1, %v4209_v56  ;;  %v7643_v56 = vand.u32 2147483647, %v6461_v17  ;;  %v3470_v1 = vshrl.u32 %v7680_v47, %v6523_v41 }
 0x433   :  { %v3473_v54 = vshrl.u32 %v7681_v21, %v6523_v41 }
 0x434   :  { %v2982_v48 = vshrl.u32 %v2981_v34, 23  ;;  %vm3764_vm11 = vcmp.gt.s32.totalorder %v3763_v5, 0  ;;  %v3472_v34 = vshll.u32 %v7680_v47, %v6505_v4  ;;  %v3760_v3 = vand.u32 8388607, %v7643_v56 }
 0x435   :  { %v3765_v29 = vsel %vm3764_vm11, %v3763_v5, 0 }
 0x436   :  { %v3767_v0 = vand.u32 31, %v3765_v29  ;;  %v4194_v61 = vadd.s32 4294967169, %v2982_v48  ;;  %v6555_v20 = vshrl.u32 %v3765_v29, 5 }
 0x437   :  { %v2814_v43 = vpop.f32.mrf.mxu3 }
 0x438   :  { %v6470_v35 = vadd.f32 %v2814_v43, %v2741_v45  ;;  %v6519_v38 = vsub.s32 32, %v3767_v0  ;;  %v2988_v13 = vadd.s32 1, %v4194_v61  ;;  %v6535_v43 = vsel %vm3168_vm2, %v3164_v22, 1326507024 }
 0x439   :  { %7770 = vst [vmem:[#allocation17_spill] sm:$0xff] %v6535_v43  ;;  %v3770_v31 = vshll.u32 %v7713_v26, %v3767_v0  ;;  %v3773_v60 = vshll.u32 %v7714_v46, %v3767_v0  ;;  %v6570_v22 = vor.u32 %v3470_v1, %v3469_v51  ;;  %vm3788_vm4 = vcmp.lt.s32.totalorder %v6555_v20, 4 }
 0x43a   :  { %7760 = vst [vmem:[#allocation6_spill] sm:$0xff] %v6470_v35  ;;  %v3291_v6 = vand.u32 2139095040, %v6470_v35  ;;  %v3780_v44 = vshrl.u32 %v7680_v47, %v6519_v38  ;;  %v3771_v39 = vshrl.u32 %v7714_v46, %v6519_v38  ;;  %v3774_v10 = vshrl.u32 %v7715_v25, %v6519_v38 }
 0x43b   :  { %v3777_v61 = vshrl.u32 %v7679_v52, %v6519_v38  ;;  %vm2989_vm0 = vcmp.gt.s32.totalorder %v2988_v13, 0  ;;  %vm3785_vm5 = vcmp.lt.s32.totalorder %v6555_v20, 1  ;;  %vm3787_vm8 = vcmp.lt.s32.totalorder %v6555_v20, 3 }
 0x43c   :  { %v3292_v42 = vshrl.u32 %v3291_v6, 23  ;;  %v3779_v6 = vshll.u32 %v7679_v52, %v3767_v0  ;;  %v6565_v29 = vor.u32 %v3771_v39, %v3770_v31  ;;  %vm3786_vm15 = vcmp.lt.s32.totalorder %v6555_v20, 2 }
 0x43d   :  { %v3769_v32 = vshrl.u32 %v7713_v26, %v6519_v38  ;;  %v3463_v20 = vshll.u32 %v7714_v46, %v6505_v4 }
 0x43e   :  { %v4200_v45 = vadd.s32 4294967169, %v3292_v42  ;;  %v3781_v48 = vor.u32 %v3780_v44, %v3779_v6 }
 0x43f   :  { %v2817_v19 = vpop.f32.mrf.mxu3 }
 0x440   :  { %v6488_v28 = vadd.f32 %v2817_v19, %v2746_v15  ;;  %v3298_v40 = vadd.s32 1, %v4200_v45  ;;  %v3782_v19 = vshll.u32 %v7680_v47, %v3767_v0  ;;  %v3776_v45 = vshll.u32 %v7715_v25, %v3767_v0 }
 0x442   :  { %v3601_v59 = vand.u32 2139095040, %v6488_v28  ;;  %vm3299_vm14 = vcmp.gt.s32.totalorder %v3298_v40, 0  ;;  %v6583_v0 = vor.u32 %v3777_v61, %v3776_v45 }
 0x444   :  { %v3602_v62 = vshrl.u32 %v3601_v59, 23  ;;  %v3300_v59 = vsel %vm3299_vm14, %v3298_v40, 0  ;;  %v3794_v40 = vsel %vm3788_vm4, %v3781_v48, 920167782 }
 0x445   :  { %v3795_v1 = vsel %vm3787_vm8, %v6583_v0, %v3794_v40 }
 0x446   :  { %v4206_v63 = vadd.s32 4294967169, %v3602_v62 }
 0x447   :  { %v2820_v15 = vpop.f32.mrf.mxu3 }
 0x448   :  { %v3608_v7 = vadd.s32 1, %v4206_v63  ;;  %v6526_v30 = vadd.f32 %v2820_v15, %v6449_v14  ;;  %v3783_v14 = vshrl.u32 %v7681_v21, %v6519_v38  ;;  %v6575_v15 = vor.u32 %v3774_v10, %v3773_v60 }
 0x44a   :  { %vm3609_vm9 = vcmp.gt.s32.totalorder %v3608_v7, 0  ;;  %v3911_v24 = vand.u32 2139095040, %v6526_v30  ;;  %v3784_v53 = vor.u32 %v3783_v14, %v3782_v19  ;;  %v3761_v14 = vor.u32 8388608, %v3760_v3 }
 0x44b   :  { %v3610_v9 = vsel %vm3609_vm9, %v3608_v7, 0  ;;  %v6577_v7 = vand.u32 31, %v3300_v59  ;;  %v3793_v51 = vsel %vm3785_vm5, %v6565_v29, %v6575_v15 }
 0x44c   :  { %v3912_v5 = vshrl.u32 %v3911_v24, 23  ;;  %v6572_v63 = vand.u32 31, %v3610_v9  ;;  %v3798_v44 = vsel %vm3788_vm4, %v3784_v53, 1326507024  ;;  %v3474_v24 = vor.u32 %v3473_v54, %v3472_v34 }
 0x44d   :  { %7771 = vst [vmem:[#allocation4_spill] sm:$0xff] %v6577_v7  ;;  %v3797_v34 = vsel %vm3785_vm5, %v6575_v15, %v6583_v0  ;;  %v3799_v19 = vsel %vm3787_vm8, %v3781_v48, %v3798_v44  ;;  %v6607_v54 = vsub.s32 32, %v6577_v7  ;;  %v6612_v53 = vsel %vm3478_vm3, %v6570_v22, 920167782 }
 0x44e   :  { %v4212_v42 = vadd.s32 4294967169, %v3912_v5  ;;  %v6593_v6 = vsub.s32 32, %v6572_v63  ;;  %v6604_v5 = vsel %vm2989_vm0, %v2988_v13, 0  ;;  %v3796_v31 = vsel %vm3786_vm15, %v3793_v51, %v3795_v1 }
 0x44f   :  { %7772 = vst [vmem:[#allocation21_spill] sm:$0xff] %v6604_v5  ;;  %v3800_v39 = vsel %vm3786_vm15, %v3797_v34, %v3799_v19  ;;  %v6619_v48 = vshll.u32 %v3761_v14, 8  ;;  %v6621_v13 = vshrl.u32 %v3300_v59, 5  ;;  %v6625_v3 = vsel %vm3478_vm3, %v3474_v24, 1326507024 }
 0x450   :  { %v3918_v62 = vadd.s32 1, %v4212_v42  ;;  %v3804_v60 = vand.u32 65535, %v3800_v39  ;;  %v3805_v10 = vshrl.u32 %v3800_v39, 16  ;;  %v3625_v45 = vshrl.u32 %v7680_v47, %v6593_v6 }
 0x451   :  { %7773 = vst [vmem:[#allocation22_spill] sm:$0xff] %v6621_v13  ;;  %v3803_v61 = vshrl.u32 %v6619_v48, 16  ;;  %v3827_v40 = vshrl.u32 %v3796_v31, 16  ;;  %v6633_v44 = vshll.u32 %v7679_v52, %v6577_v7  ;;  %v6637_v59 = vshll.u32 %v7680_v47, %v6577_v7 }
 0x452   :  { %vm3919_vm7 = vcmp.gt.s32.totalorder %v3918_v62, 0  ;;  %v3826_v24 = vand.u32 65535, %v3796_v31  ;;  %v6643_v51 = vshrl.u32 %v7680_v47, %v6607_v54  ;;  %v3624_v1 = vshll.u32 %v7679_v52, %v6572_v63 }
 0x453   :  { %v3920_v42 = vsel %vm3919_vm7, %v3918_v62, 0  ;;  %v3802_v62 = vand.u32 65535, %v6619_v48  ;;  %7774 = vst [vmem:[#allocation23_spill] sm:$0xff] %v6637_v59  ;;  %v3808_v19 = vmul.u32 %v3804_v60, %v3803_v61  ;;  %v6647_v39 = vshrl.u32 %v3610_v9, 5 }
 0x454   :  { %v6639_v14 = vand.u32 31, %v3920_v42  ;;  %v6651_v56 = vshll.u32 %v7680_v47, %v6572_v63  ;;  %v6655_v31 = vor.u32 %v3625_v45, %v3624_v1  ;;  %v6659_v36 = vshrl.u32 %v7681_v21, %v6593_v6 }
 0x455   :  { %v3807_v34 = vmul.u32 %v3805_v10, %v3802_v62  ;;  %v3829_v16 = vmul.u32 %v3827_v40, %v3802_v62  ;;  %v3806_v57 = vmul.u32 %v3804_v60, %v3802_v62  ;;  %v3828_v9 = vmul.u32 %v3826_v24, %v3802_v62 }
 0x456   :  { %v6662_v11 = vsub.s32 32, %v6639_v14  ;;  %v3830_v18 = vmul.u32 %v3826_v24, %v3803_v61  ;;  %v3809_v7 = vmul.u32 %v3805_v10, %v3803_v61  ;;  %v3812_v35 = vshll.u32 %v3808_v19, 16 }
 0x457   :  { %v3810_v2 = vshll.u32 %v3807_v34, 16  ;;  %v3832_v27 = vshll.u32 %v3829_v16, 16  ;;  %v3831_v45 = vmul.u32 %v3827_v40, %v3803_v61  ;;  %v3789_v62 = vsel %vm3785_vm5, %v3769_v32, %v6565_v29 }
 0x458   :  { %v3834_v1 = vshll.u32 %v3830_v18, 16  ;;  %v7663_v13 = vand.u32 2147483647, %v6526_v30  ;;  %vm3633_vm11 = vcmp.lt.s32.totalorder %v6647_v39, 4  ;;  %v3833_v40 = vshrl.u32 %v3829_v16, 16 }
 0x459   :  { %vm3814_vm12 = vc.u32 %v3806_v57, %v3810_v2  ;;  %v3816_v5 = vadd.s32 %v3810_v2, %v3806_v57  ;;  %vm3836_vm1 = vc.u32 %v3828_v9, %v3832_v27  ;;  %v3838_v43 = vadd.s32 %v3832_v27, %v3828_v9 }
 0x45a   :  { %v3815_v38 = vsel %vm3814_vm12, 1, %v7712_v50  ;;  %v3837_v60 = vsel %vm3836_vm1, 1, %v7712_v50  ;;  %v3790_v2 = vsel %vm3788_vm4, %v6583_v0, 2102212464  ;;  %v3811_v57 = vshrl.u32 %v3807_v34, 16 }
 0x45b   :  { %v3817_v37 = vadd.s32 %v3815_v38, %v3809_v7  ;;  %vm3818_vm13 = vc.u32 %v3816_v5, %v3812_v35  ;;  %v3839_v10 = vadd.s32 %v3837_v60, %v3831_v45  ;;  %vm3840_vm9 = vc.u32 %v3838_v43, %v3834_v1 }
 0x45c   :  { %v3819_v24 = vsel %vm3818_vm13, 1, %v7712_v50  ;;  %v6675_v7 = vshrl.u32 %v3920_v42, 5  ;;  %v3935_v27 = vshrl.u32 %v7680_v47, %v6662_v11  ;;  %v3841_v32 = vsel %vm3840_vm9, 1, %v7712_v50 }
 0x45d   :  { %v3821_v35 = vadd.s32 %v3819_v24, %v3817_v37  ;;  %v3915_v29 = vand.u32 8388607, %v7663_v13  ;;  %v3813_v5 = vshrl.u32 %v3808_v19, 16  ;;  %v3843_v9 = vadd.s32 %v3841_v32, %v3839_v10 }
 0x45e   :  { %v3934_v0 = vshll.u32 %v7679_v52, %v6639_v14  ;;  %v3938_v37 = vshrl.u32 %v7681_v21, %v6662_v11  ;;  %v3791_v42 = vsel %vm3787_vm8, %v6575_v15, %v3790_v2  ;;  %v7662_v34 = vand.u32 2147483647, %v6457_v49 }
 0x45f   :  { %v3822_v61 = vadd.s32 %v3821_v35, %v3811_v57  ;;  %v3835_v45 = vshrl.u32 %v3830_v18, 16  ;;  %v3844_v60 = vadd.s32 %v3843_v9, %v3833_v40  ;;  %v3916_v24 = vor.u32 8388608, %v3915_v29 }
 0x460   :  { %v3936_v19 = vor.u32 %v3935_v27, %v3934_v0  ;;  %v3937_v16 = vshll.u32 %v7680_v47, %v6639_v14  ;;  %vm3943_vm14 = vcmp.lt.s32.totalorder %v6675_v7, 4  ;;  %v3842_v10 = vadd.s32 %v3838_v43, %v3834_v1 }
 0x461   :  { %v3823_v38 = vadd.s32 %v3822_v61, %v3813_v5  ;;  %v3792_v57 = vsel %vm3786_vm15, %v3789_v62, %v3791_v42  ;;  %v3845_v35 = vadd.s32 %v3844_v60, %v3835_v45  ;;  %v3461_v15 = vshrl.u32 %v7714_v46, %v6523_v41 }
 0x462   :  { %v3464_v2 = vshrl.u32 %v7715_v25, %v6523_v41  ;;  %v3939_v18 = vor.u32 %v3938_v37, %v3937_v16  ;;  %v3450_v27 = vand.u32 8388607, %v7662_v34  ;;  %v3460_v32 = vshll.u32 %v7713_v26, %v6505_v4 }
 0x463   :  { %vm3848_vm4 = vc.u32 %v3823_v38, %v3842_v10  ;;  %v3849_v29 = vadd.s32 1, %v3845_v35  ;;  %v6703_v43 = vshll.u32 %v3916_v24, 8  ;;  %v3467_v1 = vshrl.u32 %v7679_v52, %v6523_v41 }
 0x464   :  { %v6714_v5 = vsel %vm3633_vm11, %v6655_v31, 920167782  ;;  %v3949_v61 = vsel %vm3943_vm14, %v3936_v19, 920167782  ;;  %v3846_v40 = vmul.u32 %v6619_v48, %v3792_v57  ;;  %v6719_v0 = vor.u32 %v3461_v15, %v3460_v32 }
 0x465   :  { %v3850_v9 = vsel %vm3848_vm4, %v3849_v29, %v3845_v35  ;;  %v6721_v37 = vor.u32 %v3464_v2, %v3463_v20  ;;  %v3466_v42 = vshll.u32 %v7715_v25, %v6505_v4  ;;  %v3953_v45 = vsel %vm3943_vm14, %v3939_v18, 1326507024 }
 0x466   :  { %v3851_v60 = vadd.s32 %v3850_v9, %v3846_v40  ;;  %v3451_v24 = vor.u32 8388608, %v3450_v27  ;;  %vm3475_vm0 = vcmp.lt.s32.totalorder %v6539_v23, 1  ;;  %v6728_v16 = vadd.s32 %v3842_v10, %v3823_v38 }
 0x467   :  { %v3925_v48 = vshll.u32 %v7713_v26, %v6639_v14  ;;  %v3957_v57 = vand.u32 65535, %v6703_v43  ;;  %v6733_v35 = vor.u32 %v3467_v1, %v3466_v42  ;;  %v3926_v4 = vshrl.u32 %v7714_v46, %v6662_v11 }
 0x468   :  { %v3852_v15 = vadd.s32 536870912, %v3851_v60  ;;  %v3928_v2 = vshll.u32 %v7714_v46, %v6639_v14  ;;  %v3929_v18 = vshrl.u32 %v7715_v25, %v6662_v11  ;;  %v3931_v38 = vshll.u32 %v7715_v25, %v6639_v14 }
 0x469   :  { %v3932_v10 = vshrl.u32 %v7679_v52, %v6662_v11  ;;  %vm3477_vm5 = vcmp.lt.s32.totalorder %v6539_v23, 3  ;;  %v3483_v27 = vsel %vm3475_vm0, %v6719_v0, %v6721_v37  ;;  %v3927_v29 = vor.u32 %v3926_v4, %v3925_v48 }
 0x46a   :  { %v6750_v32 = vshrl.u32 %v3852_v15, 30  ;;  %v3930_v20 = vor.u32 %v3929_v18, %v3928_v2  ;;  %v6752_v1 = vshll.u32 %v3451_v24, 8  ;;  %vm3940_vm7 = vcmp.lt.s32.totalorder %v6675_v7, 1 }
 0x46b   :  { %v3933_v40 = vor.u32 %v3932_v10, %v3931_v38  ;;  %v3485_v14 = vsel %vm3477_vm5, %v6733_v35, %v6612_v53  ;;  %v3487_v9 = vsel %vm3475_vm0, %v6721_v37, %v6733_v35  ;;  %vm3942_vm8 = vcmp.lt.s32.totalorder %v6675_v7, 3 }
 0x46c   :  { %v3854_v42 = vshll.u32 %v6750_v32, 30  ;;  %v3948_v24 = vsel %vm3940_vm7, %v3927_v29, %v3930_v20  ;;  %v3489_v48 = vsel %vm3477_vm5, %v6570_v22, %v6625_v3  ;;  %vm3941_vm15 = vcmp.lt.s32.totalorder %v6675_v7, 2 }
 0x46d   :  { %v3950_v53 = vsel %vm3942_vm8, %v3933_v40, %v3949_v61  ;;  %v3952_v15 = vsel %vm3940_vm7, %v3930_v20, %v3933_v40  ;;  %v3954_v4 = vsel %vm3942_vm8, %v3936_v19, %v3953_v45  ;;  %v3958_v38 = vshrl.u32 %v6703_v43, 16 }
 0x46e   :  { %v6778_v2 = vsub.s32 %v3851_v60, %v3854_v42  ;;  %v3951_v18 = vsel %vm3941_vm15, %v3948_v24, %v3950_v53  ;;  %vm3476_vm12 = vcmp.lt.s32.totalorder %v6539_v23, 2  ;;  %v3924_v22 = vshrl.u32 %v7713_v26, %v6662_v11 }
 0x46f   :  { %v3955_v3 = vsel %vm3941_vm15, %v3952_v15, %v3954_v4  ;;  %v6790_v61 = vsel %vm3476_vm12, %v3483_v27, %v3485_v14  ;;  %v6794_v19 = vsel %vm3476_vm12, %v3487_v9, %v3489_v48  ;;  %vm3755_vm1 = vcmp.lt.s32.totalorder %v6461_v17, 0 }
 0x470   :  { %vm3856_vm13 = vcmp.lt.s32.totalorder %v6778_v2, 0  ;;  %v3857_v45 = vsub.s32 0, %v6778_v2  ;;  %v3959_v60 = vand.u32 65535, %v3955_v3  ;;  %v3960_v10 = vshrl.u32 %v3955_v3, 16 }
 0x471   :  { %v3945_v11 = vsel %vm3943_vm14, %v3933_v40, 2102212464  ;;  %v3981_v42 = vand.u32 65535, %v3951_v18  ;;  %v3982_v24 = vshrl.u32 %v3951_v18, 16  ;;  %v6802_v27 = vand.u32 65535, %v6752_v1 }
 0x472   :  { %v3858_v14 = vsel %vm3856_vm13, %v3857_v45, %v6778_v2  ;;  %v3962_v9 = vmul.u32 %v3960_v10, %v3957_v57  ;;  %v3963_v48 = vmul.u32 %v3959_v60, %v3958_v38  ;;  %v6806_v53 = vshrl.u32 %v6752_v1, 16 }
 0x473   :  { %v3859_v15 = vclz %v3858_v14  ;;  %v3877_v4 = vsub.s32 4, %v6750_v32  ;;  %v3984_v34 = vmul.u32 %v3982_v24, %v3957_v57  ;;  %v3494_v3 = vand.u32 65535, %v6794_v19 }
 0x474   :  { %v3944_v40 = vsel %vm3940_vm7, %v3924_v22, %v3927_v29  ;;  %v3946_v18 = vsel %vm3942_vm8, %v3930_v20, %v3945_v11  ;;  %v3961_v13 = vmul.u32 %v3959_v60, %v3957_v57  ;;  %v3965_v62 = vshll.u32 %v3962_v9, 16 }
 0x475   :  { %v4210_v45 = vadd.s32 4294967294, %v3859_v15  ;;  %v3983_v47 = vmul.u32 %v3981_v42, %v3957_v57  ;;  %v3985_v33 = vmul.u32 %v3981_v42, %v3958_v38  ;;  %v3987_v8 = vshll.u32 %v3984_v34, 16 }
 0x476   :  { %v3964_v59 = vmul.u32 %v3960_v10, %v3958_v38  ;;  %v3967_v58 = vshll.u32 %v3963_v48, 16  ;;  %vm3969_vm9 = vc.u32 %v3961_v13, %v3965_v62  ;;  %v3971_v14 = vadd.s32 %v3965_v62, %v3961_v13 }
 0x477   :  { %vm4211_vm14 = vcmp.lt.s32.totalorder %v4210_v45, 0  ;;  %v3970_v55 = vsel %vm3969_vm9, 1, %v7712_v50  ;;  %v3986_v12 = vmul.u32 %v3982_v24, %v3958_v38  ;;  %vm3991_vm4 = vc.u32 %v3983_v47, %v3987_v8 }
 0x478   :  { %v3862_v49 = vsel %vm4211_vm14, 0, %v4210_v45  ;;  %v3972_v29 = vadd.s32 %v3970_v55, %v3964_v59  ;;  %vm3973_vm7 = vc.u32 %v3971_v14, %v3967_v58  ;;  %v3992_v20 = vsel %vm3991_vm4, 1, %v7712_v50 }
 0x479   :  { %v3863_v22 = vsub.s32 32, %v3862_v49  ;;  %v3867_v60 = vsub.s32 4294967266, %v3862_v49  ;;  %v3878_v57 = vsel %vm3755_vm1, %v3877_v4, %v6750_v32  ;;  %v3495_v10 = vshrl.u32 %v6794_v19, 16 }
 0x47a   :  { %v3974_v13 = vsel %vm3973_vm7, 1, %v7712_v50  ;;  %v3989_v62 = vshll.u32 %v3985_v33, 16  ;;  %v3993_v11 = vadd.s32 %v3987_v8, %v3983_v47  ;;  %v3994_v42 = vadd.s32 %v3992_v20, %v3986_v12 }
 0x47b   :  { %v7775_v38 = vand.u32 2147483647, %v6461_v17  ;;  %v3864_v58 = vshll.u32 %v6778_v2, %v3862_v49  ;;  %v3865_v59 = vshrl.u32 %v6728_v16, %v3863_v22  ;;  %v3868_v24 = vadd.s32 127, %v3867_v60 }
 0x47c   :  { %v3947_v32 = vsel %vm3941_vm15, %v3944_v40, %v3946_v18  ;;  %v3966_v19 = vshrl.u32 %v3962_v9, 16  ;;  %v3968_v15 = vshrl.u32 %v3963_v48, 16  ;;  %v3976_v4 = vadd.s32 %v3974_v13, %v3972_v29 }
 0x47d   :  { %vm6823_vm8 = vcmp.le.f32.partialorder %v7775_v38, 0.7853982  ;;  %vm3995_vm13 = vc.u32 %v3993_v11, %v3989_v62  ;;  %v3866_v47 = vor.u32 %v3865_v59, %v3864_v58  ;;  %v3869_v12 = vshll.u32 %v3868_v24, 23 }
 0x47e   :  { %v3996_v8 = vsel %vm3995_vm13, 1, %v7712_v50  ;;  %v6833_v45 = vmul.u32 %v3495_v10, %v6802_v27  ;;  %v3977_v14 = vadd.s32 %v3976_v4, %v3966_v19  ;;  %v3988_v20 = vshrl.u32 %v3984_v34, 16 }
 0x47f   :  { %v3998_v49 = vadd.s32 %v3996_v8, %v3994_v42  ;;  %v6836_v16 = vmul.u32 %v3494_v3, %v6806_v53  ;;  %v3870_v2 = vor.u32 4788187, %v3869_v12  ;;  %v3990_v7 = vshrl.u32 %v3985_v33, 16 }
 0x480   :  { %v3496_v9 = vmul.u32 %v3494_v3, %v6802_v27  ;;  %v3500_v48 = vshll.u32 %v6833_v45, 16  ;;  %v3873_v40 = vcvt.s32.f32 %v3866_v47  ;;  %v6840_v18 = vadd.s32 %v3977_v14, %v3968_v15 }
 0x481   :  { %v3997_v29 = vadd.s32 %v3993_v11, %v3989_v62  ;;  %v3999_v22 = vadd.s32 %v3998_v49, %v3988_v20  ;;  %v3871_v60 = vand.u32 2147483647, %v3870_v2  ;;  %v3502_v13 = vshll.u32 %v6836_v16, 16 }
 0x482   :  { %vm3504_vm15 = vc.u32 %v3496_v9, %v3500_v48  ;;  %v3506_v34 = vadd.s32 %v3500_v48, %v3496_v9  ;;  %v3499_v38 = vmul.u32 %v3495_v10, %v6806_v53  ;;  %v3516_v33 = vand.u32 65535, %v6790_v61 }
 0x483   :  { %v4000_v42 = vadd.s32 %v3999_v22, %v3990_v7  ;;  %v3505_v58 = vsel %vm3504_vm15, 1, %v7712_v50  ;;  %v3874_v3 = vmul.f32 %v3873_v40, %v3871_v60  ;;  %vm4003_vm9 = vc.u32 %v6840_v18, %v3997_v29 }
 0x484   :  { %vm3508_vm14 = vc.u32 %v3506_v34, %v3502_v13  ;;  %v3517_v59 = vshrl.u32 %v6790_v61, 16  ;;  %v7778_v62 = vor.u32 %v6659_v36, %v6651_v56  ;;  %v3880_v10 = vsel %vm6823_vm8, 0, %v3878_v57 }
 0x485   :  { %v4004_v24 = vadd.s32 1, %v4000_v42  ;;  %v3480_v19 = vsel %vm3478_vm3, %v6733_v35, 2102212464  ;;  %v3875_v15 = vxor.u32 2147483648, %v3874_v3  ;;  %v4001_v4 = vmul.u32 %v6703_v43, %v3947_v32 }
 0x486   :  { %v6853_v11 = vsel %vm3633_vm11, %v7778_v62, 1326507024  ;;  %v3507_v47 = vadd.s32 %v3505_v58, %v3499_v38  ;;  %v3519_v61 = vmul.u32 %v3517_v59, %v6802_v27  ;;  %v3459_v36 = vshrl.u32 %v7713_v26, %v6523_v41 }
 0x487   :  { %v4005_v12 = vsel %vm4003_vm9, %v4004_v24, %v4000_v42  ;;  %v3509_v56 = vsel %vm3508_vm14, 1, %v7712_v50  ;;  %v3520_v8 = vmul.u32 %v3516_v33, %v6806_v53  ;;  %v3876_v57 = vsel %vm3755_vm1, %v3875_v15, %v3874_v3 }
 0x488   :  { %v4006_v14 = vadd.s32 %v4005_v12, %v4001_v4  ;;  %v3518_v35 = vmul.u32 %v3516_v33, %v6802_v27  ;;  %v3522_v20 = vshll.u32 %v3519_v61, 16  ;;  %v6872_v43 = vsel %vm6823_vm8, %v6461_v17, %v3876_v57 }
 0x489   :  { %v3897_v32 = vadd.s32 3, %v3880_v10  ;;  %v3479_v41 = vsel %vm3475_vm0, %v3459_v36, %v6719_v0  ;;  %v3481_v49 = vsel %vm3477_vm5, %v6721_v37, %v3480_v19  ;;  %v3881_v2 = vmul.f32 %v6872_v43, %v6872_v43 }
 0x48a   :  { %v4007_v7 = vadd.s32 536870912, %v4006_v14  ;;  %v3511_v27 = vadd.s32 %v3509_v56, %v3507_v47  ;;  %vm3526_vm3 = vc.u32 %v3518_v35, %v3522_v20  ;;  %v3521_v9 = vmul.u32 %v3517_v59, %v6806_v53 }
 0x48b   :  { %v3524_v55 = vshll.u32 %v3520_v8, 16  ;;  %v3527_v48 = vsel %vm3526_vm3, 1, %v7712_v50  ;;  %v3528_v40 = vadd.s32 %v3522_v20, %v3518_v35  ;;  %v6886_v22 = vshrl.u32 %v7681_v21, %v6607_v54 }
 0x48c   :  { %v3882_v0 = vmul.f32 -0.001358992, %v3881_v2  ;;  %v3889_v60 = vmul.f32 -0.00019511016, %v3881_v2  ;;  %v4008_v13 = vshrl.u32 %v4007_v7, 30  ;;  %vm3910_vm0 = vcmp.lt.s32.totalorder %v6526_v30, 0 }
 0x48d   :  { %v3501_v37 = vshrl.u32 %v6833_v45, 16  ;;  %v3529_v34 = vadd.s32 %v3527_v48, %v3521_v9  ;;  %vm3530_vm5 = vc.u32 %v3528_v40, %v3524_v55  ;;  %v3598_v42 = vand.u32 2147483647, %v6488_v28 }
 0x48e   :  { %v3883_v53 = vadd.f32 0.041655596, %v3882_v0  ;;  %v3890_v38 = vadd.f32 0.008332121, %v3889_v60  ;;  %v4009_v58 = vshll.u32 %v4008_v13, 30  ;;  %v3482_v33 = vsel %vm3476_vm12, %v3479_v41, %v3481_v49 }
 0x48f   :  { %v6893_v3 = vand.u32 3, %v3897_v32  ;;  %v3503_v59 = vshrl.u32 %v6836_v16, 16  ;;  %v3512_v62 = vadd.s32 %v3511_v27, %v3501_v37  ;;  %v3531_v10 = vsel %vm3530_vm5, 1, %v7712_v50 }
 0x490   :  { %v3884_v24 = vmul.f32 %v3883_v53, %v3881_v2  ;;  %v3891_v19 = vmul.f32 %v3890_v38, %v3881_v2  ;;  %v7779_v45 = vand.u32 2147483647, %v6526_v30  ;;  %v4002_v4 = vadd.s32 %v3997_v29, %v6840_v18 }
 0x491   :  { %v6904_v47 = vsub.s32 %v4006_v14, %v4009_v58  ;;  %v4032_v23 = vsub.s32 4, %v4008_v13  ;;  %v3523_v12 = vshrl.u32 %v3519_v61, 16  ;;  %v3533_v36 = vadd.s32 %v3531_v10, %v3529_v34 }
 0x492   :  { %vm6899_vm1 = vcmp.le.f32.partialorder %v7779_v45, 0.7853982  ;;  %v6908_v16 = vand.u32 8388607, %v3598_v42  ;;  %v3885_v56 = vadd.f32 -0.4999988, %v3884_v24  ;;  %v6914_v18 = vadd.s32 %v3512_v62, %v3503_v59 }
 0x493   :  { %v3892_v57 = vadd.f32 -0.16666654, %v3891_v19  ;;  %vm4011_vm12 = vcmp.lt.s32.totalorder %v6904_v47, 0  ;;  %v4012_v35 = vsub.s32 0, %v6904_v47  ;;  %vm3900_vm4 = vcmp.eq.s32.totalorder %v6893_v3, 0 }
 0x494   :  { %vm3903_vm7 = vcmp.eq.s32.totalorder %v6893_v3, 2  ;;  %v3525_v29 = vshrl.u32 %v3520_v8, 16  ;;  %v3534_v14 = vadd.s32 %v3533_v36, %v3523_v12  ;;  %v3536_v61 = vmul.u32 %v6752_v1, %v3482_v33 }
 0x495   :  { %v3886_v20 = vmul.f32 %v3885_v56, %v3881_v2  ;;  %v3893_v32 = vmul.f32 %v3892_v57, %v3881_v2  ;;  %vm3899_vm8 = vcmp.lt.s32.totalorder %v6893_v3, 2  ;;  %v4013_v41 = vsel %vm4011_vm12, %v4012_v35, %v6904_v47 }
 0x496   :  { %v6919_v49 = vadd.s32 %v3528_v40, %v3524_v55  ;;  %vm3896_vm13 = vweird.f32 %v6461_v17  ;;  %v4014_v7 = vclz %v4013_v41  ;;  %v3535_v27 = vadd.s32 %v3534_v14, %v3525_v29 }
 0x497   :  { %v3606_v9 = vor.u32 8388608, %v6908_v16  ;;  %v3619_v8 = vshrl.u32 %v7715_v25, %v6593_v6  ;;  %v3887_v48 = vadd.f32 1.0, %v3886_v20  ;;  %v3894_v0 = vadd.f32 1.0, %v3893_v32 }
 0x498   :  { %v4033_v1 = vsel %vm3910_vm0, %v4032_v23, %v4008_v13  ;;  %v3622_v2 = vshrl.u32 %v7679_v52, %v6593_v6  ;;  %v4213_v60 = vadd.s32 4294967294, %v4014_v7  ;;  %vm3538_vm15 = vc.u32 %v6914_v18, %v6919_v49 }
 0x499   :  { %v3616_v55 = vshrl.u32 %v7714_v46, %v6593_v6  ;;  %v3618_v40 = vshll.u32 %v7714_v46, %v6572_v63  ;;  %v3895_v37 = vmul.f32 %v3894_v0, %v6872_v43  ;;  %v3904_v34 = vxor.u32 2147483648, %v3887_v48 }
 0x49a   :  { %v3539_v53 = vadd.s32 1, %v3535_v27  ;;  %v3621_v13 = vshll.u32 %v7715_v25, %v6572_v63  ;;  %vm4214_vm9 = vcmp.lt.s32.totalorder %v4213_v60, 0  ;;  %v4035_v38 = vsel %vm6899_vm1, 0, %v4033_v1 }
 0x49b   :  { %v3615_v58 = vshll.u32 %v7713_v26, %v6572_v63  ;;  %v6942_v33 = vor.u32 %v3619_v8, %v3618_v40  ;;  %v3901_v59 = vxor.u32 2147483648, %v3895_v37  ;;  %v4017_v62 = vsel %vm4214_vm9, 0, %v4213_v60  ;;  %v7782_v60 = vld [vmem:[#allocation10_spill] sm:$0xff] }
 0x49c   :  { %v3540_v10 = vsel %vm3538_vm15, %v3539_v53, %v3535_v27  ;;  %v3623_v24 = vor.u32 %v3622_v2, %v3621_v13  ;;  %v4018_v19 = vsub.s32 32, %v4017_v62  ;;  %v4022_v43 = vsub.s32 4294967266, %v4017_v62 }
 0x49d   :  { %v3541_v45 = vadd.s32 %v3540_v10, %v3536_v61  ;;  %v3617_v23 = vor.u32 %v3616_v55, %v3615_v58  ;;  %v3902_v12 = vsel %vm3900_vm4, %v3887_v48, %v3901_v59  ;;  %v3905_v36 = vsel %vm3903_vm7, %v3904_v34, %v3895_v37 }
 0x49e   :  { %v4019_v16 = vshll.u32 %v6904_v47, %v4017_v62  ;;  %vm3630_vm14 = vcmp.lt.s32.totalorder %v6647_v39, 1  ;;  %v3906_v63 = vsel %vm3899_vm8, %v3902_v12, %v3905_v36  ;;  %v4020_v56 = vshrl.u32 %v4002_v4, %v4018_v19 }
 0x49f   :  { %v4023_v57 = vadd.s32 127, %v4022_v43  ;;  %v3542_v35 = vadd.s32 536870912, %v3541_v45  ;;  %v3907_v29 = vsel %vm3896_vm13, nan, %v3906_v63  ;;  %vm3631_vm3 = vcmp.lt.s32.totalorder %v6647_v39, 2 }
 0x4a0   :  { %vm3632_vm5 = vcmp.lt.s32.totalorder %v6647_v39, 3  ;;  %v3642_v14 = vsel %vm3630_vm14, %v6942_v33, %v3623_v24  ;;  %4084 = vmatpush.msrb.mxu0 %v3907_v29  ;;  %v4021_v47 = vor.u32 %v4020_v56, %v4019_v16  ;;  %v3638_v17 = vsel %vm3630_vm14, %v3617_v23, %v6942_v33 }
 0x4a1   :  { %v4024_v61 = vshll.u32 %v4023_v57, 23  ;;  %v3543_v20 = vshrl.u32 %v3542_v35, 30  ;;  %v3644_v3 = vsel %vm3632_vm5, %v6655_v31, %v6853_v11  ;;  %v3640_v4 = vsel %vm3632_vm5, %v3623_v24, %v6714_v5 }
 0x4a2   :  { %v3645_v32 = vsel %vm3631_vm3, %v3642_v14, %v3644_v3  ;;  %v6971_v41 = vshll.u32 %v3606_v9, 8  ;;  %v6975_v7 = vor.u32 %v6643_v51, %v6633_v44  ;;  %v4052_v8 = vadd.s32 3, %v4035_v38 }
 0x4a3   :  { %v4025_v27 = vor.u32 4788187, %v4024_v61  ;;  %v3544_v31 = vshll.u32 %v3543_v20, 30  ;;  %v3649_v0 = vand.u32 65535, %v3645_v32  ;;  %v3650_v1 = vshrl.u32 %v3645_v32, 16 }
 0x4a4   :  { %v3647_v11 = vand.u32 65535, %v6971_v41  ;;  %v3648_v48 = vshrl.u32 %v6971_v41, 16  ;;  %v4028_v5 = vcvt.s32.f32 %v4021_v47  ;;  %vm3445_vm12 = vcmp.lt.s32.totalorder %v7782_v60, 0 }
 0x4a5   :  { %v4026_v2 = vand.u32 2147483647, %v4025_v27  ;;  %v3545_v55 = vsub.s32 %v3541_v45, %v3544_v31  ;;  %v3641_v9 = vsel %vm3631_vm3, %v3638_v17, %v3640_v4  ;;  %v3537_v44 = vadd.s32 %v6919_v49, %v6914_v18 }
 0x4a6   :  { %v3614_v51 = vshrl.u32 %v7713_v26, %v6593_v6  ;;  %v3652_v40 = vmul.u32 %v3650_v1, %v3647_v11  ;;  %v6986_v37 = vmul.u32 %v3649_v0, %v3648_v48  ;;  %v6988_v53 = vand.u32 3, %v4052_v8 }
 0x4a7   :  { %v4029_v34 = vmul.f32 %v4028_v5, %v4026_v2  ;;  %vm3546_vm4 = vcmp.lt.s32.totalorder %v3545_v55, 0  ;;  %v3547_v13 = vsub.s32 0, %v3545_v55  ;;  %v3635_v38 = vsel %vm3633_vm11, %v3623_v24, 2102212464 }
 0x4a8   :  { %v3651_v58 = vmul.u32 %v3649_v0, %v3647_v11  ;;  %v3655_v59 = vshll.u32 %v3652_v40, 16  ;;  %v3671_v62 = vand.u32 65535, %v3641_v9  ;;  %v3567_v18 = vsub.s32 4, %v3543_v20 }
 0x4a9   :  { %v4030_v10 = vxor.u32 2147483648, %v4029_v34  ;;  %v3548_v19 = vsel %vm3546_vm4, %v3547_v13, %v3545_v55  ;;  %v3672_v49 = vshrl.u32 %v3641_v9, 16  ;;  %v3657_v6 = vshll.u32 %v6986_v37, 16 }
 0x4aa   :  { %v3549_v43 = vclz %v3548_v19  ;;  %vm3659_vm7 = vc.u32 %v3651_v58, %v3655_v59  ;;  %v3661_v45 = vadd.s32 %v3655_v59, %v3651_v58  ;;  %v3634_v36 = vsel %vm3630_vm14, %v3614_v51, %v3617_v23 }
 0x4ab   :  { %v4031_v12 = vsel %vm3910_vm0, %v4030_v10, %v4029_v34  ;;  %v3636_v24 = vsel %vm3632_vm5, %v6942_v33, %v3635_v38  ;;  %v3654_v16 = vmul.u32 %v3650_v1, %v3648_v48  ;;  %v3660_v57 = vsel %vm3659_vm7, 1, %v7712_v50 }
 0x4ac   :  { %v7003_v63 = vsel %vm6899_vm1, %v6526_v30, %v4031_v12  ;;  %v4204_v56 = vadd.s32 4294967294, %v3549_v43  ;;  %vm3663_vm11 = vc.u32 %v3661_v45, %v3657_v6  ;;  %v7783_v29 = vand.u32 2147483647, %v7782_v60 }
 0x4ad   :  { %v4036_v35 = vmul.f32 %v7003_v63, %v7003_v63  ;;  %v3662_v33 = vadd.s32 %v3660_v57, %v3654_v16  ;;  %v3664_v14 = vsel %vm3663_vm11, 1, %v7712_v50  ;;  %v3674_v47 = vmul.u32 %v3672_v49, %v3647_v11 }
 0x4ae   :  { %vm7010_vm0 = vcmp.le.f32.partialorder %v7783_v29, 0.7853982  ;;  %vm4205_vm8 = vcmp.lt.s32.totalorder %v4204_v56, 0  ;;  %v3568_v15 = vsel %vm3445_vm12, %v3567_v18, %v3543_v20  ;;  %v7019_v61 = vsel %vm3631_vm3, %v3634_v36, %v3636_v24 }
 0x4af   :  { %v3675_v3 = vmul.u32 %v3671_v62, %v3648_v48  ;;  %v4037_v17 = vmul.f32 -0.001358992, %v4036_v35  ;;  %v4044_v4 = vmul.f32 -0.00019511016, %v4036_v35  ;;  %v3552_v32 = vsel %vm4205_vm8, 0, %v4204_v56  ;;  %v7786_v56 = vld [vmem:[#allocation20_spill] sm:$0xff] }
 0x4b0   :  { %v3666_v27 = vadd.s32 %v3664_v14, %v3662_v33  ;;  %v3553_v8 = vsub.s32 32, %v3552_v32  ;;  %v3557_v31 = vsub.s32 4294967266, %v3552_v32  ;;  %v3656_v0 = vshrl.u32 %v3652_v40, 16 }
 0x4b1   :  { %v3677_v1 = vshll.u32 %v3674_v47, 16  ;;  %v4038_v2 = vadd.f32 0.041655596, %v4037_v17  ;;  %v4045_v5 = vadd.f32 0.008332121, %v4044_v4  ;;  %v3673_v9 = vmul.u32 %v3671_v62, %v3647_v11 }
 0x4b2   :  { %v3676_v51 = vmul.u32 %v3672_v49, %v3648_v48  ;;  %v3554_v34 = vshll.u32 %v3545_v55, %v3552_v32  ;;  %v3555_v13 = vshrl.u32 %v3537_v44, %v3553_v8  ;;  %v3558_v20 = vadd.s32 127, %v3557_v31  ;;  %v7787_v8 = vld [vmem:[#allocation14_spill] sm:$0xff] }
 0x4b3   :  { %v3667_v38 = vadd.s32 %v3666_v27, %v3656_v0  ;;  %v4039_v39 = vmul.f32 %v4038_v2, %v4036_v35  ;;  %v4046_v58 = vmul.f32 %v4045_v5, %v4036_v35  ;;  %v3679_v59 = vshll.u32 %v3675_v3, 16 }
 0x4b4   :  { %vm3681_vm1 = vc.u32 %v3673_v9, %v3677_v1  ;;  %vm4058_vm13 = vcmp.eq.s32.totalorder %v6988_v53, 2  ;;  %v3556_v10 = vor.u32 %v3555_v13, %v3554_v34  ;;  %v3559_v19 = vshll.u32 %v3558_v20, 23 }
 0x4b5   :  { %v3682_v18 = vsel %vm3681_vm1, 1, %v7712_v50  ;;  %v3683_v40 = vadd.s32 %v3677_v1, %v3673_v9  ;;  %v4040_v43 = vadd.f32 -0.4999988, %v4039_v39  ;;  %v4047_v6 = vadd.f32 -0.16666654, %v4046_v58 }
 0x4b6   :  { %v3658_v11 = vshrl.u32 %v6986_v37, 16  ;;  %v3684_v48 = vadd.s32 %v3682_v18, %v3676_v51  ;;  %vm4055_vm15 = vcmp.eq.s32.totalorder %v6988_v53, 0  ;;  %v3560_v55 = vor.u32 4788187, %v3559_v19 }
 0x4b7   :  { %v3570_v44 = vsel %vm7010_vm0, 0, %v3568_v15  ;;  %v3678_v62 = vshrl.u32 %v3674_v47, 16  ;;  %vm3685_vm9 = vc.u32 %v3683_v40, %v3679_v59  ;;  %v4041_v49 = vmul.f32 %v4040_v43, %v4036_v35  ;;  %v7789_v43 = vld [vmem:[#allocation23_spill] sm:$0xff] }
 0x4b8   :  { %v4048_v45 = vmul.f32 %v4047_v6, %v4036_v35  ;;  %vm4054_vm14 = vcmp.lt.s32.totalorder %v6988_v53, 2  ;;  %v7028_v12 = vadd.s32 %v3667_v38, %v3658_v11  ;;  %v3686_v36 = vsel %vm3685_vm9, 1, %v7712_v50 }
 0x4b9   :  { %vm4051_vm3 = vweird.f32 %v6526_v30  ;;  %v3561_v37 = vand.u32 2147483647, %v3560_v55  ;;  %v3563_v24 = vcvt.s32.f32 %v3556_v10  ;;  %v3688_v16 = vadd.s32 %v3686_v36, %v3684_v48  ;;  %v7792_v36 = vld [vmem:[#allocation22_spill] sm:$0xff] }
 0x4ba   :  { %v3133_v57 = vand.u32 2147483647, %v7786_v56  ;;  %v4042_v29 = vadd.f32 1.0, %v4041_v49  ;;  %v4049_v33 = vadd.f32 1.0, %v4048_v45  ;;  %v7033_v14 = vadd.s32 %v3683_v40, %v3679_v59  ;;  %v7791_v45 = vld [vmem:[#allocation12_spill] sm:$0xff] }
 0x4bb   :  { %v3691_v35 = vmul.u32 %v6971_v41, %v7019_v61  ;;  %v3564_v47 = vmul.f32 %v3563_v24, %v3561_v37  ;;  %v3587_v15 = vadd.s32 3, %v3570_v44  ;;  %v3680_v17 = vshrl.u32 %v3675_v3, 16  ;;  %v7790_v44 = vld [vmem:[#allocation5_spill] sm:$0xff] }
 0x4bc   :  { %v3689_v4 = vadd.s32 %v3688_v16, %v3678_v62  ;;  %v4050_v32 = vmul.f32 %v4049_v33, %v7003_v63  ;;  %v4059_v27 = vxor.u32 2147483648, %v4042_v29  ;;  %vm3693_vm5 = vc.u32 %v7028_v12, %v7033_v14  ;;  %v7788_v63 = vld [vmem:[#allocation15_spill] sm:$0xff]  ;;  %v7793_v33 = vld [vmem:[#allocation17_spill] sm:$0xff] }
 0x4bd   :  { %v3151_v31 = vshrl.u32 %v7714_v46, %v7787_v8  ;;  %v3565_v0 = vxor.u32 2147483648, %v3564_v47  ;;  %v3140_v2 = vand.u32 8388607, %v3133_v57  ;;  %v3154_v41 = vshrl.u32 %v7715_v25, %v7787_v8 }
 0x4be   :  { %v3690_v1 = vadd.s32 %v3689_v4, %v3680_v17  ;;  %v4056_v61 = vxor.u32 2147483648, %v4050_v32  ;;  %v4060_v3 = vsel %vm4058_vm13, %v4059_v27, %v4050_v32  ;;  %v3150_v5 = vshll.u32 %v7713_v26, %v7788_v63 }
 0x4bf   :  { %v3153_v9 = vshll.u32 %v7714_v46, %v7788_v63  ;;  %v3566_v51 = vsel %vm3445_vm12, %v3565_v0, %v3564_v47  ;;  %v3156_v13 = vshll.u32 %v7715_v25, %v7788_v63  ;;  %v3157_v20 = vshrl.u32 %v7679_v52, %v7787_v8 }
 0x4c0   :  { %v3694_v34 = vadd.s32 1, %v3690_v1  ;;  %v4057_v38 = vsel %vm4055_vm15, %v4042_v29, %v4056_v61  ;;  %v7063_v39 = vsel %vm7010_vm0, %v7782_v60, %v3566_v51  ;;  %v7065_v58 = vor.u32 %v3151_v31, %v3150_v5  ;;  %v7795_v31 = vld [vmem:[#allocation21_spill] sm:$0xff] }
 0x4c1   :  { %v7067_v59 = vor.u32 %v3154_v41, %v3153_v9  ;;  %v4061_v10 = vsel %vm4054_vm14, %v4057_v38, %v4060_v3  ;;  %v3571_v19 = vmul.f32 %v7063_v39, %v7063_v39  ;;  %v3158_v40 = vor.u32 %v3157_v20, %v3156_v13 }
 0x4c2   :  { %v3695_v18 = vsel %vm3693_vm5, %v3694_v34, %v3690_v1  ;;  %v3319_v23 = vor.u32 %v6886_v22, %v7789_v43  ;;  %v4062_v6 = vsel %vm4051_vm3, nan, %v4061_v10  ;;  %v3141_v48 = vor.u32 8388608, %v3140_v2 }
 0x4c3   :  { %v3696_v11 = vadd.s32 %v3695_v18, %v3691_v35  ;;  %4104 = vmatpush.msrb.mxu1 %v4062_v6  ;;  %v3572_v55 = vmul.f32 -0.001358992, %v3571_v19  ;;  %v3579_v53 = vmul.f32 -0.00019511016, %v3571_v19  ;;  %vm3165_vm12 = vcmp.lt.s32.totalorder %v7790_v44, 1  ;;  %v7794_v35 = vld [vmem:[#allocation7_spill] sm:$0xff] }
 0x4c4   :  { %vm3167_vm4 = vcmp.lt.s32.totalorder %v7790_v44, 3  ;;  %v3173_v49 = vsel %vm3165_vm12, %v7065_v58, %v7067_v59  ;;  %v3177_v22 = vsel %vm3165_vm12, %v7067_v59, %v3158_v40  ;;  %vm3323_vm7 = vcmp.lt.s32.totalorder %v7792_v36, 4 }
 0x4c5   :  { %v3697_v62 = vadd.s32 536870912, %v3696_v11  ;;  %v3175_v30 = vsel %vm3167_vm4, %v3158_v40, %v7791_v45  ;;  %v3573_v37 = vadd.f32 0.041655596, %v3572_v55  ;;  %v3580_v24 = vadd.f32 0.008332121, %v3579_v53 }
 0x4c6   :  { %v3588_v16 = vand.u32 3, %v3587_v15  ;;  %vm3166_vm11 = vcmp.lt.s32.totalorder %v7790_v44, 2  ;;  %v3179_v47 = vsel %vm3167_vm4, %v7794_v35, %v7793_v33  ;;  %v7100_v17 = vshll.u32 %v3141_v48, 8  ;;  %v7799_v44 = vld [vmem:[#allocation4_spill] sm:$0xff] }
 0x4c7   :  { %v7093_v29 = vshrl.u32 %v3697_v62, 30  ;;  %v3574_v4 = vmul.f32 %v3573_v37, %v3571_v19  ;;  %v3581_v32 = vmul.f32 %v3580_v24, %v3571_v19  ;;  %v7104_v27 = vsel %vm3166_vm11, %v3173_v49, %v3175_v30 }
 0x4c8   :  { %v3180_v15 = vsel %vm3166_vm11, %v3177_v22, %v3179_v47  ;;  %v7109_v0 = vand.u32 31, %v7795_v31  ;;  %v7114_v1 = vsel %vm3323_vm7, %v6975_v7, 920167782  ;;  %v7118_v2 = vsel %vm3323_vm7, %v3319_v23, 1326507024 }
 0x4c9   :  { %v3699_v41 = vshll.u32 %v7093_v29, 30  ;;  %v3575_v61 = vadd.f32 -0.4999988, %v3574_v4  ;;  %v3582_v3 = vadd.f32 -0.16666654, %v3581_v32  ;;  %vm3593_vm0 = vcmp.eq.s32.totalorder %v3588_v16, 2 }
 0x4ca   :  { %v3185_v63 = vshrl.u32 %v3180_v15, 16  ;;  %vm3590_vm8 = vcmp.eq.s32.totalorder %v3588_v16, 0  ;;  %v3182_v9 = vand.u32 65535, %v7100_v17  ;;  %v3184_v51 = vand.u32 65535, %v3180_v15 }
 0x4cb   :  { %v7121_v5 = vsub.s32 %v3696_v11, %v3699_v41  ;;  %v3207_v34 = vshrl.u32 %v7104_v27, 16  ;;  %v3576_v13 = vmul.f32 %v3575_v61, %v3571_v19  ;;  %v3583_v20 = vmul.f32 %v3582_v3, %v3571_v19 }
 0x4cc   :  { %vm3589_vm1 = vcmp.lt.s32.totalorder %v3588_v16, 2  ;;  %v3692_v38 = vadd.s32 %v7033_v14, %v7028_v12  ;;  %v3206_v10 = vand.u32 65535, %v7104_v27  ;;  %vm3586_vm13 = vweird.f32 %v7782_v60 }
 0x4cd   :  { %vm3701_vm15 = vcmp.lt.s32.totalorder %v7121_v5, 0  ;;  %v3702_v18 = vsub.s32 0, %v7121_v5  ;;  %v3183_v43 = vshrl.u32 %v7100_v17, 16  ;;  %v3187_v23 = vmul.u32 %v3185_v63, %v3182_v9 }
 0x4ce   :  { %v3577_v6 = vadd.f32 1.0, %v3576_v13  ;;  %v3584_v11 = vadd.f32 1.0, %v3583_v20  ;;  %v3149_v19 = vshrl.u32 %v7713_v26, %v7787_v8  ;;  %v3170_v48 = vsel %vm3168_vm2, %v3158_v40, 2102212464 }
 0x4cf   :  { %v3703_v12 = vsel %vm3701_vm15, %v3702_v18, %v7121_v5  ;;  %v3188_v14 = vmul.u32 %v3184_v51, %v3183_v43  ;;  %v3190_v55 = vshll.u32 %v3187_v23, 16  ;;  %v7137_v53 = vmul.u32 %v3207_v34, %v3182_v9 }
 0x4d0   :  { %v3585_v62 = vmul.f32 %v3584_v11, %v7063_v39  ;;  %v3594_v49 = vxor.u32 2147483648, %v3577_v6  ;;  %v3704_v45 = vclz %v3703_v12  ;;  %v3186_v30 = vmul.u32 %v3184_v51, %v3182_v9 }
 0x4d1   :  { %v3722_v22 = vsub.s32 4, %v7093_v29  ;;  %v3169_v8 = vsel %vm3165_vm12, %v3149_v19, %v7065_v58  ;;  %v3171_v40 = vsel %vm3167_vm4, %v7067_v59, %v3170_v48  ;;  %v3208_v37 = vmul.u32 %v3206_v10, %v3182_v9 }
 0x4d2   :  { %v3591_v24 = vxor.u32 2147483648, %v3585_v62  ;;  %v4207_v33 = vadd.s32 4294967294, %v3704_v45  ;;  %v3189_v35 = vmul.u32 %v3185_v63, %v3183_v43  ;;  %vm3194_vm2 = vc.u32 %v3186_v30, %v3190_v55 }
 0x4d3   :  { %v3595_v39 = vsel %vm3593_vm0, %v3594_v49, %v3585_v62  ;;  %v3192_v47 = vshll.u32 %v3188_v14, 16  ;;  %v3195_v4 = vsel %vm3194_vm2, 1, %v7712_v50  ;;  %v3196_v32 = vadd.s32 %v3190_v55, %v3186_v30 }
 0x4d4   :  { %v3592_v27 = vsel %vm3590_vm8, %v3577_v6, %v3591_v24  ;;  %vm4208_vm9 = vcmp.lt.s32.totalorder %v4207_v33, 0  ;;  %v3197_v15 = vadd.s32 %v3195_v4, %v3189_v35  ;;  %v3212_v58 = vshll.u32 %v7137_v53, 16 }
 0x4d5   :  { %v3596_v41 = vsel %vm3589_vm1, %v3592_v27, %v3595_v39  ;;  %v3707_v59 = vsel %vm4208_vm9, 0, %v4207_v33  ;;  %vm3198_vm14 = vc.u32 %v3196_v32, %v3192_v47  ;;  %v3210_v61 = vmul.u32 %v3206_v10, %v3183_v43 }
 0x4d6   :  { %v3597_v3 = vsel %vm3586_vm13, nan, %v3596_v41  ;;  %v3708_v63 = vsub.s32 32, %v3707_v59  ;;  %v3712_v9 = vsub.s32 4294967266, %v3707_v59  ;;  %v3191_v51 = vshrl.u32 %v3187_v23, 16 }
 0x4d7   :  { %4085 = vmatpush.msrb.mxu0 %v3597_v3  ;;  %v3709_v13 = vshll.u32 %v7121_v5, %v3707_v59  ;;  %v3199_v20 = vsel %vm3198_vm14, 1, %v7712_v50  ;;  %v3211_v18 = vmul.u32 %v3207_v34, %v3183_v43  ;;  %vm3216_vm3 = vc.u32 %v3208_v37, %v3212_v58  ;;  %v7798_v43 = vld [vmem:[#allocation6_spill] sm:$0xff] }
 0x4d8   :  { %vm7158_vm5 = vcmp.le.f32.partialorder %v3598_v42, 0.7853982  ;;  %v3710_v10 = vshrl.u32 %v3692_v38, %v3708_v63  ;;  %v3713_v6 = vadd.s32 127, %v3712_v9  ;;  %v3201_v60 = vadd.s32 %v3199_v20, %v3197_v15 }
 0x4d9   :  { %v3217_v11 = vsel %vm3216_vm3, 1, %v7712_v50  ;;  %vm3600_vm12 = vcmp.lt.s32.totalorder %v6488_v28, 0  ;;  %v3214_v23 = vshll.u32 %v3210_v61, 16  ;;  %v3218_v19 = vadd.s32 %v3212_v58, %v3208_v37 }
 0x4da   :  { %v3219_v5 = vadd.s32 %v3217_v11, %v3211_v18  ;;  %v3711_v48 = vor.u32 %v3710_v10, %v3709_v13  ;;  %v3714_v12 = vshll.u32 %v3713_v6, 23  ;;  %v3202_v34 = vadd.s32 %v3201_v60, %v3191_v51 }
 0x4db   :  { %v3288_v55 = vand.u32 2147483647, %v7798_v43  ;;  %v3723_v42 = vsel %vm3600_vm12, %v3722_v22, %v7093_v29  ;;  %v3172_v38 = vsel %vm3166_vm11, %v3169_v8, %v3171_v40  ;;  %v3193_v62 = vshrl.u32 %v3188_v14, 16 }
 0x4dc   :  { %vm3220_vm4 = vc.u32 %v3218_v19, %v3214_v23  ;;  %v3715_v49 = vor.u32 4788187, %v3714_v12  ;;  %v3213_v45 = vshrl.u32 %v7137_v53, 16  ;;  %v3215_v30 = vshrl.u32 %v3210_v61, 16 }
 0x4dd   :  { %v3221_v37 = vsel %vm3220_vm4, 1, %v7712_v50  ;;  %v7172_v24 = vadd.s32 %v3202_v34, %v3193_v62  ;;  %v7174_v33 = vadd.s32 %v3218_v19, %v3214_v23  ;;  %v3295_v39 = vand.u32 8388607, %v3288_v55 }
 0x4de   :  { %v3223_v35 = vadd.s32 %v3221_v37, %v3219_v5  ;;  %v3716_v29 = vand.u32 2147483647, %v3715_v49  ;;  %v3718_v22 = vcvt.s32.f32 %v3711_v48  ;;  %v3305_v14 = vshll.u32 %v7713_v26, %v7799_v44 }
 0x4df   :  { %v3306_v8 = vshrl.u32 %v7714_v46, %v6607_v54  ;;  %v3296_v40 = vor.u32 8388608, %v3295_v39  ;;  %v3308_v47 = vshll.u32 %v7714_v46, %v7799_v44  ;;  %v3309_v4 = vshrl.u32 %v7715_v25, %v6607_v54 }
 0x4e0   :  { %v3224_v53 = vadd.s32 %v3223_v35, %v3213_v45  ;;  %v3719_v32 = vmul.f32 %v3718_v22, %v3716_v29  ;;  %v3311_v15 = vshll.u32 %v7715_v25, %v7799_v44  ;;  %v3312_v58 = vshrl.u32 %v7679_v52, %v6607_v54 }
 0x4e1   :  { %v7186_v27 = vor.u32 %v3306_v8, %v3305_v14  ;;  %v3725_v41 = vsel %vm7158_vm5, 0, %v3723_v42  ;;  %vm3228_vm11 = vc.u32 %v7172_v24, %v7174_v33  ;;  %v7196_v61 = vor.u32 %v3309_v4, %v3308_v47 }
 0x4e2   :  { %v3225_v59 = vadd.s32 %v3224_v53, %v3215_v30  ;;  %v3720_v3 = vxor.u32 2147483648, %v3719_v32  ;;  %v7198_v63 = vor.u32 %v3312_v58, %v3311_v15  ;;  %vm3320_vm0 = vcmp.lt.s32.totalorder %v7792_v36, 1 }
 0x4e3   :  { %vm3322_vm8 = vcmp.lt.s32.totalorder %v7792_v36, 3  ;;  %v3328_v51 = vsel %vm3320_vm0, %v7186_v27, %v7196_v61  ;;  %v7210_v20 = vshll.u32 %v3296_v40, 8  ;;  %v3226_v10 = vmul.u32 %v7100_v17, %v3172_v38 }
 0x4e4   :  { %v3229_v9 = vadd.s32 1, %v3225_v59  ;;  %v3334_v13 = vsel %vm3322_vm8, %v6975_v7, %v7118_v2  ;;  %v3721_v18 = vsel %vm3600_vm12, %v3720_v3, %v3719_v32  ;;  %v3330_v6 = vsel %vm3322_vm8, %v7198_v63, %v7114_v1 }
 0x4e5   :  { %v3332_v60 = vsel %vm3320_vm0, %v7196_v61, %v7198_v63  ;;  %v7226_v7 = vsel %vm7158_vm5, %v6488_v28, %v3721_v18  ;;  %v3742_v2 = vadd.s32 3, %v3725_v41  ;;  %vm3321_vm1 = vcmp.lt.s32.totalorder %v7792_v36, 2 }
 0x4e6   :  { %v3230_v17 = vsel %vm3228_vm11, %v3229_v9, %v3225_v59  ;;  %v3726_v1 = vmul.f32 %v7226_v7, %v7226_v7  ;;  %v7236_v23 = vsel %vm3321_vm1, %v3328_v51, %v3330_v6  ;;  %v3335_v16 = vsel %vm3321_vm1, %v3332_v60, %v3334_v13 }
 0x4e7   :  { %v3231_v11 = vadd.s32 %v3230_v17, %v3226_v10  ;;  %v3337_v19 = vand.u32 65535, %v7210_v20  ;;  %v7242_v5 = vshrl.u32 %v7210_v20, 16  ;;  %v3339_v48 = vand.u32 65535, %v3335_v16 }
 0x4e8   :  { %v3340_v12 = vshrl.u32 %v3335_v16, 16  ;;  %v7245_v34 = vsub.s32 32, %v7109_v0  ;;  %v3727_v42 = vmul.f32 -0.001358992, %v3726_v1  ;;  %v3734_v38 = vmul.f32 -0.00019511016, %v3726_v1 }
 0x4e9   :  { %v3232_v62 = vadd.s32 536870912, %v3231_v11  ;;  %v7248_v49 = vshrl.u32 %v7795_v31, 5  ;;  %v7252_v45 = vshll.u32 %v7679_v52, %v7109_v0  ;;  %v7255_v37 = vmul.u32 %v3339_v48, %v7242_v5 }
 0x4ea   :  { %v3342_v30 = vmul.u32 %v3340_v12, %v3337_v19  ;;  %v3728_v35 = vadd.f32 0.041655596, %v3727_v42  ;;  %v3735_v39 = vadd.f32 0.008332121, %v3734_v38  ;;  %v3362_v22 = vshrl.u32 %v7236_v23, 16 }
 0x4eb   :  { %v7257_v29 = vshrl.u32 %v3232_v62, 30  ;;  %v7800_v44 = vmov 920167782   ;;  %v3743_v31 = vand.u32 3, %v3742_v2  ;;  %v3341_v8 = vmul.u32 %v3339_v48, %v3337_v19 }
 0x4ec   :  { %v7262_v14 = vshll.u32 %v7800_v44, %v7109_v0  ;;  %v3345_v53 = vshll.u32 %v3342_v30, 16  ;;  %v7266_v40 = vshrl.u32 %v7800_v44, %v7245_v34  ;;  %v3729_v47 = vmul.f32 %v3728_v35, %v3726_v1 }
 0x4ed   :  { %v3736_v4 = vmul.f32 %v3735_v39, %v3726_v1  ;;  %v3234_v32 = vshll.u32 %v7257_v29, 30  ;;  %v7271_v15 = vshrl.u32 %v7681_v21, %v7245_v34  ;;  %v3347_v58 = vshll.u32 %v7255_v37, 16 }
 0x4ee   :  { %vm3349_vm13 = vc.u32 %v3341_v8, %v3345_v53  ;;  %v3351_v41 = vadd.s32 %v3345_v53, %v3341_v8  ;;  %v3730_v59 = vadd.f32 -0.4999988, %v3729_v47  ;;  %v7276_v51 = vmul.u32 %v3362_v22, %v3337_v19 }
 0x4ef   :  { %v3737_v3 = vadd.f32 -0.16666654, %v3736_v4  ;;  %v7274_v9 = vsub.s32 %v3231_v11, %v3234_v32  ;;  %vm3745_vm15 = vcmp.eq.s32.totalorder %v3743_v31, 0  ;;  %vm3748_vm2 = vcmp.eq.s32.totalorder %v3743_v31, 2 }
 0x4f0   :  { %v3344_v13 = vmul.u32 %v3340_v12, %v7242_v5  ;;  %v3350_v18 = vsel %vm3349_vm13, 1, %v7712_v50  ;;  %vm3353_vm9 = vc.u32 %v3351_v41, %v3347_v58  ;;  %v3361_v21 = vand.u32 65535, %v7236_v23 }
 0x4f1   :  { %v3731_v10 = vmul.f32 %v3730_v59, %v3726_v1  ;;  %v3738_v6 = vmul.f32 %v3737_v3, %v3726_v1  ;;  %vm3744_vm14 = vcmp.lt.s32.totalorder %v3743_v31, 2  ;;  %vm3236_vm3 = vcmp.lt.s32.totalorder %v7274_v9, 0 }
 0x4f2   :  { %v3237_v60 = vsub.s32 0, %v7274_v9  ;;  %vm3741_vm5 = vweird.f32 %v6488_v28  ;;  %v3227_v2 = vadd.s32 %v7174_v33, %v7172_v24  ;;  %v3304_v17 = vshrl.u32 %v7713_v26, %v6607_v54 }
 0x4f3   :  { %v3352_v11 = vadd.s32 %v3350_v18, %v3344_v13  ;;  %v3354_v16 = vsel %vm3353_vm9, 1, %v7712_v50  ;;  %v3732_v48 = vadd.f32 1.0, %v3731_v10  ;;  %v3739_v23 = vadd.f32 1.0, %v3738_v6 }
 0x4f4   :  { %v3238_v1 = vsel %vm3236_vm3, %v3237_v60, %v7274_v9  ;;  %v3367_v12 = vshll.u32 %v7276_v51, 16  ;;  %vm3135_vm12 = vcmp.lt.s32.totalorder %v7786_v56, 0  ;;  %v3324_v38 = vsel %vm3320_vm0, %v3304_v17, %v7186_v27  ;;  %v7801_v60 = vld [vmem:[#allocation8_spill] sm:$0xff] }
 0x4f5   :  { %v3239_v42 = vclz %v3238_v1  ;;  %v3356_v24 = vadd.s32 %v3354_v16, %v3352_v11  ;;  %v3365_v33 = vmul.u32 %v3361_v21, %v7242_v5  ;;  %v3740_v54 = vmul.f32 %v3739_v23, %v7226_v7 }
 0x4f6   :  { %v3749_v62 = vxor.u32 2147483648, %v3732_v48  ;;  %v3346_v35 = vshrl.u32 %v3342_v30, 16  ;;  %v3363_v39 = vmul.u32 %v3361_v21, %v3337_v19  ;;  %v3257_v8 = vsub.s32 4, %v7257_v29 }
 0x4f7   :  { %v4198_v44 = vadd.s32 4294967294, %v3239_v42  ;;  %v3325_v53 = vsel %vm3323_vm7, %v7198_v63, 2102212464  ;;  %v3348_v47 = vshrl.u32 %v7255_v37, 16  ;;  %v3746_v4 = vxor.u32 2147483648, %v3740_v54  ;;  %v7804_v42 = vld [vmem:[#allocation19_spill] sm:$0xff] }
 0x4f8   :  { %v3357_v32 = vadd.s32 %v3356_v24, %v3346_v35  ;;  %v3366_v27 = vmul.u32 %v3362_v22, %v7242_v5  ;;  %vm3371_vm4 = vc.u32 %v3363_v39, %v3367_v12  ;;  %v3369_v58 = vshll.u32 %v3365_v33, 16  ;;  %v7805_v35 = vld [vmem:[#allocation16_spill] sm:$0xff] }
 0x4f9   :  { %vm4199_vm11 = vcmp.lt.s32.totalorder %v4198_v44, 0  ;;  %v3372_v7 = vsel %vm3371_vm4, 1, %v7712_v50  ;;  %v3373_v30 = vadd.s32 %v3367_v12, %v3363_v39  ;;  %v3747_v19 = vsel %vm3745_vm15, %v3732_v48, %v3746_v4 }
 0x4fa   :  { %v3750_v41 = vsel %vm3748_vm2, %v3749_v62, %v3740_v54  ;;  %v3242_v59 = vsel %vm4199_vm11, 0, %v4198_v44  ;;  %v3374_v3 = vadd.s32 %v3372_v7, %v3366_v27  ;;  %v3326_v5 = vsel %vm3322_vm8, %v7196_v61, %v3325_v53 }
 0x4fb   :  { %v3751_v63 = vsel %vm3744_vm14, %v3747_v19, %v3750_v41  ;;  %v3243_v13 = vsub.s32 32, %v3242_v59  ;;  %v3247_v37 = vsub.s32 4294967266, %v3242_v59  ;;  %v3244_v18 = vshll.u32 %v7274_v9, %v3242_v59 }
 0x4fc   :  { %v3752_v22 = vsel %vm3741_vm5, nan, %v3751_v63  ;;  %v7313_v21 = vadd.s32 %v3357_v32, %v3348_v47  ;;  %vm3375_vm7 = vc.u32 %v3373_v30, %v3369_v58  ;;  %v2823_v17 = vand.u32 2147483647, %v7801_v60  ;;  %v7808_v63 = vld [vmem:[#allocation3_spill] sm:$0xff] }
 0x4fd   :  { %4105 = vmatpush.msrb.mxu1 %v3752_v22  ;;  %v3245_v10 = vshrl.u32 %v3227_v2, %v3243_v13  ;;  %v3248_v6 = vadd.s32 127, %v3247_v37  ;;  %v3376_v31 = vsel %vm3375_vm7, 1, %v7712_v50  ;;  %vm7319_vm0 = vcmp.le.f32.partialorder %v3133_v57, 0.7853982 }
 0x4fe   :  { %v3258_v28 = vsel %vm3135_vm12, %v3257_v8, %v7257_v29  ;;  %v3368_v61 = vshrl.u32 %v7276_v51, 16  ;;  %v3378_v9 = vadd.s32 %v3376_v31, %v3374_v3  ;;  %v7327_v48 = vadd.s32 %v3373_v30, %v3369_v58  ;;  %v7806_v30 = vld [vmem:[#allocation18_spill] sm:$0xff]  ;;  %v7807_v3 = vld [vmem:[#allocation13_spill] sm:$0xff] }
 0x4ff   :  { %v3246_v16 = vor.u32 %v3245_v10, %v3244_v18  ;;  %v3249_v2 = vshll.u32 %v3248_v6, 23  ;;  %v2830_v23 = vand.u32 8388607, %v2823_v17  ;;  %v3327_v57 = vsel %vm3321_vm1, %v3324_v38, %v3326_v5 }
 0x500   :  { %v3370_v1 = vshrl.u32 %v3365_v33, 16  ;;  %v3379_v12 = vadd.s32 %v3378_v9, %v3368_v61  ;;  %v2841_v24 = vshrl.u32 %v7714_v46, %v7804_v42  ;;  %v3260_v29 = vsel %vm7319_vm0, 0, %v3258_v28 }
 0x501   :  { %v3250_v54 = vor.u32 4788187, %v3249_v2  ;;  %vm3383_vm8 = vc.u32 %v7313_v21, %v7327_v48  ;;  %v2831_v51 = vor.u32 8388608, %v2830_v23  ;;  %v2840_v39 = vshll.u32 %v7713_v26, %v7805_v35 }
 0x502   :  { %v3380_v62 = vadd.s32 %v3379_v12, %v3370_v1  ;;  %v2843_v36 = vshll.u32 %v7714_v46, %v7805_v35  ;;  %v2844_v38 = vshrl.u32 %v7715_v25, %v7804_v42  ;;  %v3253_v44 = vcvt.s32.f32 %v3246_v16 }
 0x503   :  { %v3251_v33 = vand.u32 2147483647, %v3250_v54  ;;  %v2846_v8 = vshll.u32 %v7715_v25, %v7805_v35  ;;  %v2847_v53 = vshrl.u32 %v7679_v52, %v7804_v42  ;;  %v3381_v47 = vmul.u32 %v7210_v20, %v3327_v57 }
 0x504   :  { %v3384_v4 = vadd.s32 1, %v3380_v62  ;;  %v7350_v32 = vor.u32 %v2841_v24, %v2840_v39  ;;  %v7352_v27 = vor.u32 %v2844_v38, %v2843_v36  ;;  %vm2857_vm1 = vcmp.lt.s32.totalorder %v7806_v30, 3 }
 0x505   :  { %v3254_v58 = vmul.f32 %v3253_v44, %v3251_v33  ;;  %v2848_v7 = vor.u32 %v2847_v53, %v2846_v8  ;;  %v7355_v19 = vshll.u32 %v2831_v51, 8  ;;  %v7359_v41 = vor.u32 %v7266_v40, %v7252_v45 }
 0x506   :  { %v3009_v59 = vor.u32 %v7271_v15, %v7262_v14  ;;  %v3385_v20 = vsel %vm3383_vm8, %v3384_v4, %v3380_v62  ;;  %v2869_v13 = vsel %vm2857_vm1, %v7808_v63, %v7807_v3  ;;  %v3277_v5 = vadd.s32 3, %v3260_v29  ;;  %v7809_v14 = vld [vmem:[#allocation9_spill] sm:$0xff] }
 0x507   :  { %v3255_v37 = vxor.u32 2147483648, %v3254_v58  ;;  %v3386_v22 = vadd.s32 %v3385_v20, %v3381_v47  ;;  %vm2855_vm13 = vcmp.lt.s32.totalorder %v7806_v30, 1  ;;  %vm2856_vm15 = vcmp.lt.s32.totalorder %v7806_v30, 2 }
 0x508   :  { %v2863_v45 = vsel %vm2855_vm13, %v7350_v32, %v7352_v27  ;;  %v2865_v40 = vsel %vm2857_vm1, %v2848_v7, %v7809_v14  ;;  %v2867_v15 = vsel %vm2855_vm13, %v7352_v27, %v2848_v7  ;;  %v2872_v31 = vand.u32 65535, %v7355_v19 }
 0x509   :  { %v3256_v18 = vsel %vm3135_vm12, %v3255_v37, %v3254_v58  ;;  %v3387_v10 = vadd.s32 536870912, %v3386_v22  ;;  %v2870_v6 = vsel %vm2856_vm15, %v2867_v15, %v2869_v13  ;;  %v7391_v61 = vshrl.u32 %v7355_v19, 16 }
 0x50a   :  { %v3259_v28 = vsel %vm7319_vm0, %v7786_v56, %v3256_v18  ;;  %v2874_v9 = vand.u32 65535, %v2870_v6  ;;  %v2875_v16 = vshrl.u32 %v2870_v6, 16  ;;  %vm3013_vm2 = vcmp.lt.s32.totalorder %v7248_v49, 4 }
 0x50b   :  { %v3261_v2 = vmul.f32 %v3259_v28, %v3259_v28  ;;  %v7394_v23 = vshrl.u32 %v3387_v10, 30  ;;  %v2866_v57 = vsel %vm2856_vm15, %v2863_v45, %v2865_v40  ;;  %v7401_v1 = vsel %vm3013_vm2, %v7359_v41, 920167782 }
 0x50c   :  { %v7405_v11 = vsel %vm3013_vm2, %v3009_v59, 1326507024  ;;  %v2877_v12 = vmul.u32 %v2875_v16, %v2872_v31  ;;  %v7408_v24 = vmul.u32 %v2874_v9, %v7391_v61  ;;  %v7410_v51 = vand.u32 3, %v3277_v5 }
 0x50d   :  { %v3262_v54 = vmul.f32 -0.001358992, %v3261_v2  ;;  %v3269_v29 = vmul.f32 -0.00019511016, %v3261_v2  ;;  %v3389_v62 = vshll.u32 %v7394_v23, 30  ;;  %v2839_v35 = vshrl.u32 %v7713_v26, %v7804_v42 }
 0x50e   :  { %v2876_v39 = vmul.u32 %v2874_v9, %v2872_v31  ;;  %v2880_v36 = vshll.u32 %v2877_v12, 16  ;;  %v2897_v38 = vshrl.u32 %v2866_v57, 16  ;;  %v2860_v53 = vsel %vm2858_vm6, %v2848_v7, 2102212464 }
 0x50f   :  { %v3263_v33 = vadd.f32 0.041655596, %v3262_v54  ;;  %v3270_v44 = vadd.f32 0.008332121, %v3269_v29  ;;  %v3390_v8 = vsub.s32 %v3386_v22, %v3389_v62  ;;  %v2879_v47 = vmul.u32 %v2875_v16, %v7391_v61 }
 0x510   :  { %v2882_v4 = vshll.u32 %v7408_v24, 16  ;;  %vm2884_vm9 = vc.u32 %v2876_v39, %v2880_v36  ;;  %v2886_v58 = vadd.s32 %v2880_v36, %v2876_v39  ;;  %v2896_v63 = vand.u32 65535, %v2866_v57  ;;  %v7810_v57 = vld [vmem:[#allocation11_spill] sm:$0xff] }
 0x511   :  { %v3264_v59 = vmul.f32 %v3263_v33, %v3261_v2  ;;  %v3271_v20 = vmul.f32 %v3270_v44, %v3261_v2  ;;  %vm3391_vm14 = vcmp.lt.s32.totalorder %v3390_v8, 0  ;;  %v3392_v3 = vsub.s32 0, %v3390_v8 }
 0x512   :  { %v2885_v42 = vsel %vm2884_vm9, 1, %v7712_v50  ;;  %vm2888_vm3 = vc.u32 %v2886_v58, %v2882_v4  ;;  %v7420_v13 = vmul.u32 %v2897_v38, %v2872_v31  ;;  %vm3280_vm6 = vcmp.eq.s32.totalorder %v7410_v51, 0 }
 0x513   :  { %v3265_v37 = vadd.f32 -0.4999988, %v3264_v59  ;;  %v3272_v5 = vadd.f32 -0.16666654, %v3271_v20  ;;  %v3393_v22 = vsel %vm3391_vm14, %v3392_v3, %v3390_v8  ;;  %v2887_v7 = vadd.s32 %v2885_v42, %v2879_v47 }
 0x514   :  { %vm3283_vm5 = vcmp.eq.s32.totalorder %v7410_v51, 2  ;;  %v3394_v45 = vclz %v3393_v22  ;;  %v2889_v14 = vsel %vm2888_vm3, 1, %v7712_v50  ;;  %vm3279_vm12 = vcmp.lt.s32.totalorder %v7410_v51, 2 }
 0x515   :  { %v3266_v40 = vmul.f32 %v3265_v37, %v3261_v2  ;;  %v3273_v15 = vmul.f32 %v3272_v5, %v3261_v2  ;;  %v2859_v18 = vsel %vm2855_vm13, %v2839_v35, %v7350_v32  ;;  %v2861_v10 = vsel %vm2857_vm1, %v7352_v27, %v2860_v53 }
 0x516   :  { %vm3276_vm4 = vweird.f32 %v7786_v56  ;;  %v3382_v6 = vadd.s32 %v7327_v48, %v7313_v21  ;;  %v4201_v9 = vadd.s32 4294967294, %v3394_v45  ;;  %v2891_v16 = vadd.s32 %v2889_v14, %v2887_v7 }
 0x517   :  { %v2978_v54 = vand.u32 2147483647, %v7810_v57  ;;  %v3267_v2 = vadd.f32 1.0, %v3266_v40  ;;  %v3274_v29 = vadd.f32 1.0, %v3273_v15  ;;  %v2900_v62 = vmul.u32 %v2896_v63, %v7391_v61 }
 0x518   :  { %v2902_v39 = vshll.u32 %v7420_v13, 16  ;;  %vm4202_vm11 = vcmp.lt.s32.totalorder %v4201_v9, 0  ;;  %v7440_v32 = vsel %vm2856_vm15, %v2859_v18, %v2861_v10  ;;  %v2881_v27 = vshrl.u32 %v2877_v12, 16 }
 0x519   :  { %v2898_v35 = vmul.u32 %v2896_v63, %v2872_v31  ;;  %v3275_v36 = vmul.f32 %v3274_v29, %v3259_v28  ;;  %v3284_v33 = vxor.u32 2147483648, %v3267_v2  ;;  %v3397_v21 = vsel %vm4202_vm11, 0, %v4201_v9 }
 0x51a   :  { %v2901_v48 = vmul.u32 %v2897_v38, %v7391_v61  ;;  %v3398_v44 = vsub.s32 32, %v3397_v21  ;;  %v3402_v53 = vsub.s32 4294967266, %v3397_v21  ;;  %v2892_v47 = vadd.s32 %v2891_v16, %v2881_v27 }
 0x51b   :  { %vm2906_vm7 = vc.u32 %v2898_v35, %v2902_v39  ;;  %v3281_v4 = vxor.u32 2147483648, %v3275_v36  ;;  %v2904_v58 = vshll.u32 %v2900_v62, 16  ;;  %v2908_v20 = vadd.s32 %v2902_v39, %v2898_v35 }
 0x51c   :  { %v2907_v59 = vsel %vm2906_vm7, 1, %v7712_v50  ;;  %v3399_v3 = vshll.u32 %v3390_v8, %v3397_v21  ;;  %v3400_v30 = vshrl.u32 %v3382_v6, %v3398_v44  ;;  %v3403_v42 = vadd.s32 127, %v3402_v53 }
 0x51d   :  { %v2909_v37 = vadd.s32 %v2907_v59, %v2901_v48  ;;  %v3282_v31 = vsel %vm3280_vm6, %v3267_v2, %v3281_v4  ;;  %v3285_v28 = vsel %vm3283_vm5, %v3284_v33, %v3275_v36  ;;  %v2883_v61 = vshrl.u32 %v7408_v24, 16 }
 0x51e   :  { %vm2910_vm0 = vc.u32 %v2908_v20, %v2904_v58  ;;  %v3286_v12 = vsel %vm3279_vm12, %v3282_v31, %v3285_v28  ;;  %v3401_v38 = vor.u32 %v3400_v30, %v3399_v3  ;;  %v3404_v63 = vshll.u32 %v3403_v42, 23 }
 0x51f   :  { %v2911_v5 = vsel %vm2910_vm0, 1, %v7712_v50  ;;  %v3287_v8 = vsel %vm3276_vm4, nan, %v3286_v12  ;;  %vm3290_vm8 = vcmp.lt.s32.totalorder %v7798_v43, 0  ;;  %v2903_v22 = vshrl.u32 %v7420_v13, 16 }
 0x520   :  { %v2905_v7 = vshrl.u32 %v2900_v62, 16  ;;  %v2913_v45 = vadd.s32 %v2911_v5, %v2909_v37  ;;  %4086 = vmatpush.msrb.mxu0 %v3287_v8  ;;  %v3405_v14 = vor.u32 4788187, %v3404_v63  ;;  %v7456_v24 = vadd.s32 %v2892_v47, %v2883_v61 }
 0x521   :  { %v7458_v40 = vadd.s32 %v2908_v20, %v2904_v58  ;;  %v2985_v51 = vand.u32 8388607, %v2978_v54  ;;  %v3408_v15 = vcvt.s32.f32 %v3401_v38  ;;  %v2995_v56 = vshll.u32 %v7713_v26, %v7109_v0 }
 0x522   :  { %v2914_v18 = vadd.s32 %v2913_v45, %v2903_v22  ;;  %v2996_v10 = vshrl.u32 %v7714_v46, %v7245_v34  ;;  %v3406_v13 = vand.u32 2147483647, %v3405_v14  ;;  %v2998_v9 = vshll.u32 %v7714_v46, %v7109_v0 }
 0x523   :  { %v2986_v6 = vor.u32 8388608, %v2985_v51  ;;  %v2999_v16 = vshrl.u32 %v7715_v25, %v7245_v34  ;;  %v3001_v62 = vshll.u32 %v7715_v25, %v7109_v0  ;;  %v3002_v39 = vshrl.u32 %v7679_v52, %v7245_v34 }
 0x524   :  { %v2915_v2 = vadd.s32 %v2914_v18, %v2905_v7  ;;  %v7470_v29 = vor.u32 %v2996_v10, %v2995_v56  ;;  %v3409_v27 = vmul.f32 %v3408_v15, %v3406_v13  ;;  %v3412_v35 = vsub.s32 4, %v7394_v23 }
 0x525   :  { %vm2918_vm1 = vc.u32 %v7456_v24, %v7458_v40  ;;  %v7479_v36 = vor.u32 %v2999_v16, %v2998_v9  ;;  %v7481_v33 = vor.u32 %v3002_v39, %v3001_v62  ;;  %vm3010_vm13 = vcmp.lt.s32.totalorder %v7248_v49, 1 }
 0x526   :  { %v2919_v46 = vadd.s32 1, %v2915_v2  ;;  %vm3012_vm15 = vcmp.lt.s32.totalorder %v7248_v49, 3  ;;  %v3410_v21 = vxor.u32 2147483648, %v3409_v27  ;;  %v2916_v25 = vmul.u32 %v7355_v19, %v7440_v32 }
 0x527   :  { %v3018_v52 = vsel %vm3010_vm13, %v7470_v29, %v7479_v36  ;;  %v3024_v0 = vsel %vm3012_vm15, %v7359_v41, %v7405_v11  ;;  %v3020_v44 = vsel %vm3012_vm15, %v7481_v33, %v7401_v1  ;;  %v3022_v19 = vsel %vm3010_vm13, %v7479_v36, %v7481_v33 }
 0x528   :  { %v2920_v48 = vsel %vm2918_vm1, %v2919_v46, %v2915_v2  ;;  %v7503_v32 = vshll.u32 %v2986_v6, 8  ;;  %vm7507_vm9 = vcmp.le.f32.partialorder %v3288_v55, 0.7853982  ;;  %v3411_v41 = vsel %vm3290_vm8, %v3410_v21, %v3409_v27 }
 0x529   :  { %v2921_v11 = vadd.s32 %v2920_v48, %v2916_v25  ;;  %vm3011_vm14 = vcmp.lt.s32.totalorder %v7248_v49, 2  ;;  %v3413_v1 = vsel %vm3290_vm8, %v3412_v35, %v7394_v23  ;;  %v3414_v47 = vsel %vm7507_vm9, %v7798_v43, %v3411_v41 }
 0x52a   :  { %v3025_v55 = vsel %vm3011_vm14, %v3022_v19, %v3024_v0  ;;  %v3416_v4 = vmul.f32 %v3414_v47, %v3414_v47  ;;  %v3021_v59 = vsel %vm3011_vm14, %v3018_v52, %v3020_v44  ;;  %v3027_v3 = vand.u32 65535, %v7503_v32 }
 0x52b   :  { %v2922_v58 = vadd.s32 536870912, %v2921_v11  ;;  %v3029_v20 = vand.u32 65535, %v3025_v55  ;;  %v3028_v30 = vshrl.u32 %v7503_v32, 16  ;;  %v3030_v42 = vshrl.u32 %v3025_v55, 16 }
 0x52c   :  { %v3415_v23 = vsel %vm7507_vm9, 0, %v3413_v1  ;;  %v3417_v37 = vmul.f32 -0.001358992, %v3416_v4  ;;  %v3424_v31 = vmul.f32 -0.00019511016, %v3416_v4  ;;  %v3052_v38 = vshrl.u32 %v3021_v59, 16 }
 0x52d   :  { %v7528_v28 = vshrl.u32 %v2922_v58, 30  ;;  %v3032_v61 = vmul.u32 %v3030_v42, %v3027_v3  ;;  %v7530_v12 = vmul.u32 %v3029_v20, %v3028_v30  ;;  %v3432_v22 = vadd.s32 3, %v3415_v23 }
 0x52e   :  { %v3418_v63 = vadd.f32 0.041655596, %v3417_v37  ;;  %v3425_v5 = vadd.f32 0.008332121, %v3424_v31  ;;  %v3031_v7 = vmul.u32 %v3029_v20, %v3027_v3  ;;  %v3034_v18 = vmul.u32 %v3030_v42, %v3028_v30 }
 0x52f   :  { %v2924_v8 = vshll.u32 %v7528_v28, 30  ;;  %v3035_v45 = vshll.u32 %v3032_v61, 16  ;;  %v3037_v56 = vshll.u32 %v7530_v12, 16  ;;  %v7534_v13 = vmul.u32 %v3052_v38, %v3027_v3 }
 0x530   :  { %v3419_v14 = vmul.f32 %v3418_v63, %v3416_v4  ;;  %v3426_v51 = vmul.f32 %v3425_v5, %v3416_v4  ;;  %v3433_v2 = vand.u32 3, %v3432_v22  ;;  %v3051_v39 = vand.u32 65535, %v3021_v59 }
 0x531   :  { %v2925_v15 = vsub.s32 %v2921_v11, %v2924_v8  ;;  %vm3039_vm3 = vc.u32 %v3031_v7, %v3035_v45  ;;  %v3041_v10 = vadd.s32 %v3035_v45, %v3031_v7  ;;  %vm3431_vm12 = vweird.f32 %v7798_v43 }
 0x532   :  { %v3420_v6 = vadd.f32 -0.4999988, %v3419_v14  ;;  %v3427_v9 = vadd.f32 -0.16666654, %v3426_v51  ;;  %v3040_v62 = vsel %vm3039_vm3, 1, %v7712_v50  ;;  %v3057_v19 = vshll.u32 %v7534_v13, 16 }
 0x533   :  { %vm2926_vm6 = vcmp.lt.s32.totalorder %v2925_v15, 0  ;;  %v2927_v16 = vsub.s32 0, %v2925_v15  ;;  %vm3043_vm5 = vc.u32 %v3041_v10, %v3037_v56  ;;  %v3042_v21 = vadd.s32 %v3040_v62, %v3034_v18 }
 0x534   :  { %v3421_v27 = vmul.f32 %v3420_v6, %v3416_v4  ;;  %v3428_v35 = vmul.f32 %v3427_v9, %v3416_v4  ;;  %v3044_v52 = vsel %vm3043_vm5, 1, %v7712_v50  ;;  %vm3434_vm4 = vcmp.lt.s32.totalorder %v3433_v2, 2 }
 0x535   :  { %v2928_v46 = vsel %vm2926_vm6, %v2927_v16, %v2925_v15  ;;  %v3046_v44 = vadd.s32 %v3044_v52, %v3042_v21  ;;  %v3053_v41 = vmul.u32 %v3051_v39, %v3027_v3  ;;  %v3055_v11 = vmul.u32 %v3051_v39, %v3028_v30 }
 0x536   :  { %v2929_v25 = vclz %v2928_v46  ;;  %v3422_v0 = vadd.f32 1.0, %v3421_v27  ;;  %v3429_v48 = vadd.f32 1.0, %v3428_v35  ;;  %vm3435_vm11 = vcmp.eq.s32.totalorder %v3433_v2, 0 }
 0x537   :  { %v3036_v4 = vshrl.u32 %v3032_v61, 16  ;;  %vm3438_vm7 = vcmp.eq.s32.totalorder %v3433_v2, 2  ;;  %v2917_v58 = vadd.s32 %v7458_v40, %v7456_v24  ;;  %vm3061_vm8 = vc.u32 %v3053_v41, %v3057_v19 }
 0x538   :  { %v4192_v53 = vadd.s32 4294967294, %v2929_v25  ;;  %v3430_v1 = vmul.f32 %v3429_v48, %v3414_v47  ;;  %v3439_v55 = vxor.u32 2147483648, %v3422_v0  ;;  %v3056_v23 = vmul.u32 %v3052_v38, %v3028_v30 }
 0x539   :  { %v3047_v42 = vadd.s32 %v3046_v44, %v3036_v4  ;;  %v3059_v63 = vshll.u32 %v3055_v11, 16  ;;  %v3062_v3 = vsel %vm3061_vm8, 1, %v7712_v50  ;;  %v3063_v8 = vadd.s32 %v3057_v19, %v3053_v41 }
 0x53a   :  { %vm4193_vm0 = vcmp.lt.s32.totalorder %v4192_v53, 0  ;;  %v3436_v59 = vxor.u32 2147483648, %v3430_v1  ;;  %v3440_v47 = vsel %vm3438_vm7, %v3439_v55, %v3430_v1  ;;  %v3064_v22 = vadd.s32 %v3062_v3, %v3056_v23 }
 0x53b   :  { %v2932_v20 = vsel %vm4193_vm0, 0, %v4192_v53  ;;  %v2994_v30 = vshrl.u32 %v7713_v26, %v7245_v34  ;;  %v3015_v38 = vsel %vm3013_vm2, %v7481_v33, 2102212464  ;;  %vm3065_vm1 = vc.u32 %v3063_v8, %v3059_v63 }
 0x53c   :  { %v2933_v37 = vsub.s32 32, %v2932_v20  ;;  %v2937_v31 = vsub.s32 4294967266, %v2932_v20  ;;  %v3437_v5 = vsel %vm3435_vm11, %v3422_v0, %v3436_v59  ;;  %v2934_v7 = vshll.u32 %v2925_v15, %v2932_v20 }
 0x53d   :  { %v3441_v61 = vsel %vm3434_vm4, %v3437_v5, %v3440_v47  ;;  %v3038_v18 = vshrl.u32 %v7530_v12, 16  ;;  %v3066_v15 = vsel %vm3065_vm1, 1, %v7712_v50  ;;  %v3058_v56 = vshrl.u32 %v7534_v13, 16 }
 0x53e   :  { %v2935_v45 = vshrl.u32 %v2917_v58, %v2933_v37  ;;  %v2938_v24 = vadd.s32 127, %v2937_v31  ;;  %v3442_v40 = vsel %vm3431_vm12, nan, %v3441_v61  ;;  %v3068_v10 = vadd.s32 %v3066_v15, %v3064_v22 }
 0x53f   :  { %4106 = vmatpush.msrb.mxu1 %v3442_v40  ;;  %v3014_v26 = vsel %vm3010_vm13, %v2994_v30, %v7470_v29  ;;  %v3016_v34 = vsel %vm3012_vm15, %v7479_v36, %v3015_v38  ;;  %v3048_v33 = vadd.s32 %v3047_v42, %v3038_v18  ;;  %v3060_v6 = vshrl.u32 %v3055_v11, 16 }
 0x540   :  { %v2936_v14 = vor.u32 %v2935_v45, %v2934_v7  ;;  %v2939_v51 = vshll.u32 %v2938_v24, 23  ;;  %v3069_v9 = vadd.s32 %v3068_v10, %v3058_v56  ;;  %v3067_v12 = vadd.s32 %v3063_v8, %v3059_v63 }
 0x541   :  { %v3017_v50 = vsel %vm3011_vm14, %v3014_v26, %v3016_v34  ;;  %vm2825_vm13 = vcmp.lt.s32.totalorder %v7801_v60, 0  ;;  %v2947_v36 = vsub.s32 4, %v7528_v28  ;;  %vm7567_vm15 = vcmp.le.f32.partialorder %v2823_v17, 0.7853982  ;;  %v58_v26 = vld [vmem:[%s7599_s7] sm:$0x1] }
 0x542   :  { %v2940_v43 = vor.u32 4788187, %v2939_v51  ;;  %v2943_v2 = vcvt.s32.f32 %v2936_v14  ;;  %v3070_v13 = vadd.s32 %v3069_v9, %v3060_v6  ;;  %vm3073_vm2 = vc.u32 %v3048_v33, %v3067_v12 }
 0x543   :  { %v3071_v29 = vmul.u32 %v7503_v32, %v3017_v50  ;;  %v2948_v32 = vsel %vm2825_vm13, %v2947_v36, %v7528_v28  ;;  %v3072_v45 = vadd.s32 %v3067_v12, %v3048_v33  ;;  %vm2966_vm5 = vweird.f32 %v7801_v60 }
 0x544   :  { %v2941_v16 = vand.u32 2147483647, %v2940_v43  ;;  %v3074_v39 = vadd.s32 1, %v3070_v13  ;;  %v2950_v53 = vsel %vm7567_vm15, 0, %v2948_v32  ;;  %vm2980_vm4 = vcmp.lt.s32.totalorder %v7810_v57, 0 }
 0x545   :  { %v2967_v58 = vadd.s32 3, %v2950_v53  ;;  %vm2979_vm11 = vcmp.le.f32.partialorder %v2978_v54, 0.7853982  ;;  %vm3121_vm1 = vweird.f32 %v7810_v57 }
 0x546   :  { %v2944_v62 = vmul.f32 %v2943_v2, %v2941_v16  ;;  %v3075_v35 = vsel %vm3073_vm2, %v3074_v39, %v3070_v13  ;;  %vm4115_vm2 = vcmask 1040384  }
 0x547   :  { %v3076_v21 = vadd.s32 %v3075_v35, %v3071_v29  ;;  %v2968_v5 = vand.u32 3, %v2967_v58  ;;  %v4118_v58 = vlaneseq }
 0x548   :  { %v2945_v27 = vxor.u32 2147483648, %v2944_v62 }
 0x549   :  { %v3077_v0 = vadd.s32 536870912, %v3076_v21  ;;  %vm2970_vm3 = vcmp.eq.s32.totalorder %v2968_v5, 0  ;;  %vm2973_vm6 = vcmp.eq.s32.totalorder %v2968_v5, 2  ;;  %vm2969_vm12 = vcmp.lt.s32.totalorder %v2968_v5, 2 }
 0x54a   :  { %v2946_v49 = vsel %vm2825_vm13, %v2945_v27, %v2944_v62  ;;  %vm4120_vm13 = vcmp.lt.s32.totalorder %v4118_v58, 256 }
 0x54b   :  { %v2949_v25 = vsel %vm7567_vm15, %v7801_v60, %v2946_v49  ;;  %v3078_v19 = vshrl.u32 %v3077_v0, 30 }
 0x54c   :  { %v2951_v52 = vmul.f32 %v2949_v25, %v2949_v25 }
 0x54d   :  { %v3079_v11 = vshll.u32 %v3078_v19, 30  ;;  %v3102_v2 = vsub.s32 4, %v3078_v19 }
 0x54e   :  { %v2952_v48 = vmul.f32 -0.001358992, %v2951_v52  ;;  %v2959_v44 = vmul.f32 -0.00019511016, %v2951_v52 }
 0x54f   :  { %v3080_v4 = vsub.s32 %v3076_v21, %v3079_v11  ;;  %v3103_v39 = vsel %vm2980_vm4, %v3102_v2, %v3078_v19 }
 0x550   :  { %v2953_v17 = vadd.f32 0.041655596, %v2952_v48  ;;  %v2960_v41 = vadd.f32 0.008332121, %v2959_v44  ;;  %v3105_v36 = vsel %vm2979_vm11, 0, %v3103_v39 }
 0x551   :  { %vm3081_vm9 = vcmp.lt.s32.totalorder %v3080_v4, 0  ;;  %v3082_v42 = vsub.s32 0, %v3080_v4 }
 0x552   :  { %v2954_v1 = vmul.f32 %v2953_v17, %v2951_v52  ;;  %v2961_v55 = vmul.f32 %v2960_v41, %v2951_v52 }
 0x553   :  { %v3083_v28 = vsel %vm3081_vm9, %v3082_v42, %v3080_v4 }
 0x554   :  { %v2955_v59 = vadd.f32 -0.4999988, %v2954_v1  ;;  %v2962_v20 = vadd.f32 -0.16666654, %v2961_v55  ;;  %v3084_v31 = vclz %v3083_v28  ;;  %v4066_v55 = vpop.permute.xlu1 %4065 }
 0x556   :  { %v2956_v23 = vmul.f32 %v2955_v59, %v2951_v52  ;;  %v2963_v37 = vmul.f32 %v2962_v20, %v2951_v52  ;;  %v4195_v47 = vadd.s32 4294967294, %v3084_v31 }
 0x558   :  { %v2957_v63 = vadd.f32 1.0, %v2956_v23  ;;  %v2964_v3 = vadd.f32 1.0, %v2963_v37  ;;  %vm4196_vm14 = vcmp.lt.s32.totalorder %v4195_v47, 0 }
 0x559   :  { %v3087_v7 = vsel %vm4196_vm14, 0, %v4195_v47 }
 0x55a   :  { %v2965_v8 = vmul.f32 %v2964_v3, %v2949_v25  ;;  %v2974_v22 = vxor.u32 2147483648, %v2957_v63  ;;  %v3088_v24 = vsub.s32 32, %v3087_v7  ;;  %v3092_v40 = vsub.s32 4294967266, %v3087_v7 }
 0x55b   :  { %v3089_v51 = vshll.u32 %v3080_v4, %v3087_v7  ;;  %v3122_v25 = vadd.s32 3, %v3105_v36  ;;  %v4068_v4 = vperm.slane %v4066_v55, 0 }
 0x55c   :  { %v2971_v61 = vxor.u32 2147483648, %v2965_v8  ;;  %v2975_v38 = vsel %vm2973_vm6, %v2974_v22, %v2965_v8  ;;  %v3090_v18 = vshrl.u32 %v3072_v45, %v3088_v24  ;;  %v3093_v15 = vadd.s32 127, %v3092_v40 }
 0x55d   :  { %v3123_v48 = vand.u32 3, %v3122_v25 }
 0x55e   :  { %v2972_v30 = vsel %vm2970_vm3, %v2957_v63, %v2971_v61  ;;  %v3091_v10 = vor.u32 %v3090_v18, %v3089_v51  ;;  %v3094_v43 = vshll.u32 %v3093_v15, 23 }
 0x55f   :  { %v2976_v14 = vsel %vm2969_vm12, %v2972_v30, %v2975_v38  ;;  %vm3125_vm7 = vcmp.eq.s32.totalorder %v3123_v48, 0  ;;  %vm3128_vm0 = vcmp.eq.s32.totalorder %v3123_v48, 2  ;;  %vm3124_vm8 = vcmp.lt.s32.totalorder %v3123_v48, 2 }
 0x560   :  { %v2977_v56 = vsel %vm2966_vm5, nan, %v2976_v14  ;;  %v3095_v34 = vor.u32 4788187, %v3094_v43  ;;  %v3098_v60 = vcvt.s32.f32 %v3091_v10 }
 0x561   :  { %4087 = vmatpush.msrb.mxu0 %v2977_v56 }
 0x562   :  { %4215 = vmatmul.msk.f32.vlgmr.msrb.gmra.mxu0 %vm1422_vm10, %v58_v26  ;;  %v3096_v33 = vand.u32 2147483647, %v3095_v34 }
 0x564   :  { %v3099_v6 = vmul.f32 %v3098_v60, %v3096_v33 }
 0x566   :  { %v3100_v9 = vxor.u32 2147483648, %v3099_v6 }
 0x568   :  { %v3101_v16 = vsel %vm2980_vm4, %v3100_v9, %v3099_v6 }
 0x569   :  { %v3104_v12 = vsel %vm2979_vm11, %v7810_v57, %v3101_v16 }
 0x56a   :  { %v3106_v50 = vmul.f32 %v3104_v12, %v3104_v12 }
 0x56c   :  { %v3107_v13 = vmul.f32 -0.001358992, %v3106_v50  ;;  %v3114_v62 = vmul.f32 -0.00019511016, %v3106_v50 }
 0x56e   :  { %v3108_v27 = vadd.f32 0.041655596, %v3107_v13  ;;  %v3115_v29 = vadd.f32 0.008332121, %v3114_v62 }
 0x570   :  { %v3109_v35 = vmul.f32 %v3108_v27, %v3106_v50  ;;  %v3116_v46 = vmul.f32 %v3115_v29, %v3106_v50 }
 0x572   :  { %v3110_v49 = vadd.f32 -0.4999988, %v3109_v35  ;;  %v3117_v21 = vadd.f32 -0.16666654, %v3116_v46 }
 0x574   :  { %v3111_v52 = vmul.f32 %v3110_v49, %v3106_v50  ;;  %v3118_v0 = vmul.f32 %v3117_v21, %v3106_v50 }
 0x576   :  { %v3112_v32 = vadd.f32 1.0, %v3111_v52  ;;  %v3119_v54 = vadd.f32 1.0, %v3118_v0 }
 0x578   :  { %v3120_v44 = vmul.f32 %v3119_v54, %v3104_v12  ;;  %v3129_v53 = vxor.u32 2147483648, %v3112_v32 }
 0x57a   :  { %v3126_v17 = vxor.u32 2147483648, %v3120_v44  ;;  %v3130_v41 = vsel %vm3128_vm0, %v3129_v53, %v3120_v44 }
 0x57c   :  { %v3127_v19 = vsel %vm3125_vm7, %v3112_v32, %v3126_v17 }
 0x57d   :  { %v3131_v11 = vsel %vm3124_vm8, %v3127_v19, %v3130_v41 }
 0x57e   :  { %v3132_v1 = vsel %vm3121_vm1, nan, %v3131_v11 }
 0x57f   :  { %4107 = vmatpush.msrb.mxu1 %v3132_v1 }
 0x580   :  { %4216 = vmatmul.msk.f32.vlgmr.msrb.gmra.mxu1 %vm1422_vm10, %v58_v26 }
 0x5df   :  { %v4089_v59 = vpop.f32.mrf.mxu0 }
 0x5e0   :  { %v4090_v23 = vadd.f32 %v4089_v59, %v4068_v4 }
 0x5fd   :  { %v4109_v20 = vpop.f32.mrf.mxu1 }
 0x5fe   :  { %v4110_v42 = vadd.f32 %v4109_v20, %v4068_v4 }
 0x600   :  { %v4114_v37 = vrot.slane %v4110_v42, 7 }
 0x602   :  { %v4116_v28 = vsel %vm4115_vm2, %v4090_v23, %v4114_v37 }
 0x603   :  { %4122 = vst.msk [vmem:[%s7600_s9] sm:$0x3] %vm4120_vm13, %v4116_v28 }

</bundles_post_ra>
